<compile_context>
chip_gen: v6e
topology: v6e:2x2x1
jax: 0.10.0
libtpu: 0.0.40
codegen_flags: <defaults>
</compile_context>

<pallas_src>
import jax
import jax.numpy as jnp
from jax import lax
from jax.experimental import pallas as pl
from jax.experimental.pallas import tpu as pltpu

H1 = 768            # BERT hidden size
H2 = 128            # classifier hidden size
CLASS_NUM = 3
DROP_OUT_RATE = 0.2     # unused at inference (dropout == identity)
VOCAB = 1024        # synthetic vocab, lane/sublane friendly
VCHUNK = 128        # vocab tile for the pooling-weight build (128 lanes)
OUT_PAD = 128       # lane-dense padded class dimension
NEG_BIG = -1e30     # bias for padded logit columns -> exp() underflows to 0

assert VOCAB % VCHUNK == 0


def _round_up(x, m):
    return (x + m - 1) // m * m


def _tpu_kind():
    try:
        return jax.devices()[0].device_kind.lower()
    except Exception:
        return ""


def _make_head_kernel(use_bf16_eltwise):
    """Build the fused head kernel.

    use_bf16_eltwise: compute tanh in bf16 (v6e/v7x bf16 EUP); False on v5e.
    """
    eltwise_dtype = jnp.bfloat16 if use_bf16_eltwise else jnp.float32

    def kernel(tok_ref, mask_ref, emb_ref, wp_ref, bp_ref,
               w1_ref, b1_ref, w2_ref, b2_ref, out_ref):
        tb, seq = tok_ref.shape
        vocab, h1 = emb_ref.shape

        tok = tok_ref[...]                                   # [TB, S] int32
        mask = mask_ref[...]                                 # [TB, S] f32

        # Drop out-of-vocab ids from BOTH numerator and denominator.
        valid = jnp.logical_and(tok >= 0, tok < vocab)
        mask = mask * valid.astype(jnp.float32)

        denom = jnp.maximum(jnp.sum(mask, axis=1, keepdims=True), 1.0)
        wmask = mask / denom                                 # [TB, S]

        # Hoisted once; per-chunk offsets are applied to the (tiny) token slice.
        base_iota = lax.broadcasted_iota(jnp.int32, (tb, VCHUNK), 1)

        # Embedding gather + masked mean pooling fused into chunked MXU matmuls:
        #   seq_repr[b, :] = sum_v W_pool[b, v] * emb[v, :]
        # with W_pool built 128 lanes at a time, register-resident over s.
        n_chunks = vocab // VCHUNK
        seq_repr = jnp.zeros((tb, h1), jnp.float32)
        for c in range(n_chunks):                            # static (small vocab)
            base = c * VCHUNK

            def step(w_chunk, tok_s, wm_s, _base=base):
                eq = base_iota == (tok_s - _base)            # [TB, VCHUNK] bool
                return jnp.where(eq, w_chunk + wm_s, w_chunk)

            w_init = jnp.zeros((tb, VCHUNK), jnp.float32)
            if seq <= 16:
                # Short sequences: full static unroll.
                w_chunk = w_init
                for s in range(seq):
                    w_chunk = step(w_chunk, tok[:, s:s + 1], wmask[:, s:s + 1])
            else:
                # Long sequences: bounded unroll keeps code size / live ranges sane.
                def body(s, w_chunk):
                    tok_s = lax.dynamic_slice_in_dim(tok, s, 1, axis=1)
                    wm_s = lax.dynamic_slice_in_dim(wmask, s, 1, axis=1)
                    return step(w_chunk, tok_s, wm_s)
                w_chunk = lax.fori_loop(0, seq, body, w_init, unroll=8)

            seq_repr = seq_repr + jnp.dot(
                w_chunk.astype(jnp.bfloat16),
                emb_ref[base:base + VCHUNK, :],              # static slice (view)
                preferred_element_type=jnp.float32)

        # BERT-style pooler: tanh(dense(seq_repr)).  bf16 tanh on v6e/v7x only.
        z = jnp.dot(seq_repr.astype(jnp.bfloat16), wp_ref[...],
                    preferred_element_type=jnp.float32) + bp_ref[...]
        pooled = jnp.tanh(z.astype(eltwise_dtype)).astype(jnp.bfloat16)  # [TB, H1]

        # dropout (eval mode) == identity.
        # linear1 + ReLU.
        x = jnp.dot(pooled, w1_ref[...],
                    preferred_element_type=jnp.float32) + b1_ref[...]    # [TB, H2]
        x = jnp.maximum(x, 0.0)

        # linear2 (padded to 128 lanes, pad bias -1e30) + exact softmax.
        logits = jnp.dot(x.astype(jnp.bfloat16), w2_ref[...],
                         preferred_element_type=jnp.float32) + b2_ref[...]
        logits = logits - jnp.max(logits, axis=-1, keepdims=True)
        e = jnp.exp(logits)                      # padded columns -> exactly 0
        out_ref[...] = (e / jnp.sum(e, axis=-1, keepdims=True)).astype(out_ref.dtype)

    return kernel


@jax.jit
def bert_aggression_forward(tokens, masks, params):
    """tokens: [B, S] int, masks: [B, S] -> proba [B, CLASS_NUM] float32."""
    B, S = tokens.shape

    kind = _tpu_kind()
    is_v5 = "v5" in kind
    is_v7 = ("v7" in kind) or ("7x" in kind)
    use_bf16_eltwise = ("v6" in kind) or is_v7     # v5e has no bf16 VPU/EUP

    # Batch tile (per review):
    #   v5e: cap 128 (4x128^2 MXU);  v6e/v7x: cap 256 (2x256^2 MXU);
    #   v7x: additionally ensure >=2 grid steps so both TensorCores get work.
    cap = 128 if is_v5 else 256
    if is_v7 and B > 8:
        tb = _round_up(-(-B // 2), 8)
    else:
        tb = _round_up(max(B, 1), 8)
    TB = max(8, min(cap, tb))
    B_pad = _round_up(B, TB)

    tokens_p = jnp.zeros((B_pad, S), jnp.int32).at[:B].set(tokens.astype(jnp.int32))
    masks_p = jnp.zeros((B_pad, S), jnp.float32).at[:B].set(masks.astype(jnp.float32))

    # MXU inputs in bf16 (f32 accumulation in-kernel); biases stay f32.
    emb = params["emb"].astype(jnp.bfloat16)          # [VOCAB, H1]
    wp = params["wp"].astype(jnp.bfloat16)            # [H1, H1]
    w1 = params["w1"].astype(jnp.bfloat16)            # [H1, H2]
    bp = params["bp"].astype(jnp.float32)             # [1, H1]
    b1 = params["b1"].astype(jnp.float32)             # [1, H2]

    # Pad the 3-class projection to 128 lanes: zero weights, -1e30 bias on pads.
    w2 = jnp.zeros((H2, OUT_PAD), jnp.bfloat16).at[:, :CLASS_NUM].set(
        params["w2"].astype(jnp.bfloat16))
    b2 = jnp.full((1, OUT_PAD), NEG_BIG, jnp.float32).at[:, :CLASS_NUM].set(
        params["b2"].astype(jnp.float32))

    res = lambda i: (0, 0)    # weights stay VMEM-resident across the batch grid

    weight_bytes = 2 * (emb.size + wp.size + w1.size + w2.size) \
        + 4 * (bp.size + b1.size + b2.size)
    cost = pl.CostEstimate(
        flops=int(2 * B_pad * (VOCAB * H1 + H1 * H1 + H1 * H2 + H2 * OUT_PAD)
                  + 2 * B_pad * S * VOCAB),
        transcendentals=int(B_pad * (H1 + OUT_PAD)),
        bytes_accessed=int(4 * tokens_p.size + 4 * masks_p.size
                           + 4 * B_pad * OUT_PAD + weight_bytes),
    )

    out = pl.pallas_call(
        _make_head_kernel(use_bf16_eltwise),
        out_shape=jax.ShapeDtypeStruct((B_pad, OUT_PAD), jnp.float32),
        grid=(B_pad // TB,),
        in_specs=[
            pl.BlockSpec((TB, S), lambda i: (i, 0)),        # tokens
            pl.BlockSpec((TB, S), lambda i: (i, 0)),        # masks
            pl.BlockSpec((VOCAB, H1), res),                 # embedding table (bf16)
            pl.BlockSpec((H1, H1), res),                    # pooler W (bf16)
            pl.BlockSpec((1, H1), res),                     # pooler b
            pl.BlockSpec((H1, H2), res),                    # linear1 W (bf16)
            pl.BlockSpec((1, H2), res),                     # linear1 b
            pl.BlockSpec((H2, OUT_PAD), res),               # linear2 W (padded, bf16)
            pl.BlockSpec((1, OUT_PAD), res),                # linear2 b (padded)
        ],
        out_specs=pl.BlockSpec((TB, OUT_PAD), lambda i: (i, 0)),
        compiler_params=pltpu.CompilerParams(
            dimension_semantics=("parallel",)),
        cost_estimate=cost,
    )(tokens_p, masks_p, emb, wp, bp, w1, b1, w2, b2)

    return out[:B, :CLASS_NUM]


def init_params(key):
    ks = jax.random.split(key, 6)
    scale = 0.02
    return {
        "emb": scale * jax.random.normal(ks[0], (VOCAB, H1), jnp.float32),
        # weights stored [in_features, out_features]
        "wp": scale * jax.random.normal(ks[1], (H1, H1), jnp.float32),
        "bp": jnp.zeros((1, H1), jnp.float32),
        "w1": scale * jax.random.normal(ks[2], (H1, H2), jnp.float32),
        "b1": 0.01 * jax.random.normal(ks[3], (1, H2), jnp.float32),
        "w2": scale * jax.random.normal(ks[4], (H2, CLASS_NUM), jnp.float32),
        "b2": 0.01 * jax.random.normal(ks[5], (1, CLASS_NUM), jnp.float32),
    }


if __name__ == "__main__":
    key = jax.random.PRNGKey(0)
    pkey, tkey = jax.random.split(key)

    B, S = 2, 8
    params = init_params(pkey)
    tokens = jax.random.randint(tkey, (B, S), 0, VOCAB, dtype=jnp.int32)
    # simple attention mask: first sequence fully valid, second half-padded
    masks = jnp.array([[1.0] * S, [1.0] * (S // 2) + [0.0] * (S // 2)], jnp.float32)

    proba = bert_aggression_forward(tokens, masks, params)
    proba = jax.block_until_ready(proba)

    assert proba.shape == (B, CLASS_NUM)
    assert bool(jnp.all(jnp.isfinite(proba)))
    # exact softmax divide -> rows sum to 1 (bf16 matmul inputs -> small tol)
    assert bool(jnp.allclose(jnp.sum(proba, axis=-1), 1.0, atol=1e-3))

    print("KERNEL_OK")
</pallas_src>

<mosaic_0001>
module attributes {stable_mosaic.version = 11 : i64} {
  func.func @kernel(%arg0: i32, %arg1: memref<8x8xi32, #tpu.memory_space<vmem>>, %arg2: memref<8x8xf32, #tpu.memory_space<vmem>>, %arg3: memref<1024x768xbf16, #tpu.memory_space<vmem>>, %arg4: memref<768x768xbf16, #tpu.memory_space<vmem>>, %arg5: memref<1x768xf32, #tpu.memory_space<vmem>>, %arg6: memref<768x128xbf16, #tpu.memory_space<vmem>>, %arg7: memref<1x128xf32, #tpu.memory_space<vmem>>, %arg8: memref<128x128xbf16, #tpu.memory_space<vmem>>, %arg9: memref<1x128xf32, #tpu.memory_space<vmem>>, %arg10: memref<8x128xf32, #tpu.memory_space<vmem>>) attributes {dimension_semantics = [#tpu.dimension_semantics<parallel>], iteration_bounds = array<i64: 1>, scalar_prefetch = 0 : i64, scratch_operands = 0 : i64, tpu.core_type = #tpu.core_type<tc>, window_params = [{transform_indices = @transform_0, window_bounds = array<i64: 8, 8>}, {transform_indices = @transform_1, window_bounds = array<i64: 8, 8>}, {pipeline_mode = #tpu.pipeline_mode<synchronous>, transform_indices = @transform_2, window_bounds = array<i64: 1024, 768>}, {pipeline_mode = #tpu.pipeline_mode<synchronous>, transform_indices = @transform_3, window_bounds = array<i64: 768, 768>}, {pipeline_mode = #tpu.pipeline_mode<synchronous>, transform_indices = @transform_4, window_bounds = array<i64: 1, 768>}, {pipeline_mode = #tpu.pipeline_mode<synchronous>, transform_indices = @transform_5, window_bounds = array<i64: 768, 128>}, {pipeline_mode = #tpu.pipeline_mode<synchronous>, transform_indices = @transform_6, window_bounds = array<i64: 1, 128>}, {pipeline_mode = #tpu.pipeline_mode<synchronous>, transform_indices = @transform_7, window_bounds = array<i64: 128, 128>}, {pipeline_mode = #tpu.pipeline_mode<synchronous>, transform_indices = @transform_8, window_bounds = array<i64: 1, 128>}, {transform_indices = @transform_9, window_bounds = array<i64: 8, 128>}]} {
    %c0 = arith.constant 0 : index
    %c0_0 = arith.constant 0 : index
    %0 = vector.load %arg1[%c0, %c0_0] : memref<8x8xi32, #tpu.memory_space<vmem>>, vector<8x8xi32>
    %c0_1 = arith.constant 0 : index
    %c0_2 = arith.constant 0 : index
    %1 = vector.load %arg2[%c0_1, %c0_2] : memref<8x8xf32, #tpu.memory_space<vmem>>, vector<8x8xf32>
    %c0_i32 = arith.constant 0 : i32
    %2 = vector.broadcast %c0_i32 : i32 to vector<8x8xi32>
    %3 = arith.cmpi sge, %0, %2 : vector<8x8xi32>
    %c1024_i32 = arith.constant 1024 : i32
    %4 = vector.broadcast %c1024_i32 : i32 to vector<8x8xi32>
    %5 = arith.cmpi slt, %0, %4 : vector<8x8xi32>
    %6 = arith.andi %3, %5 : vector<8x8xi1>
    %7 = arith.extui %6 : vector<8x8xi1> to vector<8x8xi32>
    %8 = arith.sitofp %7 : vector<8x8xi32> to vector<8x8xf32>
    %9 = arith.mulf %1, %8 : vector<8x8xf32>
    %cst = arith.constant dense<0.000000e+00> : vector<8xf32>
    %10 = vector.multi_reduction <add>, %9, %cst [1] : vector<8x8xf32> to vector<8xf32>
    %11 = vector.shape_cast %10 : vector<8xf32> to vector<8x1xf32>
    %cst_3 = arith.constant 1.000000e+00 : f32
    %12 = vector.broadcast %cst_3 : f32 to vector<8x1xf32>
    %13 = arith.maximumf %11, %12 : vector<8x1xf32>
    %14 = vector.broadcast %13 : vector<8x1xf32> to vector<8x8xf32>
    %15 = arith.divf %9, %14 : vector<8x8xf32>
    %16 = tpu.iota {dimensions = array<i32: 1>} : vector<8x128xi32>
    %cst_4 = arith.constant 0.000000e+00 : f32
    %17 = vector.broadcast %cst_4 : f32 to vector<8x768xf32>
    %cst_5 = arith.constant 0.000000e+00 : f32
    %18 = vector.broadcast %cst_5 : f32 to vector<8x128xf32>
    %19 = vector.extract_strided_slice %0 {offsets = [0, 0], sizes = [8, 1], strides = [1, 1]} : vector<8x8xi32> to vector<8x1xi32>
    %20 = vector.extract_strided_slice %15 {offsets = [0, 0], sizes = [8, 1], strides = [1, 1]} : vector<8x8xf32> to vector<8x1xf32>
    %c0_i32_6 = arith.constant 0 : i32
    %21 = vector.broadcast %c0_i32_6 : i32 to vector<8x1xi32>
    %22 = arith.subi %19, %21 : vector<8x1xi32>
    %23 = vector.broadcast %22 : vector<8x1xi32> to vector<8x128xi32>
    %24 = arith.cmpi eq, %16, %23 : vector<8x128xi32>
    %25 = vector.broadcast %20 : vector<8x1xf32> to vector<8x128xf32>
    %26 = arith.addf %18, %25 : vector<8x128xf32>
    %27 = arith.select %24, %26, %18 : vector<8x128xi1>, vector<8x128xf32>
    %28 = vector.extract_strided_slice %0 {offsets = [0, 1], sizes = [8, 1], strides = [1, 1]} : vector<8x8xi32> to vector<8x1xi32>
    %29 = vector.extract_strided_slice %15 {offsets = [0, 1], sizes = [8, 1], strides = [1, 1]} : vector<8x8xf32> to vector<8x1xf32>
    %c0_i32_7 = arith.constant 0 : i32
    %30 = vector.broadcast %c0_i32_7 : i32 to vector<8x1xi32>
    %31 = arith.subi %28, %30 : vector<8x1xi32>
    %32 = vector.broadcast %31 : vector<8x1xi32> to vector<8x128xi32>
    %33 = arith.cmpi eq, %16, %32 : vector<8x128xi32>
    %34 = vector.broadcast %29 : vector<8x1xf32> to vector<8x128xf32>
    %35 = arith.addf %27, %34 : vector<8x128xf32>
    %36 = arith.select %33, %35, %27 : vector<8x128xi1>, vector<8x128xf32>
    %37 = vector.extract_strided_slice %0 {offsets = [0, 2], sizes = [8, 1], strides = [1, 1]} : vector<8x8xi32> to vector<8x1xi32>
    %38 = vector.extract_strided_slice %15 {offsets = [0, 2], sizes = [8, 1], strides = [1, 1]} : vector<8x8xf32> to vector<8x1xf32>
    %c0_i32_8 = arith.constant 0 : i32
    %39 = vector.broadcast %c0_i32_8 : i32 to vector<8x1xi32>
    %40 = arith.subi %37, %39 : vector<8x1xi32>
    %41 = vector.broadcast %40 : vector<8x1xi32> to vector<8x128xi32>
    %42 = arith.cmpi eq, %16, %41 : vector<8x128xi32>
    %43 = vector.broadcast %38 : vector<8x1xf32> to vector<8x128xf32>
    %44 = arith.addf %36, %43 : vector<8x128xf32>
    %45 = arith.select %42, %44, %36 : vector<8x128xi1>, vector<8x128xf32>
    %46 = vector.extract_strided_slice %0 {offsets = [0, 3], sizes = [8, 1], strides = [1, 1]} : vector<8x8xi32> to vector<8x1xi32>
    %47 = vector.extract_strided_slice %15 {offsets = [0, 3], sizes = [8, 1], strides = [1, 1]} : vector<8x8xf32> to vector<8x1xf32>
    %c0_i32_9 = arith.constant 0 : i32
    %48 = vector.broadcast %c0_i32_9 : i32 to vector<8x1xi32>
    %49 = arith.subi %46, %48 : vector<8x1xi32>
    %50 = vector.broadcast %49 : vector<8x1xi32> to vector<8x128xi32>
    %51 = arith.cmpi eq, %16, %50 : vector<8x128xi32>
    %52 = vector.broadcast %47 : vector<8x1xf32> to vector<8x128xf32>
    %53 = arith.addf %45, %52 : vector<8x128xf32>
    %54 = arith.select %51, %53, %45 : vector<8x128xi1>, vector<8x128xf32>
    %55 = vector.extract_strided_slice %0 {offsets = [0, 4], sizes = [8, 1], strides = [1, 1]} : vector<8x8xi32> to vector<8x1xi32>
    %56 = vector.extract_strided_slice %15 {offsets = [0, 4], sizes = [8, 1], strides = [1, 1]} : vector<8x8xf32> to vector<8x1xf32>
    %c0_i32_10 = arith.constant 0 : i32
    %57 = vector.broadcast %c0_i32_10 : i32 to vector<8x1xi32>
    %58 = arith.subi %55, %57 : vector<8x1xi32>
    %59 = vector.broadcast %58 : vector<8x1xi32> to vector<8x128xi32>
    %60 = arith.cmpi eq, %16, %59 : vector<8x128xi32>
    %61 = vector.broadcast %56 : vector<8x1xf32> to vector<8x128xf32>
    %62 = arith.addf %54, %61 : vector<8x128xf32>
    %63 = arith.select %60, %62, %54 : vector<8x128xi1>, vector<8x128xf32>
    %64 = vector.extract_strided_slice %0 {offsets = [0, 5], sizes = [8, 1], strides = [1, 1]} : vector<8x8xi32> to vector<8x1xi32>
    %65 = vector.extract_strided_slice %15 {offsets = [0, 5], sizes = [8, 1], strides = [1, 1]} : vector<8x8xf32> to vector<8x1xf32>
    %c0_i32_11 = arith.constant 0 : i32
    %66 = vector.broadcast %c0_i32_11 : i32 to vector<8x1xi32>
    %67 = arith.subi %64, %66 : vector<8x1xi32>
    %68 = vector.broadcast %67 : vector<8x1xi32> to vector<8x128xi32>
    %69 = arith.cmpi eq, %16, %68 : vector<8x128xi32>
    %70 = vector.broadcast %65 : vector<8x1xf32> to vector<8x128xf32>
    %71 = arith.addf %63, %70 : vector<8x128xf32>
    %72 = arith.select %69, %71, %63 : vector<8x128xi1>, vector<8x128xf32>
    %73 = vector.extract_strided_slice %0 {offsets = [0, 6], sizes = [8, 1], strides = [1, 1]} : vector<8x8xi32> to vector<8x1xi32>
    %74 = vector.extract_strided_slice %15 {offsets = [0, 6], sizes = [8, 1], strides = [1, 1]} : vector<8x8xf32> to vector<8x1xf32>
    %c0_i32_12 = arith.constant 0 : i32
    %75 = vector.broadcast %c0_i32_12 : i32 to vector<8x1xi32>
    %76 = arith.subi %73, %75 : vector<8x1xi32>
    %77 = vector.broadcast %76 : vector<8x1xi32> to vector<8x128xi32>
    %78 = arith.cmpi eq, %16, %77 : vector<8x128xi32>
    %79 = vector.broadcast %74 : vector<8x1xf32> to vector<8x128xf32>
    %80 = arith.addf %72, %79 : vector<8x128xf32>
    %81 = arith.select %78, %80, %72 : vector<8x128xi1>, vector<8x128xf32>
    %82 = vector.extract_strided_slice %0 {offsets = [0, 7], sizes = [8, 1], strides = [1, 1]} : vector<8x8xi32> to vector<8x1xi32>
    %83 = vector.extract_strided_slice %15 {offsets = [0, 7], sizes = [8, 1], strides = [1, 1]} : vector<8x8xf32> to vector<8x1xf32>
    %c0_i32_13 = arith.constant 0 : i32
    %84 = vector.broadcast %c0_i32_13 : i32 to vector<8x1xi32>
    %85 = arith.subi %82, %84 : vector<8x1xi32>
    %86 = vector.broadcast %85 : vector<8x1xi32> to vector<8x128xi32>
    %87 = arith.cmpi eq, %16, %86 : vector<8x128xi32>
    %88 = vector.broadcast %83 : vector<8x1xf32> to vector<8x128xf32>
    %89 = arith.addf %81, %88 : vector<8x128xf32>
    %90 = arith.select %87, %89, %81 : vector<8x128xi1>, vector<8x128xf32>
    %91 = arith.truncf %90 : vector<8x128xf32> to vector<8x128xbf16>
    %c0_14 = arith.constant 0 : index
    %c0_15 = arith.constant 0 : index
    %92 = vector.load %arg3[%c0_14, %c0_15] : memref<1024x768xbf16, #tpu.memory_space<vmem>>, vector<128x768xbf16>
    %cst_16 = arith.constant dense<0.000000e+00> : vector<8x768xf32>
    %93 = tpu.matmul %91, %92, %cst_16 {dimension_numbers = #tpu.dot_dimension_numbers<[1], [0], [0], [1], [0, 0, 1, 1], [], []>} : vector<8x128xbf16>, vector<128x768xbf16>, vector<8x768xf32> -> vector<8x768xf32>
    %94 = arith.addf %17, %93 : vector<8x768xf32>
    %cst_17 = arith.constant 0.000000e+00 : f32
    %95 = vector.broadcast %cst_17 : f32 to vector<8x128xf32>
    %96 = vector.extract_strided_slice %0 {offsets = [0, 0], sizes = [8, 1], strides = [1, 1]} : vector<8x8xi32> to vector<8x1xi32>
    %97 = vector.extract_strided_slice %15 {offsets = [0, 0], sizes = [8, 1], strides = [1, 1]} : vector<8x8xf32> to vector<8x1xf32>
    %c128_i32 = arith.constant 128 : i32
    %98 = vector.broadcast %c128_i32 : i32 to vector<8x1xi32>
    %99 = arith.subi %96, %98 : vector<8x1xi32>
    %100 = vector.broadcast %99 : vector<8x1xi32> to vector<8x128xi32>
    %101 = arith.cmpi eq, %16, %100 : vector<8x128xi32>
    %102 = vector.broadcast %97 : vector<8x1xf32> to vector<8x128xf32>
    %103 = arith.addf %95, %102 : vector<8x128xf32>
    %104 = arith.select %101, %103, %95 : vector<8x128xi1>, vector<8x128xf32>
    %105 = vector.extract_strided_slice %0 {offsets = [0, 1], sizes = [8, 1], strides = [1, 1]} : vector<8x8xi32> to vector<8x1xi32>
    %106 = vector.extract_strided_slice %15 {offsets = [0, 1], sizes = [8, 1], strides = [1, 1]} : vector<8x8xf32> to vector<8x1xf32>
    %c128_i32_18 = arith.constant 128 : i32
    %107 = vector.broadcast %c128_i32_18 : i32 to vector<8x1xi32>
    %108 = arith.subi %105, %107 : vector<8x1xi32>
    %109 = vector.broadcast %108 : vector<8x1xi32> to vector<8x128xi32>
    %110 = arith.cmpi eq, %16, %109 : vector<8x128xi32>
    %111 = vector.broadcast %106 : vector<8x1xf32> to vector<8x128xf32>
    %112 = arith.addf %104, %111 : vector<8x128xf32>
    %113 = arith.select %110, %112, %104 : vector<8x128xi1>, vector<8x128xf32>
    %114 = vector.extract_strided_slice %0 {offsets = [0, 2], sizes = [8, 1], strides = [1, 1]} : vector<8x8xi32> to vector<8x1xi32>
    %115 = vector.extract_strided_slice %15 {offsets = [0, 2], sizes = [8, 1], strides = [1, 1]} : vector<8x8xf32> to vector<8x1xf32>
    %c128_i32_19 = arith.constant 128 : i32
    %116 = vector.broadcast %c128_i32_19 : i32 to vector<8x1xi32>
    %117 = arith.subi %114, %116 : vector<8x1xi32>
    %118 = vector.broadcast %117 : vector<8x1xi32> to vector<8x128xi32>
    %119 = arith.cmpi eq, %16, %118 : vector<8x128xi32>
    %120 = vector.broadcast %115 : vector<8x1xf32> to vector<8x128xf32>
    %121 = arith.addf %113, %120 : vector<8x128xf32>
    %122 = arith.select %119, %121, %113 : vector<8x128xi1>, vector<8x128xf32>
    %123 = vector.extract_strided_slice %0 {offsets = [0, 3], sizes = [8, 1], strides = [1, 1]} : vector<8x8xi32> to vector<8x1xi32>
    %124 = vector.extract_strided_slice %15 {offsets = [0, 3], sizes = [8, 1], strides = [1, 1]} : vector<8x8xf32> to vector<8x1xf32>
    %c128_i32_20 = arith.constant 128 : i32
    %125 = vector.broadcast %c128_i32_20 : i32 to vector<8x1xi32>
    %126 = arith.subi %123, %125 : vector<8x1xi32>
    %127 = vector.broadcast %126 : vector<8x1xi32> to vector<8x128xi32>
    %128 = arith.cmpi eq, %16, %127 : vector<8x128xi32>
    %129 = vector.broadcast %124 : vector<8x1xf32> to vector<8x128xf32>
    %130 = arith.addf %122, %129 : vector<8x128xf32>
    %131 = arith.select %128, %130, %122 : vector<8x128xi1>, vector<8x128xf32>
    %132 = vector.extract_strided_slice %0 {offsets = [0, 4], sizes = [8, 1], strides = [1, 1]} : vector<8x8xi32> to vector<8x1xi32>
    %133 = vector.extract_strided_slice %15 {offsets = [0, 4], sizes = [8, 1], strides = [1, 1]} : vector<8x8xf32> to vector<8x1xf32>
    %c128_i32_21 = arith.constant 128 : i32
    %134 = vector.broadcast %c128_i32_21 : i32 to vector<8x1xi32>
    %135 = arith.subi %132, %134 : vector<8x1xi32>
    %136 = vector.broadcast %135 : vector<8x1xi32> to vector<8x128xi32>
    %137 = arith.cmpi eq, %16, %136 : vector<8x128xi32>
    %138 = vector.broadcast %133 : vector<8x1xf32> to vector<8x128xf32>
    %139 = arith.addf %131, %138 : vector<8x128xf32>
    %140 = arith.select %137, %139, %131 : vector<8x128xi1>, vector<8x128xf32>
    %141 = vector.extract_strided_slice %0 {offsets = [0, 5], sizes = [8, 1], strides = [1, 1]} : vector<8x8xi32> to vector<8x1xi32>
    %142 = vector.extract_strided_slice %15 {offsets = [0, 5], sizes = [8, 1], strides = [1, 1]} : vector<8x8xf32> to vector<8x1xf32>
    %c128_i32_22 = arith.constant 128 : i32
    %143 = vector.broadcast %c128_i32_22 : i32 to vector<8x1xi32>
    %144 = arith.subi %141, %143 : vector<8x1xi32>
    %145 = vector.broadcast %144 : vector<8x1xi32> to vector<8x128xi32>
    %146 = arith.cmpi eq, %16, %145 : vector<8x128xi32>
    %147 = vector.broadcast %142 : vector<8x1xf32> to vector<8x128xf32>
    %148 = arith.addf %140, %147 : vector<8x128xf32>
    %149 = arith.select %146, %148, %140 : vector<8x128xi1>, vector<8x128xf32>
    %150 = vector.extract_strided_slice %0 {offsets = [0, 6], sizes = [8, 1], strides = [1, 1]} : vector<8x8xi32> to vector<8x1xi32>
    %151 = vector.extract_strided_slice %15 {offsets = [0, 6], sizes = [8, 1], strides = [1, 1]} : vector<8x8xf32> to vector<8x1xf32>
    %c128_i32_23 = arith.constant 128 : i32
    %152 = vector.broadcast %c128_i32_23 : i32 to vector<8x1xi32>
    %153 = arith.subi %150, %152 : vector<8x1xi32>
    %154 = vector.broadcast %153 : vector<8x1xi32> to vector<8x128xi32>
    %155 = arith.cmpi eq, %16, %154 : vector<8x128xi32>
    %156 = vector.broadcast %151 : vector<8x1xf32> to vector<8x128xf32>
    %157 = arith.addf %149, %156 : vector<8x128xf32>
    %158 = arith.select %155, %157, %149 : vector<8x128xi1>, vector<8x128xf32>
    %159 = vector.extract_strided_slice %0 {offsets = [0, 7], sizes = [8, 1], strides = [1, 1]} : vector<8x8xi32> to vector<8x1xi32>
    %160 = vector.extract_strided_slice %15 {offsets = [0, 7], sizes = [8, 1], strides = [1, 1]} : vector<8x8xf32> to vector<8x1xf32>
    %c128_i32_24 = arith.constant 128 : i32
    %161 = vector.broadcast %c128_i32_24 : i32 to vector<8x1xi32>
    %162 = arith.subi %159, %161 : vector<8x1xi32>
    %163 = vector.broadcast %162 : vector<8x1xi32> to vector<8x128xi32>
    %164 = arith.cmpi eq, %16, %163 : vector<8x128xi32>
    %165 = vector.broadcast %160 : vector<8x1xf32> to vector<8x128xf32>
    %166 = arith.addf %158, %165 : vector<8x128xf32>
    %167 = arith.select %164, %166, %158 : vector<8x128xi1>, vector<8x128xf32>
    %168 = arith.truncf %167 : vector<8x128xf32> to vector<8x128xbf16>
    %c128 = arith.constant 128 : index
    %c0_25 = arith.constant 0 : index
    %169 = vector.load %arg3[%c128, %c0_25] : memref<1024x768xbf16, #tpu.memory_space<vmem>>, vector<128x768xbf16>
    %cst_26 = arith.constant dense<0.000000e+00> : vector<8x768xf32>
    %170 = tpu.matmul %168, %169, %cst_26 {dimension_numbers = #tpu.dot_dimension_numbers<[1], [0], [0], [1], [0, 0, 1, 1], [], []>} : vector<8x128xbf16>, vector<128x768xbf16>, vector<8x768xf32> -> vector<8x768xf32>
    %171 = arith.addf %94, %170 : vector<8x768xf32>
    %cst_27 = arith.constant 0.000000e+00 : f32
    %172 = vector.broadcast %cst_27 : f32 to vector<8x128xf32>
    %173 = vector.extract_strided_slice %0 {offsets = [0, 0], sizes = [8, 1], strides = [1, 1]} : vector<8x8xi32> to vector<8x1xi32>
    %174 = vector.extract_strided_slice %15 {offsets = [0, 0], sizes = [8, 1], strides = [1, 1]} : vector<8x8xf32> to vector<8x1xf32>
    %c256_i32 = arith.constant 256 : i32
    %175 = vector.broadcast %c256_i32 : i32 to vector<8x1xi32>
    %176 = arith.subi %173, %175 : vector<8x1xi32>
    %177 = vector.broadcast %176 : vector<8x1xi32> to vector<8x128xi32>
    %178 = arith.cmpi eq, %16, %177 : vector<8x128xi32>
    %179 = vector.broadcast %174 : vector<8x1xf32> to vector<8x128xf32>
    %180 = arith.addf %172, %179 : vector<8x128xf32>
    %181 = arith.select %178, %180, %172 : vector<8x128xi1>, vector<8x128xf32>
    %182 = vector.extract_strided_slice %0 {offsets = [0, 1], sizes = [8, 1], strides = [1, 1]} : vector<8x8xi32> to vector<8x1xi32>
    %183 = vector.extract_strided_slice %15 {offsets = [0, 1], sizes = [8, 1], strides = [1, 1]} : vector<8x8xf32> to vector<8x1xf32>
    %c256_i32_28 = arith.constant 256 : i32
    %184 = vector.broadcast %c256_i32_28 : i32 to vector<8x1xi32>
    %185 = arith.subi %182, %184 : vector<8x1xi32>
    %186 = vector.broadcast %185 : vector<8x1xi32> to vector<8x128xi32>
    %187 = arith.cmpi eq, %16, %186 : vector<8x128xi32>
    %188 = vector.broadcast %183 : vector<8x1xf32> to vector<8x128xf32>
    %189 = arith.addf %181, %188 : vector<8x128xf32>
    %190 = arith.select %187, %189, %181 : vector<8x128xi1>, vector<8x128xf32>
    %191 = vector.extract_strided_slice %0 {offsets = [0, 2], sizes = [8, 1], strides = [1, 1]} : vector<8x8xi32> to vector<8x1xi32>
    %192 = vector.extract_strided_slice %15 {offsets = [0, 2], sizes = [8, 1], strides = [1, 1]} : vector<8x8xf32> to vector<8x1xf32>
    %c256_i32_29 = arith.constant 256 : i32
    %193 = vector.broadcast %c256_i32_29 : i32 to vector<8x1xi32>
    %194 = arith.subi %191, %193 : vector<8x1xi32>
    %195 = vector.broadcast %194 : vector<8x1xi32> to vector<8x128xi32>
    %196 = arith.cmpi eq, %16, %195 : vector<8x128xi32>
    %197 = vector.broadcast %192 : vector<8x1xf32> to vector<8x128xf32>
    %198 = arith.addf %190, %197 : vector<8x128xf32>
    %199 = arith.select %196, %198, %190 : vector<8x128xi1>, vector<8x128xf32>
    %200 = vector.extract_strided_slice %0 {offsets = [0, 3], sizes = [8, 1], strides = [1, 1]} : vector<8x8xi32> to vector<8x1xi32>
    %201 = vector.extract_strided_slice %15 {offsets = [0, 3], sizes = [8, 1], strides = [1, 1]} : vector<8x8xf32> to vector<8x1xf32>
    %c256_i32_30 = arith.constant 256 : i32
    %202 = vector.broadcast %c256_i32_30 : i32 to vector<8x1xi32>
    %203 = arith.subi %200, %202 : vector<8x1xi32>
    %204 = vector.broadcast %203 : vector<8x1xi32> to vector<8x128xi32>
    %205 = arith.cmpi eq, %16, %204 : vector<8x128xi32>
    %206 = vector.broadcast %201 : vector<8x1xf32> to vector<8x128xf32>
    %207 = arith.addf %199, %206 : vector<8x128xf32>
    %208 = arith.select %205, %207, %199 : vector<8x128xi1>, vector<8x128xf32>
    %209 = vector.extract_strided_slice %0 {offsets = [0, 4], sizes = [8, 1], strides = [1, 1]} : vector<8x8xi32> to vector<8x1xi32>
    %210 = vector.extract_strided_slice %15 {offsets = [0, 4], sizes = [8, 1], strides = [1, 1]} : vector<8x8xf32> to vector<8x1xf32>
    %c256_i32_31 = arith.constant 256 : i32
    %211 = vector.broadcast %c256_i32_31 : i32 to vector<8x1xi32>
    %212 = arith.subi %209, %211 : vector<8x1xi32>
    %213 = vector.broadcast %212 : vector<8x1xi32> to vector<8x128xi32>
    %214 = arith.cmpi eq, %16, %213 : vector<8x128xi32>
    %215 = vector.broadcast %210 : vector<8x1xf32> to vector<8x128xf32>
    %216 = arith.addf %208, %215 : vector<8x128xf32>
    %217 = arith.select %214, %216, %208 : vector<8x128xi1>, vector<8x128xf32>
    %218 = vector.extract_strided_slice %0 {offsets = [0, 5], sizes = [8, 1], strides = [1, 1]} : vector<8x8xi32> to vector<8x1xi32>
    %219 = vector.extract_strided_slice %15 {offsets = [0, 5], sizes = [8, 1], strides = [1, 1]} : vector<8x8xf32> to vector<8x1xf32>
    %c256_i32_32 = arith.constant 256 : i32
    %220 = vector.broadcast %c256_i32_32 : i32 to vector<8x1xi32>
    %221 = arith.subi %218, %220 : vector<8x1xi32>
    %222 = vector.broadcast %221 : vector<8x1xi32> to vector<8x128xi32>
    %223 = arith.cmpi eq, %16, %222 : vector<8x128xi32>
    %224 = vector.broadcast %219 : vector<8x1xf32> to vector<8x128xf32>
    %225 = arith.addf %217, %224 : vector<8x128xf32>
    %226 = arith.select %223, %225, %217 : vector<8x128xi1>, vector<8x128xf32>
    %227 = vector.extract_strided_slice %0 {offsets = [0, 6], sizes = [8, 1], strides = [1, 1]} : vector<8x8xi32> to vector<8x1xi32>
    %228 = vector.extract_strided_slice %15 {offsets = [0, 6], sizes = [8, 1], strides = [1, 1]} : vector<8x8xf32> to vector<8x1xf32>
    %c256_i32_33 = arith.constant 256 : i32
    %229 = vector.broadcast %c256_i32_33 : i32 to vector<8x1xi32>
    %230 = arith.subi %227, %229 : vector<8x1xi32>
    %231 = vector.broadcast %230 : vector<8x1xi32> to vector<8x128xi32>
    %232 = arith.cmpi eq, %16, %231 : vector<8x128xi32>
    %233 = vector.broadcast %228 : vector<8x1xf32> to vector<8x128xf32>
    %234 = arith.addf %226, %233 : vector<8x128xf32>
    %235 = arith.select %232, %234, %226 : vector<8x128xi1>, vector<8x128xf32>
    %236 = vector.extract_strided_slice %0 {offsets = [0, 7], sizes = [8, 1], strides = [1, 1]} : vector<8x8xi32> to vector<8x1xi32>
    %237 = vector.extract_strided_slice %15 {offsets = [0, 7], sizes = [8, 1], strides = [1, 1]} : vector<8x8xf32> to vector<8x1xf32>
    %c256_i32_34 = arith.constant 256 : i32
    %238 = vector.broadcast %c256_i32_34 : i32 to vector<8x1xi32>
    %239 = arith.subi %236, %238 : vector<8x1xi32>
    %240 = vector.broadcast %239 : vector<8x1xi32> to vector<8x128xi32>
    %241 = arith.cmpi eq, %16, %240 : vector<8x128xi32>
    %242 = vector.broadcast %237 : vector<8x1xf32> to vector<8x128xf32>
    %243 = arith.addf %235, %242 : vector<8x128xf32>
    %244 = arith.select %241, %243, %235 : vector<8x128xi1>, vector<8x128xf32>
    %245 = arith.truncf %244 : vector<8x128xf32> to vector<8x128xbf16>
    %c256 = arith.constant 256 : index
    %c0_35 = arith.constant 0 : index
    %246 = vector.load %arg3[%c256, %c0_35] : memref<1024x768xbf16, #tpu.memory_space<vmem>>, vector<128x768xbf16>
    %cst_36 = arith.constant dense<0.000000e+00> : vector<8x768xf32>
    %247 = tpu.matmul %245, %246, %cst_36 {dimension_numbers = #tpu.dot_dimension_numbers<[1], [0], [0], [1], [0, 0, 1, 1], [], []>} : vector<8x128xbf16>, vector<128x768xbf16>, vector<8x768xf32> -> vector<8x768xf32>
    %248 = arith.addf %171, %247 : vector<8x768xf32>
    %cst_37 = arith.constant 0.000000e+00 : f32
    %249 = vector.broadcast %cst_37 : f32 to vector<8x128xf32>
    %250 = vector.extract_strided_slice %0 {offsets = [0, 0], sizes = [8, 1], strides = [1, 1]} : vector<8x8xi32> to vector<8x1xi32>
    %251 = vector.extract_strided_slice %15 {offsets = [0, 0], sizes = [8, 1], strides = [1, 1]} : vector<8x8xf32> to vector<8x1xf32>
    %c384_i32 = arith.constant 384 : i32
    %252 = vector.broadcast %c384_i32 : i32 to vector<8x1xi32>
    %253 = arith.subi %250, %252 : vector<8x1xi32>
    %254 = vector.broadcast %253 : vector<8x1xi32> to vector<8x128xi32>
    %255 = arith.cmpi eq, %16, %254 : vector<8x128xi32>
    %256 = vector.broadcast %251 : vector<8x1xf32> to vector<8x128xf32>
    %257 = arith.addf %249, %256 : vector<8x128xf32>
    %258 = arith.select %255, %257, %249 : vector<8x128xi1>, vector<8x128xf32>
    %259 = vector.extract_strided_slice %0 {offsets = [0, 1], sizes = [8, 1], strides = [1, 1]} : vector<8x8xi32> to vector<8x1xi32>
    %260 = vector.extract_strided_slice %15 {offsets = [0, 1], sizes = [8, 1], strides = [1, 1]} : vector<8x8xf32> to vector<8x1xf32>
    %c384_i32_38 = arith.constant 384 : i32
    %261 = vector.broadcast %c384_i32_38 : i32 to vector<8x1xi32>
    %262 = arith.subi %259, %261 : vector<8x1xi32>
    %263 = vector.broadcast %262 : vector<8x1xi32> to vector<8x128xi32>
    %264 = arith.cmpi eq, %16, %263 : vector<8x128xi32>
    %265 = vector.broadcast %260 : vector<8x1xf32> to vector<8x128xf32>
    %266 = arith.addf %258, %265 : vector<8x128xf32>
    %267 = arith.select %264, %266, %258 : vector<8x128xi1>, vector<8x128xf32>
    %268 = vector.extract_strided_slice %0 {offsets = [0, 2], sizes = [8, 1], strides = [1, 1]} : vector<8x8xi32> to vector<8x1xi32>
    %269 = vector.extract_strided_slice %15 {offsets = [0, 2], sizes = [8, 1], strides = [1, 1]} : vector<8x8xf32> to vector<8x1xf32>
    %c384_i32_39 = arith.constant 384 : i32
    %270 = vector.broadcast %c384_i32_39 : i32 to vector<8x1xi32>
    %271 = arith.subi %268, %270 : vector<8x1xi32>
    %272 = vector.broadcast %271 : vector<8x1xi32> to vector<8x128xi32>
    %273 = arith.cmpi eq, %16, %272 : vector<8x128xi32>
    %274 = vector.broadcast %269 : vector<8x1xf32> to vector<8x128xf32>
    %275 = arith.addf %267, %274 : vector<8x128xf32>
    %276 = arith.select %273, %275, %267 : vector<8x128xi1>, vector<8x128xf32>
    %277 = vector.extract_strided_slice %0 {offsets = [0, 3], sizes = [8, 1], strides = [1, 1]} : vector<8x8xi32> to vector<8x1xi32>
    %278 = vector.extract_strided_slice %15 {offsets = [0, 3], sizes = [8, 1], strides = [1, 1]} : vector<8x8xf32> to vector<8x1xf32>
    %c384_i32_40 = arith.constant 384 : i32
    %279 = vector.broadcast %c384_i32_40 : i32 to vector<8x1xi32>
    %280 = arith.subi %277, %279 : vector<8x1xi32>
    %281 = vector.broadcast %280 : vector<8x1xi32> to vector<8x128xi32>
    %282 = arith.cmpi eq, %16, %281 : vector<8x128xi32>
    %283 = vector.broadcast %278 : vector<8x1xf32> to vector<8x128xf32>
    %284 = arith.addf %276, %283 : vector<8x128xf32>
    %285 = arith.select %282, %284, %276 : vector<8x128xi1>, vector<8x128xf32>
    %286 = vector.extract_strided_slice %0 {offsets = [0, 4], sizes = [8, 1], strides = [1, 1]} : vector<8x8xi32> to vector<8x1xi32>
    %287 = vector.extract_strided_slice %15 {offsets = [0, 4], sizes = [8, 1], strides = [1, 1]} : vector<8x8xf32> to vector<8x1xf32>
    %c384_i32_41 = arith.constant 384 : i32
    %288 = vector.broadcast %c384_i32_41 : i32 to vector<8x1xi32>
    %289 = arith.subi %286, %288 : vector<8x1xi32>
    %290 = vector.broadcast %289 : vector<8x1xi32> to vector<8x128xi32>
    %291 = arith.cmpi eq, %16, %290 : vector<8x128xi32>
    %292 = vector.broadcast %287 : vector<8x1xf32> to vector<8x128xf32>
    %293 = arith.addf %285, %292 : vector<8x128xf32>
    %294 = arith.select %291, %293, %285 : vector<8x128xi1>, vector<8x128xf32>
    %295 = vector.extract_strided_slice %0 {offsets = [0, 5], sizes = [8, 1], strides = [1, 1]} : vector<8x8xi32> to vector<8x1xi32>
    %296 = vector.extract_strided_slice %15 {offsets = [0, 5], sizes = [8, 1], strides = [1, 1]} : vector<8x8xf32> to vector<8x1xf32>
    %c384_i32_42 = arith.constant 384 : i32
    %297 = vector.broadcast %c384_i32_42 : i32 to vector<8x1xi32>
    %298 = arith.subi %295, %297 : vector<8x1xi32>
    %299 = vector.broadcast %298 : vector<8x1xi32> to vector<8x128xi32>
    %300 = arith.cmpi eq, %16, %299 : vector<8x128xi32>
    %301 = vector.broadcast %296 : vector<8x1xf32> to vector<8x128xf32>
    %302 = arith.addf %294, %301 : vector<8x128xf32>
    %303 = arith.select %300, %302, %294 : vector<8x128xi1>, vector<8x128xf32>
    %304 = vector.extract_strided_slice %0 {offsets = [0, 6], sizes = [8, 1], strides = [1, 1]} : vector<8x8xi32> to vector<8x1xi32>
    %305 = vector.extract_strided_slice %15 {offsets = [0, 6], sizes = [8, 1], strides = [1, 1]} : vector<8x8xf32> to vector<8x1xf32>
    %c384_i32_43 = arith.constant 384 : i32
    %306 = vector.broadcast %c384_i32_43 : i32 to vector<8x1xi32>
    %307 = arith.subi %304, %306 : vector<8x1xi32>
    %308 = vector.broadcast %307 : vector<8x1xi32> to vector<8x128xi32>
    %309 = arith.cmpi eq, %16, %308 : vector<8x128xi32>
    %310 = vector.broadcast %305 : vector<8x1xf32> to vector<8x128xf32>
    %311 = arith.addf %303, %310 : vector<8x128xf32>
    %312 = arith.select %309, %311, %303 : vector<8x128xi1>, vector<8x128xf32>
    %313 = vector.extract_strided_slice %0 {offsets = [0, 7], sizes = [8, 1], strides = [1, 1]} : vector<8x8xi32> to vector<8x1xi32>
    %314 = vector.extract_strided_slice %15 {offsets = [0, 7], sizes = [8, 1], strides = [1, 1]} : vector<8x8xf32> to vector<8x1xf32>
    %c384_i32_44 = arith.constant 384 : i32
    %315 = vector.broadcast %c384_i32_44 : i32 to vector<8x1xi32>
    %316 = arith.subi %313, %315 : vector<8x1xi32>
    %317 = vector.broadcast %316 : vector<8x1xi32> to vector<8x128xi32>
    %318 = arith.cmpi eq, %16, %317 : vector<8x128xi32>
    %319 = vector.broadcast %314 : vector<8x1xf32> to vector<8x128xf32>
    %320 = arith.addf %312, %319 : vector<8x128xf32>
    %321 = arith.select %318, %320, %312 : vector<8x128xi1>, vector<8x128xf32>
    %322 = arith.truncf %321 : vector<8x128xf32> to vector<8x128xbf16>
    %c384 = arith.constant 384 : index
    %c0_45 = arith.constant 0 : index
    %323 = vector.load %arg3[%c384, %c0_45] : memref<1024x768xbf16, #tpu.memory_space<vmem>>, vector<128x768xbf16>
    %cst_46 = arith.constant dense<0.000000e+00> : vector<8x768xf32>
    %324 = tpu.matmul %322, %323, %cst_46 {dimension_numbers = #tpu.dot_dimension_numbers<[1], [0], [0], [1], [0, 0, 1, 1], [], []>} : vector<8x128xbf16>, vector<128x768xbf16>, vector<8x768xf32> -> vector<8x768xf32>
    %325 = arith.addf %248, %324 : vector<8x768xf32>
    %cst_47 = arith.constant 0.000000e+00 : f32
    %326 = vector.broadcast %cst_47 : f32 to vector<8x128xf32>
    %327 = vector.extract_strided_slice %0 {offsets = [0, 0], sizes = [8, 1], strides = [1, 1]} : vector<8x8xi32> to vector<8x1xi32>
    %328 = vector.extract_strided_slice %15 {offsets = [0, 0], sizes = [8, 1], strides = [1, 1]} : vector<8x8xf32> to vector<8x1xf32>
    %c512_i32 = arith.constant 512 : i32
    %329 = vector.broadcast %c512_i32 : i32 to vector<8x1xi32>
    %330 = arith.subi %327, %329 : vector<8x1xi32>
    %331 = vector.broadcast %330 : vector<8x1xi32> to vector<8x128xi32>
    %332 = arith.cmpi eq, %16, %331 : vector<8x128xi32>
    %333 = vector.broadcast %328 : vector<8x1xf32> to vector<8x128xf32>
    %334 = arith.addf %326, %333 : vector<8x128xf32>
    %335 = arith.select %332, %334, %326 : vector<8x128xi1>, vector<8x128xf32>
    %336 = vector.extract_strided_slice %0 {offsets = [0, 1], sizes = [8, 1], strides = [1, 1]} : vector<8x8xi32> to vector<8x1xi32>
    %337 = vector.extract_strided_slice %15 {offsets = [0, 1], sizes = [8, 1], strides = [1, 1]} : vector<8x8xf32> to vector<8x1xf32>
    %c512_i32_48 = arith.constant 512 : i32
    %338 = vector.broadcast %c512_i32_48 : i32 to vector<8x1xi32>
    %339 = arith.subi %336, %338 : vector<8x1xi32>
    %340 = vector.broadcast %339 : vector<8x1xi32> to vector<8x128xi32>
    %341 = arith.cmpi eq, %16, %340 : vector<8x128xi32>
    %342 = vector.broadcast %337 : vector<8x1xf32> to vector<8x128xf32>
    %343 = arith.addf %335, %342 : vector<8x128xf32>
    %344 = arith.select %341, %343, %335 : vector<8x128xi1>, vector<8x128xf32>
    %345 = vector.extract_strided_slice %0 {offsets = [0, 2], sizes = [8, 1], strides = [1, 1]} : vector<8x8xi32> to vector<8x1xi32>
    %346 = vector.extract_strided_slice %15 {offsets = [0, 2], sizes = [8, 1], strides = [1, 1]} : vector<8x8xf32> to vector<8x1xf32>
    %c512_i32_49 = arith.constant 512 : i32
    %347 = vector.broadcast %c512_i32_49 : i32 to vector<8x1xi32>
    %348 = arith.subi %345, %347 : vector<8x1xi32>
    %349 = vector.broadcast %348 : vector<8x1xi32> to vector<8x128xi32>
    %350 = arith.cmpi eq, %16, %349 : vector<8x128xi32>
    %351 = vector.broadcast %346 : vector<8x1xf32> to vector<8x128xf32>
    %352 = arith.addf %344, %351 : vector<8x128xf32>
    %353 = arith.select %350, %352, %344 : vector<8x128xi1>, vector<8x128xf32>
    %354 = vector.extract_strided_slice %0 {offsets = [0, 3], sizes = [8, 1], strides = [1, 1]} : vector<8x8xi32> to vector<8x1xi32>
    %355 = vector.extract_strided_slice %15 {offsets = [0, 3], sizes = [8, 1], strides = [1, 1]} : vector<8x8xf32> to vector<8x1xf32>
    %c512_i32_50 = arith.constant 512 : i32
    %356 = vector.broadcast %c512_i32_50 : i32 to vector<8x1xi32>
    %357 = arith.subi %354, %356 : vector<8x1xi32>
    %358 = vector.broadcast %357 : vector<8x1xi32> to vector<8x128xi32>
    %359 = arith.cmpi eq, %16, %358 : vector<8x128xi32>
    %360 = vector.broadcast %355 : vector<8x1xf32> to vector<8x128xf32>
    %361 = arith.addf %353, %360 : vector<8x128xf32>
    %362 = arith.select %359, %361, %353 : vector<8x128xi1>, vector<8x128xf32>
    %363 = vector.extract_strided_slice %0 {offsets = [0, 4], sizes = [8, 1], strides = [1, 1]} : vector<8x8xi32> to vector<8x1xi32>
    %364 = vector.extract_strided_slice %15 {offsets = [0, 4], sizes = [8, 1], strides = [1, 1]} : vector<8x8xf32> to vector<8x1xf32>
    %c512_i32_51 = arith.constant 512 : i32
    %365 = vector.broadcast %c512_i32_51 : i32 to vector<8x1xi32>
    %366 = arith.subi %363, %365 : vector<8x1xi32>
    %367 = vector.broadcast %366 : vector<8x1xi32> to vector<8x128xi32>
    %368 = arith.cmpi eq, %16, %367 : vector<8x128xi32>
    %369 = vector.broadcast %364 : vector<8x1xf32> to vector<8x128xf32>
    %370 = arith.addf %362, %369 : vector<8x128xf32>
    %371 = arith.select %368, %370, %362 : vector<8x128xi1>, vector<8x128xf32>
    %372 = vector.extract_strided_slice %0 {offsets = [0, 5], sizes = [8, 1], strides = [1, 1]} : vector<8x8xi32> to vector<8x1xi32>
    %373 = vector.extract_strided_slice %15 {offsets = [0, 5], sizes = [8, 1], strides = [1, 1]} : vector<8x8xf32> to vector<8x1xf32>
    %c512_i32_52 = arith.constant 512 : i32
    %374 = vector.broadcast %c512_i32_52 : i32 to vector<8x1xi32>
    %375 = arith.subi %372, %374 : vector<8x1xi32>
    %376 = vector.broadcast %375 : vector<8x1xi32> to vector<8x128xi32>
    %377 = arith.cmpi eq, %16, %376 : vector<8x128xi32>
    %378 = vector.broadcast %373 : vector<8x1xf32> to vector<8x128xf32>
    %379 = arith.addf %371, %378 : vector<8x128xf32>
    %380 = arith.select %377, %379, %371 : vector<8x128xi1>, vector<8x128xf32>
    %381 = vector.extract_strided_slice %0 {offsets = [0, 6], sizes = [8, 1], strides = [1, 1]} : vector<8x8xi32> to vector<8x1xi32>
    %382 = vector.extract_strided_slice %15 {offsets = [0, 6], sizes = [8, 1], strides = [1, 1]} : vector<8x8xf32> to vector<8x1xf32>
    %c512_i32_53 = arith.constant 512 : i32
    %383 = vector.broadcast %c512_i32_53 : i32 to vector<8x1xi32>
    %384 = arith.subi %381, %383 : vector<8x1xi32>
    %385 = vector.broadcast %384 : vector<8x1xi32> to vector<8x128xi32>
    %386 = arith.cmpi eq, %16, %385 : vector<8x128xi32>
    %387 = vector.broadcast %382 : vector<8x1xf32> to vector<8x128xf32>
    %388 = arith.addf %380, %387 : vector<8x128xf32>
    %389 = arith.select %386, %388, %380 : vector<8x128xi1>, vector<8x128xf32>
    %390 = vector.extract_strided_slice %0 {offsets = [0, 7], sizes = [8, 1], strides = [1, 1]} : vector<8x8xi32> to vector<8x1xi32>
    %391 = vector.extract_strided_slice %15 {offsets = [0, 7], sizes = [8, 1], strides = [1, 1]} : vector<8x8xf32> to vector<8x1xf32>
    %c512_i32_54 = arith.constant 512 : i32
    %392 = vector.broadcast %c512_i32_54 : i32 to vector<8x1xi32>
    %393 = arith.subi %390, %392 : vector<8x1xi32>
    %394 = vector.broadcast %393 : vector<8x1xi32> to vector<8x128xi32>
    %395 = arith.cmpi eq, %16, %394 : vector<8x128xi32>
    %396 = vector.broadcast %391 : vector<8x1xf32> to vector<8x128xf32>
    %397 = arith.addf %389, %396 : vector<8x128xf32>
    %398 = arith.select %395, %397, %389 : vector<8x128xi1>, vector<8x128xf32>
    %399 = arith.truncf %398 : vector<8x128xf32> to vector<8x128xbf16>
    %c512 = arith.constant 512 : index
    %c0_55 = arith.constant 0 : index
    %400 = vector.load %arg3[%c512, %c0_55] : memref<1024x768xbf16, #tpu.memory_space<vmem>>, vector<128x768xbf16>
    %cst_56 = arith.constant dense<0.000000e+00> : vector<8x768xf32>
    %401 = tpu.matmul %399, %400, %cst_56 {dimension_numbers = #tpu.dot_dimension_numbers<[1], [0], [0], [1], [0, 0, 1, 1], [], []>} : vector<8x128xbf16>, vector<128x768xbf16>, vector<8x768xf32> -> vector<8x768xf32>
    %402 = arith.addf %325, %401 : vector<8x768xf32>
    %cst_57 = arith.constant 0.000000e+00 : f32
    %403 = vector.broadcast %cst_57 : f32 to vector<8x128xf32>
    %404 = vector.extract_strided_slice %0 {offsets = [0, 0], sizes = [8, 1], strides = [1, 1]} : vector<8x8xi32> to vector<8x1xi32>
    %405 = vector.extract_strided_slice %15 {offsets = [0, 0], sizes = [8, 1], strides = [1, 1]} : vector<8x8xf32> to vector<8x1xf32>
    %c640_i32 = arith.constant 640 : i32
    %406 = vector.broadcast %c640_i32 : i32 to vector<8x1xi32>
    %407 = arith.subi %404, %406 : vector<8x1xi32>
    %408 = vector.broadcast %407 : vector<8x1xi32> to vector<8x128xi32>
    %409 = arith.cmpi eq, %16, %408 : vector<8x128xi32>
    %410 = vector.broadcast %405 : vector<8x1xf32> to vector<8x128xf32>
    %411 = arith.addf %403, %410 : vector<8x128xf32>
    %412 = arith.select %409, %411, %403 : vector<8x128xi1>, vector<8x128xf32>
    %413 = vector.extract_strided_slice %0 {offsets = [0, 1], sizes = [8, 1], strides = [1, 1]} : vector<8x8xi32> to vector<8x1xi32>
    %414 = vector.extract_strided_slice %15 {offsets = [0, 1], sizes = [8, 1], strides = [1, 1]} : vector<8x8xf32> to vector<8x1xf32>
    %c640_i32_58 = arith.constant 640 : i32
    %415 = vector.broadcast %c640_i32_58 : i32 to vector<8x1xi32>
    %416 = arith.subi %413, %415 : vector<8x1xi32>
    %417 = vector.broadcast %416 : vector<8x1xi32> to vector<8x128xi32>
    %418 = arith.cmpi eq, %16, %417 : vector<8x128xi32>
    %419 = vector.broadcast %414 : vector<8x1xf32> to vector<8x128xf32>
    %420 = arith.addf %412, %419 : vector<8x128xf32>
    %421 = arith.select %418, %420, %412 : vector<8x128xi1>, vector<8x128xf32>
    %422 = vector.extract_strided_slice %0 {offsets = [0, 2], sizes = [8, 1], strides = [1, 1]} : vector<8x8xi32> to vector<8x1xi32>
    %423 = vector.extract_strided_slice %15 {offsets = [0, 2], sizes = [8, 1], strides = [1, 1]} : vector<8x8xf32> to vector<8x1xf32>
    %c640_i32_59 = arith.constant 640 : i32
    %424 = vector.broadcast %c640_i32_59 : i32 to vector<8x1xi32>
    %425 = arith.subi %422, %424 : vector<8x1xi32>
    %426 = vector.broadcast %425 : vector<8x1xi32> to vector<8x128xi32>
    %427 = arith.cmpi eq, %16, %426 : vector<8x128xi32>
    %428 = vector.broadcast %423 : vector<8x1xf32> to vector<8x128xf32>
    %429 = arith.addf %421, %428 : vector<8x128xf32>
    %430 = arith.select %427, %429, %421 : vector<8x128xi1>, vector<8x128xf32>
    %431 = vector.extract_strided_slice %0 {offsets = [0, 3], sizes = [8, 1], strides = [1, 1]} : vector<8x8xi32> to vector<8x1xi32>
    %432 = vector.extract_strided_slice %15 {offsets = [0, 3], sizes = [8, 1], strides = [1, 1]} : vector<8x8xf32> to vector<8x1xf32>
    %c640_i32_60 = arith.constant 640 : i32
    %433 = vector.broadcast %c640_i32_60 : i32 to vector<8x1xi32>
    %434 = arith.subi %431, %433 : vector<8x1xi32>
    %435 = vector.broadcast %434 : vector<8x1xi32> to vector<8x128xi32>
    %436 = arith.cmpi eq, %16, %435 : vector<8x128xi32>
    %437 = vector.broadcast %432 : vector<8x1xf32> to vector<8x128xf32>
    %438 = arith.addf %430, %437 : vector<8x128xf32>
    %439 = arith.select %436, %438, %430 : vector<8x128xi1>, vector<8x128xf32>
    %440 = vector.extract_strided_slice %0 {offsets = [0, 4], sizes = [8, 1], strides = [1, 1]} : vector<8x8xi32> to vector<8x1xi32>
    %441 = vector.extract_strided_slice %15 {offsets = [0, 4], sizes = [8, 1], strides = [1, 1]} : vector<8x8xf32> to vector<8x1xf32>
    %c640_i32_61 = arith.constant 640 : i32
    %442 = vector.broadcast %c640_i32_61 : i32 to vector<8x1xi32>
    %443 = arith.subi %440, %442 : vector<8x1xi32>
    %444 = vector.broadcast %443 : vector<8x1xi32> to vector<8x128xi32>
    %445 = arith.cmpi eq, %16, %444 : vector<8x128xi32>
    %446 = vector.broadcast %441 : vector<8x1xf32> to vector<8x128xf32>
    %447 = arith.addf %439, %446 : vector<8x128xf32>
    %448 = arith.select %445, %447, %439 : vector<8x128xi1>, vector<8x128xf32>
    %449 = vector.extract_strided_slice %0 {offsets = [0, 5], sizes = [8, 1], strides = [1, 1]} : vector<8x8xi32> to vector<8x1xi32>
    %450 = vector.extract_strided_slice %15 {offsets = [0, 5], sizes = [8, 1], strides = [1, 1]} : vector<8x8xf32> to vector<8x1xf32>
    %c640_i32_62 = arith.constant 640 : i32
    %451 = vector.broadcast %c640_i32_62 : i32 to vector<8x1xi32>
    %452 = arith.subi %449, %451 : vector<8x1xi32>
    %453 = vector.broadcast %452 : vector<8x1xi32> to vector<8x128xi32>
    %454 = arith.cmpi eq, %16, %453 : vector<8x128xi32>
    %455 = vector.broadcast %450 : vector<8x1xf32> to vector<8x128xf32>
    %456 = arith.addf %448, %455 : vector<8x128xf32>
    %457 = arith.select %454, %456, %448 : vector<8x128xi1>, vector<8x128xf32>
    %458 = vector.extract_strided_slice %0 {offsets = [0, 6], sizes = [8, 1], strides = [1, 1]} : vector<8x8xi32> to vector<8x1xi32>
    %459 = vector.extract_strided_slice %15 {offsets = [0, 6], sizes = [8, 1], strides = [1, 1]} : vector<8x8xf32> to vector<8x1xf32>
    %c640_i32_63 = arith.constant 640 : i32
    %460 = vector.broadcast %c640_i32_63 : i32 to vector<8x1xi32>
    %461 = arith.subi %458, %460 : vector<8x1xi32>
    %462 = vector.broadcast %461 : vector<8x1xi32> to vector<8x128xi32>
    %463 = arith.cmpi eq, %16, %462 : vector<8x128xi32>
    %464 = vector.broadcast %459 : vector<8x1xf32> to vector<8x128xf32>
    %465 = arith.addf %457, %464 : vector<8x128xf32>
    %466 = arith.select %463, %465, %457 : vector<8x128xi1>, vector<8x128xf32>
    %467 = vector.extract_strided_slice %0 {offsets = [0, 7], sizes = [8, 1], strides = [1, 1]} : vector<8x8xi32> to vector<8x1xi32>
    %468 = vector.extract_strided_slice %15 {offsets = [0, 7], sizes = [8, 1], strides = [1, 1]} : vector<8x8xf32> to vector<8x1xf32>
    %c640_i32_64 = arith.constant 640 : i32
    %469 = vector.broadcast %c640_i32_64 : i32 to vector<8x1xi32>
    %470 = arith.subi %467, %469 : vector<8x1xi32>
    %471 = vector.broadcast %470 : vector<8x1xi32> to vector<8x128xi32>
    %472 = arith.cmpi eq, %16, %471 : vector<8x128xi32>
    %473 = vector.broadcast %468 : vector<8x1xf32> to vector<8x128xf32>
    %474 = arith.addf %466, %473 : vector<8x128xf32>
    %475 = arith.select %472, %474, %466 : vector<8x128xi1>, vector<8x128xf32>
    %476 = arith.truncf %475 : vector<8x128xf32> to vector<8x128xbf16>
    %c640 = arith.constant 640 : index
    %c0_65 = arith.constant 0 : index
    %477 = vector.load %arg3[%c640, %c0_65] : memref<1024x768xbf16, #tpu.memory_space<vmem>>, vector<128x768xbf16>
    %cst_66 = arith.constant dense<0.000000e+00> : vector<8x768xf32>
    %478 = tpu.matmul %476, %477, %cst_66 {dimension_numbers = #tpu.dot_dimension_numbers<[1], [0], [0], [1], [0, 0, 1, 1], [], []>} : vector<8x128xbf16>, vector<128x768xbf16>, vector<8x768xf32> -> vector<8x768xf32>
    %479 = arith.addf %402, %478 : vector<8x768xf32>
    %cst_67 = arith.constant 0.000000e+00 : f32
    %480 = vector.broadcast %cst_67 : f32 to vector<8x128xf32>
    %481 = vector.extract_strided_slice %0 {offsets = [0, 0], sizes = [8, 1], strides = [1, 1]} : vector<8x8xi32> to vector<8x1xi32>
    %482 = vector.extract_strided_slice %15 {offsets = [0, 0], sizes = [8, 1], strides = [1, 1]} : vector<8x8xf32> to vector<8x1xf32>
    %c768_i32 = arith.constant 768 : i32
    %483 = vector.broadcast %c768_i32 : i32 to vector<8x1xi32>
    %484 = arith.subi %481, %483 : vector<8x1xi32>
    %485 = vector.broadcast %484 : vector<8x1xi32> to vector<8x128xi32>
    %486 = arith.cmpi eq, %16, %485 : vector<8x128xi32>
    %487 = vector.broadcast %482 : vector<8x1xf32> to vector<8x128xf32>
    %488 = arith.addf %480, %487 : vector<8x128xf32>
    %489 = arith.select %486, %488, %480 : vector<8x128xi1>, vector<8x128xf32>
    %490 = vector.extract_strided_slice %0 {offsets = [0, 1], sizes = [8, 1], strides = [1, 1]} : vector<8x8xi32> to vector<8x1xi32>
    %491 = vector.extract_strided_slice %15 {offsets = [0, 1], sizes = [8, 1], strides = [1, 1]} : vector<8x8xf32> to vector<8x1xf32>
    %c768_i32_68 = arith.constant 768 : i32
    %492 = vector.broadcast %c768_i32_68 : i32 to vector<8x1xi32>
    %493 = arith.subi %490, %492 : vector<8x1xi32>
    %494 = vector.broadcast %493 : vector<8x1xi32> to vector<8x128xi32>
    %495 = arith.cmpi eq, %16, %494 : vector<8x128xi32>
    %496 = vector.broadcast %491 : vector<8x1xf32> to vector<8x128xf32>
    %497 = arith.addf %489, %496 : vector<8x128xf32>
    %498 = arith.select %495, %497, %489 : vector<8x128xi1>, vector<8x128xf32>
    %499 = vector.extract_strided_slice %0 {offsets = [0, 2], sizes = [8, 1], strides = [1, 1]} : vector<8x8xi32> to vector<8x1xi32>
    %500 = vector.extract_strided_slice %15 {offsets = [0, 2], sizes = [8, 1], strides = [1, 1]} : vector<8x8xf32> to vector<8x1xf32>
    %c768_i32_69 = arith.constant 768 : i32
    %501 = vector.broadcast %c768_i32_69 : i32 to vector<8x1xi32>
    %502 = arith.subi %499, %501 : vector<8x1xi32>
    %503 = vector.broadcast %502 : vector<8x1xi32> to vector<8x128xi32>
    %504 = arith.cmpi eq, %16, %503 : vector<8x128xi32>
    %505 = vector.broadcast %500 : vector<8x1xf32> to vector<8x128xf32>
    %506 = arith.addf %498, %505 : vector<8x128xf32>
    %507 = arith.select %504, %506, %498 : vector<8x128xi1>, vector<8x128xf32>
    %508 = vector.extract_strided_slice %0 {offsets = [0, 3], sizes = [8, 1], strides = [1, 1]} : vector<8x8xi32> to vector<8x1xi32>
    %509 = vector.extract_strided_slice %15 {offsets = [0, 3], sizes = [8, 1], strides = [1, 1]} : vector<8x8xf32> to vector<8x1xf32>
    %c768_i32_70 = arith.constant 768 : i32
    %510 = vector.broadcast %c768_i32_70 : i32 to vector<8x1xi32>
    %511 = arith.subi %508, %510 : vector<8x1xi32>
    %512 = vector.broadcast %511 : vector<8x1xi32> to vector<8x128xi32>
    %513 = arith.cmpi eq, %16, %512 : vector<8x128xi32>
    %514 = vector.broadcast %509 : vector<8x1xf32> to vector<8x128xf32>
    %515 = arith.addf %507, %514 : vector<8x128xf32>
    %516 = arith.select %513, %515, %507 : vector<8x128xi1>, vector<8x128xf32>
    %517 = vector.extract_strided_slice %0 {offsets = [0, 4], sizes = [8, 1], strides = [1, 1]} : vector<8x8xi32> to vector<8x1xi32>
    %518 = vector.extract_strided_slice %15 {offsets = [0, 4], sizes = [8, 1], strides = [1, 1]} : vector<8x8xf32> to vector<8x1xf32>
    %c768_i32_71 = arith.constant 768 : i32
    %519 = vector.broadcast %c768_i32_71 : i32 to vector<8x1xi32>
    %520 = arith.subi %517, %519 : vector<8x1xi32>
    %521 = vector.broadcast %520 : vector<8x1xi32> to vector<8x128xi32>
    %522 = arith.cmpi eq, %16, %521 : vector<8x128xi32>
    %523 = vector.broadcast %518 : vector<8x1xf32> to vector<8x128xf32>
    %524 = arith.addf %516, %523 : vector<8x128xf32>
    %525 = arith.select %522, %524, %516 : vector<8x128xi1>, vector<8x128xf32>
    %526 = vector.extract_strided_slice %0 {offsets = [0, 5], sizes = [8, 1], strides = [1, 1]} : vector<8x8xi32> to vector<8x1xi32>
    %527 = vector.extract_strided_slice %15 {offsets = [0, 5], sizes = [8, 1], strides = [1, 1]} : vector<8x8xf32> to vector<8x1xf32>
    %c768_i32_72 = arith.constant 768 : i32
    %528 = vector.broadcast %c768_i32_72 : i32 to vector<8x1xi32>
    %529 = arith.subi %526, %528 : vector<8x1xi32>
    %530 = vector.broadcast %529 : vector<8x1xi32> to vector<8x128xi32>
    %531 = arith.cmpi eq, %16, %530 : vector<8x128xi32>
    %532 = vector.broadcast %527 : vector<8x1xf32> to vector<8x128xf32>
    %533 = arith.addf %525, %532 : vector<8x128xf32>
    %534 = arith.select %531, %533, %525 : vector<8x128xi1>, vector<8x128xf32>
    %535 = vector.extract_strided_slice %0 {offsets = [0, 6], sizes = [8, 1], strides = [1, 1]} : vector<8x8xi32> to vector<8x1xi32>
    %536 = vector.extract_strided_slice %15 {offsets = [0, 6], sizes = [8, 1], strides = [1, 1]} : vector<8x8xf32> to vector<8x1xf32>
    %c768_i32_73 = arith.constant 768 : i32
    %537 = vector.broadcast %c768_i32_73 : i32 to vector<8x1xi32>
    %538 = arith.subi %535, %537 : vector<8x1xi32>
    %539 = vector.broadcast %538 : vector<8x1xi32> to vector<8x128xi32>
    %540 = arith.cmpi eq, %16, %539 : vector<8x128xi32>
    %541 = vector.broadcast %536 : vector<8x1xf32> to vector<8x128xf32>
    %542 = arith.addf %534, %541 : vector<8x128xf32>
    %543 = arith.select %540, %542, %534 : vector<8x128xi1>, vector<8x128xf32>
    %544 = vector.extract_strided_slice %0 {offsets = [0, 7], sizes = [8, 1], strides = [1, 1]} : vector<8x8xi32> to vector<8x1xi32>
    %545 = vector.extract_strided_slice %15 {offsets = [0, 7], sizes = [8, 1], strides = [1, 1]} : vector<8x8xf32> to vector<8x1xf32>
    %c768_i32_74 = arith.constant 768 : i32
    %546 = vector.broadcast %c768_i32_74 : i32 to vector<8x1xi32>
    %547 = arith.subi %544, %546 : vector<8x1xi32>
    %548 = vector.broadcast %547 : vector<8x1xi32> to vector<8x128xi32>
    %549 = arith.cmpi eq, %16, %548 : vector<8x128xi32>
    %550 = vector.broadcast %545 : vector<8x1xf32> to vector<8x128xf32>
    %551 = arith.addf %543, %550 : vector<8x128xf32>
    %552 = arith.select %549, %551, %543 : vector<8x128xi1>, vector<8x128xf32>
    %553 = arith.truncf %552 : vector<8x128xf32> to vector<8x128xbf16>
    %c768 = arith.constant 768 : index
    %c0_75 = arith.constant 0 : index
    %554 = vector.load %arg3[%c768, %c0_75] : memref<1024x768xbf16, #tpu.memory_space<vmem>>, vector<128x768xbf16>
    %cst_76 = arith.constant dense<0.000000e+00> : vector<8x768xf32>
    %555 = tpu.matmul %553, %554, %cst_76 {dimension_numbers = #tpu.dot_dimension_numbers<[1], [0], [0], [1], [0, 0, 1, 1], [], []>} : vector<8x128xbf16>, vector<128x768xbf16>, vector<8x768xf32> -> vector<8x768xf32>
    %556 = arith.addf %479, %555 : vector<8x768xf32>
    %cst_77 = arith.constant 0.000000e+00 : f32
    %557 = vector.broadcast %cst_77 : f32 to vector<8x128xf32>
    %558 = vector.extract_strided_slice %0 {offsets = [0, 0], sizes = [8, 1], strides = [1, 1]} : vector<8x8xi32> to vector<8x1xi32>
    %559 = vector.extract_strided_slice %15 {offsets = [0, 0], sizes = [8, 1], strides = [1, 1]} : vector<8x8xf32> to vector<8x1xf32>
    %c896_i32 = arith.constant 896 : i32
    %560 = vector.broadcast %c896_i32 : i32 to vector<8x1xi32>
    %561 = arith.subi %558, %560 : vector<8x1xi32>
    %562 = vector.broadcast %561 : vector<8x1xi32> to vector<8x128xi32>
    %563 = arith.cmpi eq, %16, %562 : vector<8x128xi32>
    %564 = vector.broadcast %559 : vector<8x1xf32> to vector<8x128xf32>
    %565 = arith.addf %557, %564 : vector<8x128xf32>
    %566 = arith.select %563, %565, %557 : vector<8x128xi1>, vector<8x128xf32>
    %567 = vector.extract_strided_slice %0 {offsets = [0, 1], sizes = [8, 1], strides = [1, 1]} : vector<8x8xi32> to vector<8x1xi32>
    %568 = vector.extract_strided_slice %15 {offsets = [0, 1], sizes = [8, 1], strides = [1, 1]} : vector<8x8xf32> to vector<8x1xf32>
    %c896_i32_78 = arith.constant 896 : i32
    %569 = vector.broadcast %c896_i32_78 : i32 to vector<8x1xi32>
    %570 = arith.subi %567, %569 : vector<8x1xi32>
    %571 = vector.broadcast %570 : vector<8x1xi32> to vector<8x128xi32>
    %572 = arith.cmpi eq, %16, %571 : vector<8x128xi32>
    %573 = vector.broadcast %568 : vector<8x1xf32> to vector<8x128xf32>
    %574 = arith.addf %566, %573 : vector<8x128xf32>
    %575 = arith.select %572, %574, %566 : vector<8x128xi1>, vector<8x128xf32>
    %576 = vector.extract_strided_slice %0 {offsets = [0, 2], sizes = [8, 1], strides = [1, 1]} : vector<8x8xi32> to vector<8x1xi32>
    %577 = vector.extract_strided_slice %15 {offsets = [0, 2], sizes = [8, 1], strides = [1, 1]} : vector<8x8xf32> to vector<8x1xf32>
    %c896_i32_79 = arith.constant 896 : i32
    %578 = vector.broadcast %c896_i32_79 : i32 to vector<8x1xi32>
    %579 = arith.subi %576, %578 : vector<8x1xi32>
    %580 = vector.broadcast %579 : vector<8x1xi32> to vector<8x128xi32>
    %581 = arith.cmpi eq, %16, %580 : vector<8x128xi32>
    %582 = vector.broadcast %577 : vector<8x1xf32> to vector<8x128xf32>
    %583 = arith.addf %575, %582 : vector<8x128xf32>
    %584 = arith.select %581, %583, %575 : vector<8x128xi1>, vector<8x128xf32>
    %585 = vector.extract_strided_slice %0 {offsets = [0, 3], sizes = [8, 1], strides = [1, 1]} : vector<8x8xi32> to vector<8x1xi32>
    %586 = vector.extract_strided_slice %15 {offsets = [0, 3], sizes = [8, 1], strides = [1, 1]} : vector<8x8xf32> to vector<8x1xf32>
    %c896_i32_80 = arith.constant 896 : i32
    %587 = vector.broadcast %c896_i32_80 : i32 to vector<8x1xi32>
    %588 = arith.subi %585, %587 : vector<8x1xi32>
    %589 = vector.broadcast %588 : vector<8x1xi32> to vector<8x128xi32>
    %590 = arith.cmpi eq, %16, %589 : vector<8x128xi32>
    %591 = vector.broadcast %586 : vector<8x1xf32> to vector<8x128xf32>
    %592 = arith.addf %584, %591 : vector<8x128xf32>
    %593 = arith.select %590, %592, %584 : vector<8x128xi1>, vector<8x128xf32>
    %594 = vector.extract_strided_slice %0 {offsets = [0, 4], sizes = [8, 1], strides = [1, 1]} : vector<8x8xi32> to vector<8x1xi32>
    %595 = vector.extract_strided_slice %15 {offsets = [0, 4], sizes = [8, 1], strides = [1, 1]} : vector<8x8xf32> to vector<8x1xf32>
    %c896_i32_81 = arith.constant 896 : i32
    %596 = vector.broadcast %c896_i32_81 : i32 to vector<8x1xi32>
    %597 = arith.subi %594, %596 : vector<8x1xi32>
    %598 = vector.broadcast %597 : vector<8x1xi32> to vector<8x128xi32>
    %599 = arith.cmpi eq, %16, %598 : vector<8x128xi32>
    %600 = vector.broadcast %595 : vector<8x1xf32> to vector<8x128xf32>
    %601 = arith.addf %593, %600 : vector<8x128xf32>
    %602 = arith.select %599, %601, %593 : vector<8x128xi1>, vector<8x128xf32>
    %603 = vector.extract_strided_slice %0 {offsets = [0, 5], sizes = [8, 1], strides = [1, 1]} : vector<8x8xi32> to vector<8x1xi32>
    %604 = vector.extract_strided_slice %15 {offsets = [0, 5], sizes = [8, 1], strides = [1, 1]} : vector<8x8xf32> to vector<8x1xf32>
    %c896_i32_82 = arith.constant 896 : i32
    %605 = vector.broadcast %c896_i32_82 : i32 to vector<8x1xi32>
    %606 = arith.subi %603, %605 : vector<8x1xi32>
    %607 = vector.broadcast %606 : vector<8x1xi32> to vector<8x128xi32>
    %608 = arith.cmpi eq, %16, %607 : vector<8x128xi32>
    %609 = vector.broadcast %604 : vector<8x1xf32> to vector<8x128xf32>
    %610 = arith.addf %602, %609 : vector<8x128xf32>
    %611 = arith.select %608, %610, %602 : vector<8x128xi1>, vector<8x128xf32>
    %612 = vector.extract_strided_slice %0 {offsets = [0, 6], sizes = [8, 1], strides = [1, 1]} : vector<8x8xi32> to vector<8x1xi32>
    %613 = vector.extract_strided_slice %15 {offsets = [0, 6], sizes = [8, 1], strides = [1, 1]} : vector<8x8xf32> to vector<8x1xf32>
    %c896_i32_83 = arith.constant 896 : i32
    %614 = vector.broadcast %c896_i32_83 : i32 to vector<8x1xi32>
    %615 = arith.subi %612, %614 : vector<8x1xi32>
    %616 = vector.broadcast %615 : vector<8x1xi32> to vector<8x128xi32>
    %617 = arith.cmpi eq, %16, %616 : vector<8x128xi32>
    %618 = vector.broadcast %613 : vector<8x1xf32> to vector<8x128xf32>
    %619 = arith.addf %611, %618 : vector<8x128xf32>
    %620 = arith.select %617, %619, %611 : vector<8x128xi1>, vector<8x128xf32>
    %621 = vector.extract_strided_slice %0 {offsets = [0, 7], sizes = [8, 1], strides = [1, 1]} : vector<8x8xi32> to vector<8x1xi32>
    %622 = vector.extract_strided_slice %15 {offsets = [0, 7], sizes = [8, 1], strides = [1, 1]} : vector<8x8xf32> to vector<8x1xf32>
    %c896_i32_84 = arith.constant 896 : i32
    %623 = vector.broadcast %c896_i32_84 : i32 to vector<8x1xi32>
    %624 = arith.subi %621, %623 : vector<8x1xi32>
    %625 = vector.broadcast %624 : vector<8x1xi32> to vector<8x128xi32>
    %626 = arith.cmpi eq, %16, %625 : vector<8x128xi32>
    %627 = vector.broadcast %622 : vector<8x1xf32> to vector<8x128xf32>
    %628 = arith.addf %620, %627 : vector<8x128xf32>
    %629 = arith.select %626, %628, %620 : vector<8x128xi1>, vector<8x128xf32>
    %630 = arith.truncf %629 : vector<8x128xf32> to vector<8x128xbf16>
    %c896 = arith.constant 896 : index
    %c0_85 = arith.constant 0 : index
    %631 = vector.load %arg3[%c896, %c0_85] : memref<1024x768xbf16, #tpu.memory_space<vmem>>, vector<128x768xbf16>
    %cst_86 = arith.constant dense<0.000000e+00> : vector<8x768xf32>
    %632 = tpu.matmul %630, %631, %cst_86 {dimension_numbers = #tpu.dot_dimension_numbers<[1], [0], [0], [1], [0, 0, 1, 1], [], []>} : vector<8x128xbf16>, vector<128x768xbf16>, vector<8x768xf32> -> vector<8x768xf32>
    %633 = arith.addf %556, %632 : vector<8x768xf32>
    %634 = arith.truncf %633 : vector<8x768xf32> to vector<8x768xbf16>
    %c0_87 = arith.constant 0 : index
    %c0_88 = arith.constant 0 : index
    %635 = vector.load %arg4[%c0_87, %c0_88] : memref<768x768xbf16, #tpu.memory_space<vmem>>, vector<768x768xbf16>
    %cst_89 = arith.constant dense<0.000000e+00> : vector<8x768xf32>
    %636 = tpu.matmul %634, %635, %cst_89 {dimension_numbers = #tpu.dot_dimension_numbers<[1], [0], [0], [1], [0, 0, 1, 1], [], []>} : vector<8x768xbf16>, vector<768x768xbf16>, vector<8x768xf32> -> vector<8x768xf32>
    %c0_90 = arith.constant 0 : index
    %c0_91 = arith.constant 0 : index
    %637 = vector.load %arg5[%c0_90, %c0_91] : memref<1x768xf32, #tpu.memory_space<vmem>>, vector<1x768xf32>
    %638 = vector.broadcast %637 : vector<1x768xf32> to vector<8x768xf32>
    %639 = arith.addf %636, %638 : vector<8x768xf32>
    %640 = math.tanh %639 : vector<8x768xf32>
    %641 = arith.truncf %640 : vector<8x768xf32> to vector<8x768xbf16>
    %c0_92 = arith.constant 0 : index
    %c0_93 = arith.constant 0 : index
    %642 = vector.load %arg6[%c0_92, %c0_93] : memref<768x128xbf16, #tpu.memory_space<vmem>>, vector<768x128xbf16>
    %cst_94 = arith.constant dense<0.000000e+00> : vector<8x128xf32>
    %643 = tpu.matmul %641, %642, %cst_94 {dimension_numbers = #tpu.dot_dimension_numbers<[1], [0], [0], [1], [0, 0, 1, 1], [], []>} : vector<8x768xbf16>, vector<768x128xbf16>, vector<8x128xf32> -> vector<8x128xf32>
    %c0_95 = arith.constant 0 : index
    %c0_96 = arith.constant 0 : index
    %644 = vector.load %arg7[%c0_95, %c0_96] : memref<1x128xf32, #tpu.memory_space<vmem>>, vector<1x128xf32>
    %645 = vector.broadcast %644 : vector<1x128xf32> to vector<8x128xf32>
    %646 = arith.addf %643, %645 : vector<8x128xf32>
    %cst_97 = arith.constant 0.000000e+00 : f32
    %647 = vector.broadcast %cst_97 : f32 to vector<8x128xf32>
    %648 = arith.maximumf %646, %647 : vector<8x128xf32>
    %649 = arith.truncf %648 : vector<8x128xf32> to vector<8x128xbf16>
    %c0_98 = arith.constant 0 : index
    %c0_99 = arith.constant 0 : index
    %650 = vector.load %arg8[%c0_98, %c0_99] : memref<128x128xbf16, #tpu.memory_space<vmem>>, vector<128x128xbf16>
    %cst_100 = arith.constant dense<0.000000e+00> : vector<8x128xf32>
    %651 = tpu.matmul %649, %650, %cst_100 {dimension_numbers = #tpu.dot_dimension_numbers<[1], [0], [0], [1], [0, 0, 1, 1], [], []>} : vector<8x128xbf16>, vector<128x128xbf16>, vector<8x128xf32> -> vector<8x128xf32>
    %c0_101 = arith.constant 0 : index
    %c0_102 = arith.constant 0 : index
    %652 = vector.load %arg9[%c0_101, %c0_102] : memref<1x128xf32, #tpu.memory_space<vmem>>, vector<1x128xf32>
    %653 = vector.broadcast %652 : vector<1x128xf32> to vector<8x128xf32>
    %654 = arith.addf %651, %653 : vector<8x128xf32>
    %cst_103 = arith.constant dense<0xFF800000> : vector<8xf32>
    %655 = vector.multi_reduction <maximumf>, %654, %cst_103 [1] : vector<8x128xf32> to vector<8xf32>
    %656 = vector.shape_cast %655 : vector<8xf32> to vector<8x1xf32>
    %657 = vector.broadcast %656 : vector<8x1xf32> to vector<8x128xf32>
    %658 = arith.subf %654, %657 : vector<8x128xf32>
    %659 = math.exp %658 : vector<8x128xf32>
    %cst_104 = arith.constant dense<0.000000e+00> : vector<8xf32>
    %660 = vector.multi_reduction <add>, %659, %cst_104 [1] : vector<8x128xf32> to vector<8xf32>
    %661 = vector.shape_cast %660 : vector<8xf32> to vector<8x1xf32>
    %662 = vector.broadcast %661 : vector<8x1xf32> to vector<8x128xf32>
    %663 = arith.divf %659, %662 : vector<8x128xf32>
    %c0_105 = arith.constant 0 : index
    %c0_106 = arith.constant 0 : index
    %664 = vector.load %arg10[%c0_105, %c0_106] : memref<8x128xf32, #tpu.memory_space<vmem>>, vector<8x128xf32>
    tpu.vector_store %arg10[%c0_105, %c0_106], %663 {strides = array<i32>} : memref<8x128xf32, #tpu.memory_space<vmem>>, vector<8x128xf32>,
    return
  }
  func.func @transform_0(%arg0: i32) -> (i32, i32) {
    %c0_i32 = arith.constant 0 : i32
    %c0_i32_0 = arith.constant 0 : i32
    return %arg0, %c0_i32 : i32, i32
  }
  func.func @transform_1(%arg0: i32) -> (i32, i32) {
    %c0_i32 = arith.constant 0 : i32
    %c0_i32_0 = arith.constant 0 : i32
    return %arg0, %c0_i32 : i32, i32
  }
  func.func @transform_2(%arg0: i32) -> (i32, i32) {
    %c0_i32 = arith.constant 0 : i32
    %c0_i32_0 = arith.constant 0 : i32
    %c0_i32_1 = arith.constant 0 : i32
    return %c0_i32, %c0_i32_0 : i32, i32
  }
  func.func @transform_3(%arg0: i32) -> (i32, i32) {
    %c0_i32 = arith.constant 0 : i32
    %c0_i32_0 = arith.constant 0 : i32
    %c0_i32_1 = arith.constant 0 : i32
    return %c0_i32, %c0_i32_0 : i32, i32
  }
  func.func @transform_4(%arg0: i32) -> (i32, i32) {
    %c0_i32 = arith.constant 0 : i32
    %c0_i32_0 = arith.constant 0 : i32
    %c0_i32_1 = arith.constant 0 : i32
    return %c0_i32, %c0_i32_0 : i32, i32
  }
  func.func @transform_5(%arg0: i32) -> (i32, i32) {
    %c0_i32 = arith.constant 0 : i32
    %c0_i32_0 = arith.constant 0 : i32
    %c0_i32_1 = arith.constant 0 : i32
    return %c0_i32, %c0_i32_0 : i32, i32
  }
  func.func @transform_6(%arg0: i32) -> (i32, i32) {
    %c0_i32 = arith.constant 0 : i32
    %c0_i32_0 = arith.constant 0 : i32
    %c0_i32_1 = arith.constant 0 : i32
    return %c0_i32, %c0_i32_0 : i32, i32
  }
  func.func @transform_7(%arg0: i32) -> (i32, i32) {
    %c0_i32 = arith.constant 0 : i32
    %c0_i32_0 = arith.constant 0 : i32
    %c0_i32_1 = arith.constant 0 : i32
    return %c0_i32, %c0_i32_0 : i32, i32
  }
  func.func @transform_8(%arg0: i32) -> (i32, i32) {
    %c0_i32 = arith.constant 0 : i32
    %c0_i32_0 = arith.constant 0 : i32
    %c0_i32_1 = arith.constant 0 : i32
    return %c0_i32, %c0_i32_0 : i32, i32
  }
  func.func @transform_9(%arg0: i32) -> (i32, i32) {
    %c0_i32 = arith.constant 0 : i32
    %c0_i32_0 = arith.constant 0 : i32
    return %arg0, %c0_i32 : i32, i32
  }
}

</mosaic_0001>

<bundles_post_ra>
// kernel: bert_aggression_forward.1
= control target key start
LH: loop header
LB: loop body
LE: loop exit
PB: predicated region body
PF: predicated region fallthrough
CT: control target
= control target key end

     0   :  { %v8581_v1 = vmov 0   ;;  %v8582_v4 = vmov 1   ;;  %v8583_v5 = vmov 0.0   ;;  %vm41_vm3 = vcmask 64512   ;;  %s11403_s0 = inlined_call_operand.vmem [shape: s32[8,8], index: 0, kind: input, shape index: {}]   ;;  %s11404_s1 = inlined_call_operand.vmem [shape: f32[8,8], index: 1, kind: input, shape index: {}]   ;;  %s11405_s2 = inlined_call_operand.vmem [shape: bf16[1024,768], index: 2, kind: input, shape index: {}]   ;;  %s11406_s3 = inlined_call_operand.vmem [shape: bf16[768,768], index: 3, kind: input, shape index: {}]   ;;  %s11407_s5 = inlined_call_operand.vmem [shape: bf16[768,128], index: 5, kind: input, shape index: {}]   ;;  %s11408_s4 = inlined_call_operand.vmem [shape: f32[1,768], index: 4, kind: input, shape index: {}]   ;;  %s11409_s7 = inlined_call_operand.vmem [shape: bf16[128,128], index: 7, kind: input, shape index: {}]   ;;  %s11410_s6 = inlined_call_operand.vmem [shape: f32[1,128], index: 6, kind: input, shape index: {}]   ;;  %s11411_s8 = inlined_call_operand.vmem [shape: f32[1,128], index: 8, kind: input, shape index: {}]   ;;  %s11412_s9 = inlined_call_operand.vmem [shape: f32[8,128], index: 9, kind: output, shape index: {}]  }
   0x1   :  { %v8644_v0 = vld [vmem:[%s11403_s0] sm:$0xff]  ;;  %7427 = vset.pattern.permute.xlu0 %v8581_v1  ;;  %549 = vmatprep.mubr.bf16.mxu0 %v8581_v1  ;;  %v8584_v9 = vmov 2   ;;  %v8585_v10 = vmov 3   ;;  %v8586_v11 = vmov 4   ;;  %v8587_v12 = vmov 5  }
   0x2   :  { %v34_v2 = vld [vmem:[%s11404_s1] sm:$0xff]  ;;  %vm35_vm0 = vcmp.ge.s32.totalorder %v8644_v0, 0  ;;  %vm36_vm1 = vcmp.lt.s32.totalorder %v8644_v0, 1024  ;;  %v8654_v3 = vadd.s32 4294967168, %v8644_v0  ;;  %7428 = vset.pattern.permute.xlu1 %v8582_v4  ;;  %590 = vmatprep.mubr.bf16.mxu1 %v8581_v1  ;;  %v8588_v13 = vmov 6  }
   0x3   :  { %vm37_vm2 = vmand %vm35_vm0, %vm36_vm1  ;;  %v8682_v14 = vadd.s32 4294967040, %v8644_v0  ;;  %v8589_v15 = vmov 7   ;;  %v8691_v16 = vadd.s32 4294966912, %v8644_v0  ;;  %v8698_v17 = vadd.s32 4294966784, %v8644_v0  ;;  %v7499_v25 = vld [vmem:[%s11405_s2 + $0x2d4] ss:$24 sps:$4 sm:$0xff]  }
   0x4   :  { %v6584_v6 = vsel %vm37_vm2, 1.0, %v8583_v5  ;;  %187 = vperm.xlu1 %7428, %v8654_v3   ;;  %v8707_v18 = vadd.s32 4294966656, %v8644_v0  ;;  %v8716_v19 = vadd.s32 4294966528, %v8644_v0  ;;  %v8723_v20 = vadd.s32 4294966400, %v8644_v0  ;;  %v7501_v26 = vld [vmem:[%s11405_s2 + $0x2dc] ss:$24 sps:$4 sm:$0xff]   ;;  %517 = vmatprep.subr.bf16.mxu0 %v7499_v25 }
   0x5   :  { %v8660_v7 = vmul.f32 %v6584_v6, %v34_v2  ;;  %v7503_v27 = vld [vmem:[%s11405_s2 + $0x2d0] ss:$24 sps:$4 sm:$0xff]   ;;  %558 = vmatprep.subr.bf16.mxu1 %v7501_v26  ;;  %v7505_v29 = vld [vmem:[%s11405_s2 + $0x2a4] ss:$24 sps:$4 sm:$0xff]   ;;  %v7509_v31 = vld [vmem:[%s11405_s2 + $0x2a0] ss:$24 sps:$4 sm:$0xff]  }
   0x6   :  { %v7504_v28 = vld [vmem:[%s11405_s2 + $0x2d8] ss:$24 sps:$4 sm:$0xff]   ;;  %518 = vmatpush1.bf16.msra.mxu0 %v7503_v27  ;;  %v7507_v30 = vld [vmem:[%s11405_s2 + $0x2ac] ss:$24 sps:$4 sm:$0xff]   ;;  %v7510_v32 = vld [vmem:[%s11405_s2 + $0x2a8] ss:$24 sps:$4 sm:$0xff]  }
   0x7   :  { %v42_v8 = vsel %vm41_vm3, %v8660_v7, 0.0  ;;  %559 = vmatpush1.bf16.msra.mxu1 %v7504_v28  ;;  %519 = vmatprep.subr.bf16.mxu0 %v7505_v29  ;;  %v7511_v33 = vld [vmem:[%s11405_s2 + $0x274] ss:$24 sps:$4 sm:$0xff]   ;;  %v7515_v35 = vld [vmem:[%s11405_s2 + $0x270] ss:$24 sps:$4 sm:$0xff]  }
   0x8   :  { %43 = vadd.xlane.f32.xlu0 %v42_v8  ;;  %7429 = vset.pattern.permute.xlu1 %v8584_v9  ;;  %v7513_v34 = vld [vmem:[%s11405_s2 + $0x27c] ss:$24 sps:$4 sm:$0xff]   ;;  %v7516_v36 = vld [vmem:[%s11405_s2 + $0x278] ss:$24 sps:$4 sm:$0xff]   ;;  %v7519_v38 = vld [vmem:[%s11405_s2 + $0x24c] ss:$24 sps:$4 sm:$0xff]  }
   0x9   :  { %193 = vperm.xlu1 %7429, %v8654_v3   ;;  %560 = vmatprep.subr.bf16.mxu1 %v7507_v30  ;;  %v7517_v37 = vld [vmem:[%s11405_s2 + $0x244] ss:$24 sps:$4 sm:$0xff]   ;;  %v7521_v39 = vld [vmem:[%s11405_s2 + $0x240] ss:$24 sps:$4 sm:$0xff]   ;;  %v7523_v41 = vld [vmem:[%s11405_s2 + $0x214] ss:$24 sps:$4 sm:$0xff]  }
   0xa   :  { %520 = vmatpush1.bf16.msra.mxu0 %v7509_v31  ;;  %v7522_v40 = vld [vmem:[%s11405_s2 + $0x248] ss:$24 sps:$4 sm:$0xff]   ;;  %v7525_v42 = vld [vmem:[%s11405_s2 + $0x21c] ss:$24 sps:$4 sm:$0xff]   ;;  %v7528_v44 = vld [vmem:[%s11405_s2 + $0x218] ss:$24 sps:$4 sm:$0xff]  }
   0xb   :  { %561 = vmatpush1.bf16.msra.mxu1 %v7510_v32  ;;  %521 = vmatprep.subr.bf16.mxu0 %v7511_v33  ;;  %v7527_v43 = vld [vmem:[%s11405_s2 + $0x210] ss:$24 sps:$4 sm:$0xff]   ;;  %v7529_v45 = vld [vmem:[%s11405_s2 + $0x1e4] ss:$24 sps:$4 sm:$0xff]   ;;  %v7533_v47 = vld [vmem:[%s11405_s2 + $0x1e0] ss:$24 sps:$4 sm:$0xff]  }
   0xc   :  { %562 = vmatprep.subr.bf16.mxu1 %v7513_v34  ;;  %v7531_v46 = vld [vmem:[%s11405_s2 + $0x1ec] ss:$24 sps:$4 sm:$0xff]   ;;  %v7534_v48 = vld [vmem:[%s11405_s2 + $0x1e8] ss:$24 sps:$4 sm:$0xff]   ;;  %v7537_v50 = vld [vmem:[%s11405_s2 + $0x1bc] ss:$24 sps:$4 sm:$0xff]  }
   0xd   :  { %7430 = vset.pattern.permute.xlu1 %v8585_v10  ;;  %v7535_v49 = vld [vmem:[%s11405_s2 + $0x1b4] ss:$24 sps:$4 sm:$0xff]   ;;  %v7539_v51 = vld [vmem:[%s11405_s2 + $0x1b0] ss:$24 sps:$4 sm:$0xff]   ;;  %v7541_v53 = vld [vmem:[%s11405_s2 + $0x184] ss:$24 sps:$4 sm:$0xff]  }
   0xe   :  { %199 = vperm.xlu1 %7430, %v8654_v3   ;;  %522 = vmatpush1.bf16.msra.mxu0 %v7515_v35  ;;  %v7540_v52 = vld [vmem:[%s11405_s2 + $0x1b8] ss:$24 sps:$4 sm:$0xff]   ;;  %v7543_v54 = vld [vmem:[%s11405_s2 + $0x18c] ss:$24 sps:$4 sm:$0xff]   ;;  %v7546_v56 = vld [vmem:[%s11405_s2 + $0x188] ss:$24 sps:$4 sm:$0xff]  }
   0xf   :  { %563 = vmatpush1.bf16.msra.mxu1 %v7516_v36  ;;  %523 = vmatprep.subr.bf16.mxu0 %v7517_v37  ;;  %v7545_v55 = vld [vmem:[%s11405_s2 + $0x180] ss:$24 sps:$4 sm:$0xff]   ;;  %v7549_v57 = vld [vmem:[%s11405_s2 + $0x2e4] ss:$24 sps:$4 sm:$0xff]   ;;  %v7552_v58 = vld [vmem:[%s11405_s2 + $0x154] ss:$24 sps:$4 sm:$0xff]  }
  0x10   :  { %564 = vmatprep.subr.bf16.mxu1 %v7519_v38 }
  0x12   :  { %7431 = vset.pattern.permute.xlu1 %v8586_v11  ;;  %524 = vmatpush1.bf16.msra.mxu0 %v7521_v39 }
  0x13   :  { %205 = vperm.xlu1 %7431, %v8654_v3   ;;  %565 = vmatpush1.bf16.msra.mxu1 %v7522_v40  ;;  %v7547_v40 = vld [vmem:[%s11405_s2 + $0x2e0] ss:$24 sps:$4 sm:$0xff]  }
  0x14   :  { %525 = vmatprep.subr.bf16.mxu0 %v7523_v41  ;;  %566 = vmatprep.subr.bf16.mxu1 %v7525_v42  ;;  %v7550_v41 = vld [vmem:[%s11405_s2 + $0x150] ss:$24 sps:$4 sm:$0xff]   ;;  %v7555_v42 = vld [vmem:[%s11405_s2 + $0x2b4] ss:$24 sps:$4 sm:$0xff]  }
  0x16   :  { %526 = vmatpush1.bf16.msra.mxu0 %v7527_v43 }
  0x17   :  { %7432 = vset.pattern.permute.xlu1 %v8587_v12  ;;  %567 = vmatpush1.bf16.msra.mxu1 %v7528_v44  ;;  %v7558_v44 = vld [vmem:[%s11405_s2 + $0x124] ss:$24 sps:$4 sm:$0xff]  }
  0x18   :  { %211 = vperm.xlu1 %7432, %v8654_v3   ;;  %527 = vmatprep.subr.bf16.mxu0 %v7529_v45 }
  0x19   :  { %568 = vmatprep.subr.bf16.mxu1 %v7531_v46 }
  0x1a   :  { %528 = vmatpush1.bf16.msra.mxu0 %v7533_v47 }
  0x1b   :  { %569 = vmatpush1.bf16.msra.mxu1 %v7534_v48  ;;  %529 = vmatprep.subr.bf16.mxu0 %v7535_v49  ;;  %v7553_v49 = vld [vmem:[%s11405_s2 + $0x2b0] ss:$24 sps:$4 sm:$0xff]  }
  0x1c   :  { %7434 = vset.pattern.permute.xlu1 %v8581_v1  ;;  %570 = vmatprep.subr.bf16.mxu1 %v7537_v50  ;;  %v7556_v50 = vld [vmem:[%s11405_s2 + $0x120] ss:$24 sps:$4 sm:$0xff]  }
  0x1e   :  { %182 = vperm.xlu0 %7427, %v8654_v3   ;;  %530 = vmatpush1.bf16.msra.mxu0 %v7539_v51  ;;  %v7561_v51 = vld [vmem:[%s11405_s2 + $0x284] ss:$24 sps:$4 sm:$0xff]  }
  0x1f   :  { %571 = vmatpush1.bf16.msra.mxu1 %v7540_v52  ;;  %531 = vmatprep.subr.bf16.mxu0 %v7541_v53  ;;  %v7564_v52 = vld [vmem:[%s11405_s2 + $0xf4] ss:$24 sps:$4 sm:$0xff]  }
  0x20   :  { %572 = vmatprep.subr.bf16.mxu1 %v7543_v54  ;;  %v7559_v54 = vld [vmem:[%s11405_s2 + $0x280] ss:$24 sps:$4 sm:$0xff]  }
  0x22   :  { %7433 = vset.pattern.permute.xlu0 %v8588_v13  ;;  %532 = vmatpush1.bf16.msra.mxu0 %v7545_v55  ;;  %v7562_v55 = vld [vmem:[%s11405_s2 + $0xf0] ss:$24 sps:$4 sm:$0xff]  }
  0x23   :  { %217 = vperm.xlu0 %7433, %v8654_v3   ;;  %573 = vmatpush1.bf16.msra.mxu1 %v7546_v56 }
  0x24   :  { %599 = vmatprep.subr.bf16.mxu0 %v7549_v57  ;;  %880 = vmatprep.subr.bf16.mxu1 %v7552_v58  ;;  %v7570_v58 = vld [vmem:[%s11405_s2 + $0xc4] ss:$24 sps:$4 sm:$0xff]  }
  0x27   :  { %7442 = vset.pattern.permute.xlu0 %v8581_v1 }
  0x28   :  { %51 = vperm.xlu0 %7442, %v8644_v0  }
  0x2c   :  { %7445 = vset.pattern.permute.xlu0 %v8585_v10 }
  0x2d   :  { %82 = vperm.xlu0 %7445, %v8644_v0  }
  0x31   :  { %7448 = vset.pattern.permute.xlu0 %v8588_v13 }
  0x32   :  { %112 = vperm.xlu0 %7448, %v8644_v0  }
  0x36   :  { %7451 = vset.pattern.permute.xlu0 %v8582_v4 }
  0x37   :  { %1010 = vperm.xlu0 %7451, %v8682_v14  }
  0x3b   :  { %7454 = vset.pattern.permute.xlu0 %v8586_v11 }
  0x3c   :  { %1028 = vperm.xlu0 %7454, %v8682_v14  }
  0x40   :  { %7457 = vset.pattern.permute.xlu0 %v8589_v15 }
  0x41   :  { %1046 = vperm.xlu0 %7457, %v8682_v14  }
  0x45   :  { %7460 = vset.pattern.permute.xlu0 %v8584_v9 }
  0x46   :  { %1482 = vperm.xlu0 %7460, %v8691_v16  }
  0x4a   :  { %7463 = vset.pattern.permute.xlu0 %v8587_v12 }
  0x4b   :  { %1500 = vperm.xlu0 %7463, %v8691_v16  }
  0x4f   :  { %7466 = vset.pattern.permute.xlu0 %v8581_v1 }
  0x50   :  { %1937 = vperm.xlu0 %7466, %v8698_v17  }
  0x54   :  { %7469 = vset.pattern.permute.xlu0 %v8585_v10 }
  0x55   :  { %1954 = vperm.xlu0 %7469, %v8698_v17  }
  0x59   :  { %7472 = vset.pattern.permute.xlu0 %v8588_v13 }
  0x5a   :  { %1972 = vperm.xlu0 %7472, %v8698_v17  }
  0x5e   :  { %7475 = vset.pattern.permute.xlu0 %v8582_v4 }
  0x5f   :  { %2408 = vperm.xlu0 %7475, %v8707_v18  }
  0x63   :  { %7478 = vset.pattern.permute.xlu0 %v8586_v11 }
  0x64   :  { %2426 = vperm.xlu0 %7478, %v8707_v18  }
  0x68   :  { %7481 = vset.pattern.permute.xlu0 %v8589_v15 }
  0x69   :  { %2444 = vperm.xlu0 %7481, %v8707_v18  }
  0x6d   :  { %7484 = vset.pattern.permute.xlu0 %v8584_v9 }
  0x6e   :  { %2880 = vperm.xlu0 %7484, %v8716_v19  }
  0x72   :  { %7487 = vset.pattern.permute.xlu0 %v8587_v12 }
  0x73   :  { %2898 = vperm.xlu0 %7487, %v8716_v19  }
  0x77   :  { %7490 = vset.pattern.permute.xlu0 %v8581_v1 }
  0x78   :  { %3335 = vperm.xlu0 %7490, %v8723_v20  }
  0x7c   :  { %7493 = vset.pattern.permute.xlu0 %v8585_v10 }
  0x7d   :  { %3352 = vperm.xlu0 %7493, %v8723_v20  }
  0x7f   :  { %v188_v59 = vpop.permute.xlu1 %187 }
  0x81   :  { %7496 = vset.pattern.permute.xlu0 %v8588_v13 }
  0x82   :  { %3370 = vperm.xlu0 %7496, %v8723_v20  }
  0x84   :  { %v194_v60 = vpop.permute.xlu1 %193 }
  0x86   :  { %7498 = vset.pattern.permute.xlu0 %v8589_v15 }
  0x89   :  { %v200_v61 = vpop.permute.xlu1 %199 }
  0x8e   :  { %v206_v62 = vpop.permute.xlu1 %205 }
  0x91   :  { %v44_v21 = vpop.xlane.xlu0 %43 }
  0x92   :  { %v45_v22 = vmax.f32 %v44_v21, 1.0 }
  0x93   :  { %v212_v63 = vpop.permute.xlu1 %211 }
  0x94   :  { %8563 = vrcp.f32 %v45_v22 }
  0x99   :  { %v183_v6 = vpop.permute.xlu0 %182 }
  0xa1   :  { %v8564_v23 = vpop.eup %8563 }
  0xa2   :  { %v8733_v24 = vmul.f32 %v8564_v23, %v8660_v7 }
  0xa4   :  { %56 = vperm.xlu1 %7434, %v8733_v24  }
  0xa8   :  { %7435 = vset.pattern.permute.xlu1 %v8582_v4 }
  0xa9   :  { %66 = vperm.xlu1 %7435, %v8733_v24  }
  0xad   :  { %7436 = vset.pattern.permute.xlu1 %v8584_v9 }
  0xae   :  { %76 = vperm.xlu1 %7436, %v8733_v24  }
  0xb2   :  { %7437 = vset.pattern.permute.xlu1 %v8585_v10 }
  0xb3   :  { %86 = vperm.xlu1 %7437, %v8733_v24  }
  0xb7   :  { %7438 = vset.pattern.permute.xlu1 %v8586_v11 }
  0xb8   :  { %96 = vperm.xlu1 %7438, %v8733_v24  }
  0xbc   :  { %7439 = vset.pattern.permute.xlu1 %v8587_v12 }
  0xbd   :  { %106 = vperm.xlu1 %7439, %v8733_v24  }
  0xc1   :  { %7440 = vset.pattern.permute.xlu1 %v8588_v13 }
  0xc2   :  { %116 = vperm.xlu1 %7440, %v8733_v24  }
  0xc6   :  { %7441 = vset.pattern.permute.xlu1 %v8589_v15 }
  0xc7   :  { %126 = vperm.xlu1 %7441, %v8733_v24  }
  0xcb   :  { %223 = vperm.xlu1 %7441, %v8654_v3  }
  0xcf   :  { %7443 = vset.pattern.permute.xlu1 %v8582_v4 }
  0xd0   :  { %62 = vperm.xlu1 %7443, %v8644_v0  }
  0xd4   :  { %7444 = vset.pattern.permute.xlu1 %v8584_v9 }
  0xd5   :  { %72 = vperm.xlu1 %7444, %v8644_v0  }
  0xd9   :  { %7446 = vset.pattern.permute.xlu1 %v8586_v11 }
  0xda   :  { %92 = vperm.xlu1 %7446, %v8644_v0  }
  0xde   :  { %7447 = vset.pattern.permute.xlu1 %v8587_v12 }
  0xdf   :  { %102 = vperm.xlu1 %7447, %v8644_v0  }
  0xe3   :  { %7449 = vset.pattern.permute.xlu1 %v8589_v15 }
  0xe4   :  { %122 = vperm.xlu1 %7449, %v8644_v0   ;;  %v48_v0 = vlaneseq }
  0xe6   :  { %v8890_v3 = vand.u32 127, %v48_v0 }
  0xe8   :  { %7450 = vset.pattern.permute.xlu1 %v8581_v1  ;;  %vm184_vm4 = vcmp.eq.s32.totalorder %v8890_v3, %v183_v6  ;;  %vm189_vm5 = vcmp.eq.s32.totalorder %v8890_v3, %v188_v59  ;;  %vm195_vm6 = vcmp.eq.s32.totalorder %v8890_v3, %v194_v60  ;;  %vm201_vm7 = vcmp.eq.s32.totalorder %v8890_v3, %v200_v61  ;;  %v7573_v6 = vld [vmem:[%s11405_s2 + $0x224] ss:$24 sps:$4 sm:$0xff]  }
  0xe9   :  { %1005 = vperm.xlu1 %7450, %v8682_v14   ;;  %vm207_vm8 = vcmp.eq.s32.totalorder %v8890_v3, %v206_v62  ;;  %vm213_vm9 = vcmp.eq.s32.totalorder %v8890_v3, %v212_v63  ;;  %v7565_v62 = vld [vmem:[%s11405_s2 + $0x250] ss:$24 sps:$4 sm:$0xff]   ;;  %v7568_v63 = vld [vmem:[%s11405_s2 + $0xc0] ss:$24 sps:$4 sm:$0xff]  }
  0xed   :  { %7452 = vset.pattern.permute.xlu1 %v8584_v9 }
  0xee   :  { %1016 = vperm.xlu1 %7452, %v8682_v14  }
  0xf2   :  { %7453 = vset.pattern.permute.xlu1 %v8585_v10 }
  0xf3   :  { %1022 = vperm.xlu1 %7453, %v8682_v14  }
  0xf7   :  { %7455 = vset.pattern.permute.xlu1 %v8587_v12 }
  0xf8   :  { %1034 = vperm.xlu1 %7455, %v8682_v14  }
  0xfc   :  { %7456 = vset.pattern.permute.xlu1 %v8588_v13 }
  0xfd   :  { %1040 = vperm.xlu1 %7456, %v8682_v14  }
 0x101   :  { %7458 = vset.pattern.permute.xlu1 %v8581_v1 }
 0x102   :  { %1471 = vperm.xlu1 %7458, %v8691_v16  }
 0x106   :  { %7459 = vset.pattern.permute.xlu1 %v8582_v4 }
 0x107   :  { %1476 = vperm.xlu1 %7459, %v8691_v16  }
 0x10b   :  { %7461 = vset.pattern.permute.xlu1 %v8585_v10 }
 0x10c   :  { %1488 = vperm.xlu1 %7461, %v8691_v16  }
 0x110   :  { %7462 = vset.pattern.permute.xlu1 %v8586_v11 }
 0x111   :  { %1494 = vperm.xlu1 %7462, %v8691_v16  }
 0x115   :  { %7464 = vset.pattern.permute.xlu1 %v8588_v13 }
 0x116   :  { %1506 = vperm.xlu1 %7464, %v8691_v16  }
 0x11a   :  { %7465 = vset.pattern.permute.xlu1 %v8589_v15 }
 0x11b   :  { %1512 = vperm.xlu1 %7465, %v8691_v16  }
 0x11f   :  { %7467 = vset.pattern.permute.xlu1 %v8582_v4  ;;  %v8886_v2 = vpop.permute.xlu1 %56 }
 0x120   :  { %1942 = vperm.xlu1 %7467, %v8698_v17   ;;  %v185_v8 = vsel %vm184_vm4, %v8886_v2, 0.0 }
 0x124   :  { %7468 = vset.pattern.permute.xlu1 %v8584_v9  ;;  %v8894_v7 = vpop.permute.xlu1 %66 }
 0x125   :  { %1948 = vperm.xlu1 %7468, %v8698_v17   ;;  %v190_v14 = vadd.f32 %v185_v8, %v8894_v7 }
 0x127   :  { %v191_v21 = vsel %vm189_vm5, %v190_v14, %v185_v8 }
 0x129   :  { %7470 = vset.pattern.permute.xlu1 %v8586_v11  ;;  %v8900_v16 = vpop.permute.xlu1 %76 }
 0x12a   :  { %1960 = vperm.xlu1 %7470, %v8698_v17   ;;  %v196_v22 = vadd.f32 %v191_v21, %v8900_v16 }
 0x12c   :  { %v197_v24 = vsel %vm195_vm6, %v196_v22, %v191_v21  ;;  %v7571_v22 = vld [vmem:[%s11405_s2 + $0x220] ss:$24 sps:$4 sm:$0xff]  }
 0x12e   :  { %7471 = vset.pattern.permute.xlu1 %v8587_v12  ;;  %v8906_v23 = vpop.permute.xlu1 %86 }
 0x12f   :  { %1966 = vperm.xlu1 %7471, %v8698_v17   ;;  %v202_v25 = vadd.f32 %v197_v24, %v8906_v23 }
 0x131   :  { %v203_v27 = vsel %vm201_vm7, %v202_v25, %v197_v24  ;;  %v7576_v24 = vld [vmem:[%s11405_s2 + $0x94] ss:$24 sps:$4 sm:$0xff]   ;;  %v7574_v25 = vld [vmem:[%s11405_s2 + $0x90] ss:$24 sps:$4 sm:$0xff]  }
 0x133   :  { %7473 = vset.pattern.permute.xlu1 %v8589_v15  ;;  %v8912_v26 = vpop.permute.xlu1 %96 }
 0x134   :  { %1978 = vperm.xlu1 %7473, %v8698_v17   ;;  %v208_v28 = vadd.f32 %v203_v27, %v8912_v26  ;;  %v218_v17 = vpop.permute.xlu0 %217 }
 0x135   :  { %vm219_vm10 = vcmp.eq.s32.totalorder %v8890_v3, %v218_v17 }
 0x136   :  { %v209_v30 = vsel %vm207_vm8, %v208_v28, %v203_v27  ;;  %v7579_v28 = vld [vmem:[%s11405_s2 + $0x1f4] ss:$24 sps:$4 sm:$0xff]  }
 0x138   :  { %7474 = vset.pattern.permute.xlu1 %v8581_v1  ;;  %v8918_v29 = vpop.permute.xlu1 %106  ;;  %v52_v37 = vpop.permute.xlu0 %51 }
 0x139   :  { %2403 = vperm.xlu1 %7474, %v8707_v18   ;;  %v214_v31 = vadd.f32 %v209_v30, %v8918_v29  ;;  %vm53_vm11 = vcmp.eq.s32.totalorder %v8890_v3, %v52_v37  ;;  %v7580_v37 = vld [vmem:[%s11405_s2 + $0x60] ss:$24 sps:$4 sm:$0xff]  }
 0x13a   :  { %v60_v46 = vsel %vm53_vm11, %v8886_v2, 0.0 }
 0x13b   :  { %v215_v33 = vsel %vm213_vm9, %v214_v31, %v209_v30  ;;  %v69_v48 = vadd.f32 %v8894_v7, %v60_v46  ;;  %v7582_v30 = vld [vmem:[%s11405_s2 + $0x64] ss:$24 sps:$4 sm:$0xff]  }
 0x13c   :  { %v83_v59 = vpop.permute.xlu0 %82 }
 0x13d   :  { %7476 = vset.pattern.permute.xlu1 %v8584_v9  ;;  %v8924_v32 = vpop.permute.xlu1 %116  ;;  %vm84_vm15 = vcmp.eq.s32.totalorder %v8890_v3, %v83_v59  ;;  %v7607_v59 = vld [vmem:[%s11405_s2 + $0xf8] ss:$24 sps:$4 sm:$0xff]  }
 0x13e   :  { %2414 = vperm.xlu1 %7476, %v8707_v18   ;;  %v220_v34 = vadd.f32 %v215_v33, %v8924_v32 }
 0x140   :  { %v221_v36 = vsel %vm219_vm10, %v220_v34, %v215_v33  ;;  %v7577_v33 = vld [vmem:[%s11405_s2 + $0x1f0] ss:$24 sps:$4 sm:$0xff]   ;;  %v113_v34 = vpop.permute.xlu0 %112 }
 0x141   :  { %vm114_vm2 = vcmp.eq.s32.totalorder %v8890_v3, %v113_v34 }
 0x142   :  { %7477 = vset.pattern.permute.xlu1 %v8585_v10  ;;  %v8931_v35 = vpop.permute.xlu1 %126 }
 0x143   :  { %2420 = vperm.xlu1 %7477, %v8707_v18   ;;  %v226_v39 = vadd.f32 %v221_v36, %v8931_v35 }
 0x146   :  { %v224_v38 = vpop.permute.xlu1 %223 }
 0x147   :  { %vm225_vm12 = vcmp.eq.s32.totalorder %v8890_v3, %v224_v38  ;;  %7479 = vset.pattern.permute.xlu1 %v8587_v12  ;;  %v7585_v38 = vld [vmem:[%s11405_s2 + $0x1c4] ss:$24 sps:$4 sm:$0xff]  }
 0x148   :  { %v227_v43 = vsel %vm225_vm12, %v226_v39, %v221_v36  ;;  %2432 = vperm.xlu1 %7479, %v8707_v18  }
 0x149   :  { %v8951_v45 = vpack.c.bf16 %v227_v43, %v227_v43  ;;  %v7591_v43 = vld [vmem:[%s11405_s2 + $0x194] ss:$24 sps:$4 sm:$0xff]  }
 0x14b   :  { %v63_v47 = vpop.permute.xlu1 %62  ;;  %550 = vmatmul.mubr.bf16.vlgmr.msra.gmra.mxu0 %v8951_v45  ;;  %591 = vmatmul.mubr.bf16.vlgmr.msra.gmra.mxu1 %v8951_v45 }
 0x14c   :  { %vm64_vm13 = vcmp.eq.s32.totalorder %v8890_v3, %v63_v47  ;;  %600 = vmatpush1.bf16.msra.mxu0 %v7547_v40  ;;  %881 = vmatpush1.bf16.msra.mxu1 %v7550_v41  ;;  %v7583_v40 = vld [vmem:[%s11405_s2 + $0x1c0] ss:$24 sps:$4 sm:$0xff]   ;;  %v7586_v41 = vld [vmem:[%s11405_s2 + $0x30] ss:$24 sps:$4 sm:$0xff]  }
 0x14d   :  { %v70_v53 = vsel %vm64_vm13, %v69_v48, %v60_v46  ;;  %7480 = vset.pattern.permute.xlu1 %v8588_v13  ;;  %601 = vmatprep.subr.bf16.mxu0 %v7555_v42  ;;  %v7589_v48 = vld [vmem:[%s11405_s2 + $0x190] ss:$24 sps:$4 sm:$0xff]  }
 0x14e   :  { %2438 = vperm.xlu1 %7480, %v8707_v18   ;;  %882 = vmatprep.subr.bf16.mxu1 %v7558_v44  ;;  %v79_v56 = vadd.f32 %v8900_v16, %v70_v53  ;;  %v7567_v18 = vld [vmem:[%s11405_s2 + $0x254] ss:$24 sps:$4 sm:$0xff]   ;;  %v7594_v44 = vld [vmem:[%s11405_s2 + $0x4] ss:$24 sps:$4 sm:$0xff]  }
 0x14f   :  { %631 = vmatprep.mubr.bf16.mxu0 %v8581_v1  ;;  %912 = vmatprep.mubr.bf16.mxu1 %v8581_v1 }
 0x150   :  { %602 = vmatpush1.bf16.msra.mxu0 %v7553_v49  ;;  %883 = vmatpush1.bf16.msra.mxu1 %v7556_v50  ;;  %v73_v57 = vpop.permute.xlu1 %72  ;;  %v7592_v49 = vld [vmem:[%s11405_s2] ss:$24 sps:$4 sm:$0xff]   ;;  %v7597_v50 = vld [vmem:[%s11405_s2 + $0x15c] ss:$24 sps:$4 sm:$0xff]  }
 0x151   :  { %vm74_vm14 = vcmp.eq.s32.totalorder %v8890_v3, %v73_v57  ;;  %603 = vmatprep.subr.bf16.mxu0 %v7561_v51  ;;  %884 = vmatprep.subr.bf16.mxu1 %v7564_v52  ;;  %v7600_v51 = vld [vmem:[%s11405_s2 + $0x164] ss:$24 sps:$4 sm:$0xff]   ;;  %v7601_v57 = vld [vmem:[%s11405_s2 + $0x128] ss:$24 sps:$4 sm:$0xff]  }
 0x152   :  { %v80_v60 = vsel %vm74_vm14, %v79_v56, %v70_v53  ;;  %7482 = vset.pattern.permute.xlu1 %v8581_v1  ;;  %v7595_v53 = vld [vmem:[%s11405_s2 + $0x158] ss:$24 sps:$4 sm:$0xff]   ;;  %v7606_v56 = vld [vmem:[%s11405_s2 + $0x134] ss:$24 sps:$4 sm:$0xff]  }
 0x153   :  { %v89_v61 = vadd.f32 %v8906_v23, %v80_v60  ;;  %2869 = vperm.xlu1 %7482, %v8716_v19  }
 0x154   :  { %604 = vmatpush1.bf16.msra.mxu0 %v7559_v54  ;;  %885 = vmatpush1.bf16.msra.mxu1 %v7562_v55  ;;  %v7598_v54 = vld [vmem:[%s11405_s2 + $0x160] ss:$24 sps:$4 sm:$0xff]  }
 0x155   :  { %v93_v8 = vpop.permute.xlu1 %92  ;;  %v90_v14 = vsel %vm84_vm15, %v89_v61, %v80_v60  ;;  %605 = vmatprep.subr.bf16.mxu0 %v7567_v18  ;;  %886 = vmatprep.subr.bf16.mxu1 %v7570_v58  ;;  %v7604_v18 = vld [vmem:[%s11405_s2 + $0x130] ss:$24 sps:$4 sm:$0xff]   ;;  %v7610_v60 = vld [vmem:[%s11405_s2 + $0x100] ss:$24 sps:$4 sm:$0xff]   ;;  %v7615_v61 = vld [vmem:[%s11405_s2 + $0xcc] ss:$24 sps:$4 sm:$0xff]  }
 0x156   :  { %vm94_vm0 = vcmp.eq.s32.totalorder %v8890_v3, %v93_v8  ;;  %v99_v21 = vadd.f32 %v8912_v26, %v90_v14  ;;  %v7621_v8 = vld [vmem:[%s11405_s2 + $0x9c] ss:$24 sps:$4 sm:$0xff]  }
 0x157   :  { %7483 = vset.pattern.permute.xlu1 %v8582_v4 }
 0x158   :  { %v100_v27 = vsel %vm94_vm0, %v99_v21, %v90_v14  ;;  %2874 = vperm.xlu1 %7483, %v8716_v19   ;;  %606 = vmatpush1.bf16.msra.mxu0 %v7565_v62  ;;  %v7613_v62 = vld [vmem:[%s11405_s2 + $0xc8] ss:$24 sps:$4 sm:$0xff]   ;;  %v7624_v14 = vld [vmem:[%s11405_s2 + $0xa4] ss:$24 sps:$4 sm:$0xff]   ;;  %v1011_v21 = vpop.permute.xlu0 %1010 }
 0x159   :  { %v109_v31 = vadd.f32 %v8918_v29, %v100_v27  ;;  %887 = vmatpush1.bf16.msra.mxu1 %v7568_v63  ;;  %607 = vmatprep.subr.bf16.mxu0 %v7573_v6  ;;  %v7616_v63 = vld [vmem:[%s11405_s2 + $0xd0] ss:$24 sps:$4 sm:$0xff]   ;;  %vm1012_vm5 = vcmp.eq.s32.totalorder %v8890_v3, %v1011_v21 }
 0x15a   :  { %v103_v17 = vpop.permute.xlu1 %102  ;;  %888 = vmatprep.subr.bf16.mxu1 %v7576_v24  ;;  %v7622_v24 = vld [vmem:[%s11405_s2 + $0xa0] ss:$24 sps:$4 sm:$0xff]  }
 0x15b   :  { %vm104_vm1 = vcmp.eq.s32.totalorder %v8890_v3, %v103_v17  ;;  %v7628_v17 = vld [vmem:[%s11405_s2 + $0x70] ss:$24 sps:$4 sm:$0xff]  }
 0x15c   :  { %v110_v36 = vsel %vm104_vm1, %v109_v31, %v100_v27  ;;  %7485 = vset.pattern.permute.xlu1 %v8585_v10  ;;  %608 = vmatpush1.bf16.msra.mxu0 %v7571_v22  ;;  %v7588_v10 = vld [vmem:[%s11405_s2 + $0x34] ss:$24 sps:$4 sm:$0xff]   ;;  %v7625_v31 = vld [vmem:[%s11405_s2 + $0x68] ss:$24 sps:$4 sm:$0xff]   ;;  %v7670_v21 = vld [vmem:[%s11405_s2 + $0x398] ss:$24 sps:$4 sm:$0xff]  }
 0x15d   :  { %v119_v39 = vadd.f32 %v8924_v32, %v110_v36  ;;  %889 = vmatpush1.bf16.msra.mxu1 %v7574_v25  ;;  %2886 = vperm.xlu1 %7485, %v8716_v19   ;;  %v7627_v25 = vld [vmem:[%s11405_s2 + $0x6c] ss:$24 sps:$4 sm:$0xff]  }
 0x15e   :  { %609 = vmatprep.subr.bf16.mxu0 %v7579_v28  ;;  %890 = vmatprep.subr.bf16.mxu1 %v7582_v30  ;;  %v7630_v27 = vld [vmem:[%s11405_s2 + $0x74] ss:$24 sps:$4 sm:$0xff]  }
 0x15f   :  { %v120_v42 = vsel %vm114_vm2, %v119_v39, %v110_v36  ;;  %v123_v46 = vpop.permute.xlu1 %122  ;;  %v7631_v36 = vld [vmem:[%s11405_s2 + $0x38] ss:$24 sps:$4 sm:$0xff]   ;;  %v7642_v39 = vld [vmem:[%s11405_s2 + $0x14] ss:$24 sps:$4 sm:$0xff]  }
 0x160   :  { %610 = vmatpush1.bf16.msra.mxu0 %v7577_v33  ;;  %v129_v47 = vadd.f32 %v8931_v35, %v120_v42  ;;  %vm124_vm3 = vcmp.eq.s32.totalorder %v8890_v3, %v123_v46  ;;  %v7636_v33 = vld [vmem:[%s11405_s2 + $0x44] ss:$24 sps:$4 sm:$0xff]   ;;  %v7646_v46 = vld [vmem:[%s11405_s2 + $0x458] ss:$24 sps:$4 sm:$0xff]  }
 0x161   :  { %891 = vmatpush1.bf16.msra.mxu1 %v7580_v37  ;;  %7486 = vset.pattern.permute.xlu1 %v8586_v11 }
 0x162   :  { %2892 = vperm.xlu1 %7486, %v8716_v19   ;;  %611 = vmatprep.subr.bf16.mxu0 %v7585_v38  ;;  %v130_v52 = vsel %vm124_vm3, %v129_v47, %v120_v42  ;;  %v7634_v38 = vld [vmem:[%s11405_s2 + $0x40] ss:$24 sps:$4 sm:$0xff]   ;;  %v7640_v42 = vld [vmem:[%s11405_s2 + $0x10] ss:$24 sps:$4 sm:$0xff]   ;;  %v7651_v47 = vld [vmem:[%s11405_s2 + $0x424] ss:$24 sps:$4 sm:$0xff]  }
 0x163   :  { %892 = vmatprep.subr.bf16.mxu1 %v7588_v10  ;;  %v9074_v55 = vpack.c.bf16 %v130_v52, %v130_v52  ;;  %v1029_v52 = vpop.permute.xlu0 %1028 }
 0x164   :  { %612 = vmatpush1.bf16.msra.mxu0 %v7583_v40  ;;  %v1006_v58 = vpop.permute.xlu1 %1005  ;;  %v7637_v40 = vld [vmem:[%s11405_s2 + $0x8] ss:$24 sps:$4 sm:$0xff]   ;;  %vm1030_vm8 = vcmp.eq.s32.totalorder %v8890_v3, %v1029_v52 }
 0x165   :  { %893 = vmatpush1.bf16.msra.mxu1 %v7586_v41  ;;  %613 = vmatprep.subr.bf16.mxu0 %v7591_v43  ;;  %vm1007_vm4 = vcmp.eq.s32.totalorder %v8890_v3, %v1006_v58  ;;  %v7645_v43 = vld [vmem:[%s11405_s2 + $0x454] ss:$24 sps:$4 sm:$0xff]  }
 0x166   :  { %7488 = vset.pattern.permute.xlu1 %v8588_v13  ;;  %894 = vmatprep.subr.bf16.mxu1 %v7594_v44  ;;  %v7603_v13 = vld [vmem:[%s11405_s2 + $0x12c] ss:$24 sps:$4 sm:$0xff]   ;;  %v1008_v6 = vsel %vm1007_vm4, %v8886_v2, 0.0 }
 0x167   :  { %2904 = vperm.xlu1 %7488, %v8716_v19   ;;  %v1013_v22 = vadd.f32 %v1008_v6, %v8894_v7  ;;  %v7666_v58 = vld [vmem:[%s11405_s2 + $0x3cc] ss:$24 sps:$4 sm:$0xff]  }
 0x168   :  { %614 = vmatpush1.bf16.msra.mxu0 %v7589_v48 }
 0x169   :  { %895 = vmatpush1.bf16.msra.mxu1 %v7592_v49  ;;  %921 = vmatprep.subr.bf16.mxu0 %v7597_v50  ;;  %v1017_v28 = vpop.permute.xlu1 %1016  ;;  %v1014_v30 = vsel %vm1012_vm5, %v1013_v22, %v1008_v6  ;;  %v7654_v49 = vld [vmem:[%s11405_s2 + $0x42c] ss:$24 sps:$4 sm:$0xff]  }
 0x16a   :  { %962 = vmatprep.subr.bf16.mxu1 %v7600_v51  ;;  %v1019_v34 = vadd.f32 %v1014_v30, %v8900_v16  ;;  %vm1018_vm6 = vcmp.eq.s32.totalorder %v8890_v3, %v1017_v28  ;;  %v7649_v51 = vld [vmem:[%s11405_s2 + $0x420] ss:$24 sps:$4 sm:$0xff]   ;;  %v7675_v22 = vld [vmem:[%s11405_s2 + $0x364] ss:$24 sps:$4 sm:$0xff]  }
 0x16b   :  { %7489 = vset.pattern.permute.xlu1 %v8589_v15  ;;  %632 = vmatmul.mubr.bf16.vlgmr.msra.gmra.mxu0 %v8951_v45  ;;  %v7609_v45 = vld [vmem:[%s11405_s2 + $0xfc] ss:$24 sps:$4 sm:$0xff]   ;;  %v7673_v28 = vld [vmem:[%s11405_s2 + $0x360] ss:$24 sps:$4 sm:$0xff]  }
 0x16c   :  { %913 = vmatmul.mubr.bf16.vlgmr.msra.gmra.mxu1 %v9074_v55  ;;  %2910 = vperm.xlu1 %7489, %v8716_v19   ;;  %v7612_v19 = vld [vmem:[%s11405_s2 + $0x104] ss:$24 sps:$4 sm:$0xff]   ;;  %v1020_v10 = vsel %vm1018_vm6, %v1019_v34, %v1014_v30 }
 0x16d   :  { %922 = vmatpush1.bf16.msra.mxu0 %v7595_v53  ;;  %963 = vmatpush1.bf16.msra.mxu1 %v7598_v54  ;;  %v1025_v44 = vadd.f32 %v1020_v10, %v8906_v23  ;;  %v7652_v54 = vld [vmem:[%s11405_s2 + $0x428] ss:$24 sps:$4 sm:$0xff]  }
 0x16e   :  { %923 = vmatprep.subr.bf16.mxu0 %v7603_v13  ;;  %964 = vmatprep.subr.bf16.mxu1 %v7606_v56  ;;  %v1023_v37 = vpop.permute.xlu1 %1022  ;;  %v7657_v13 = vld [vmem:[%s11405_s2 + $0x3f4] ss:$24 sps:$4 sm:$0xff]   ;;  %v7655_v56 = vld [vmem:[%s11405_s2 + $0x3f0] ss:$24 sps:$4 sm:$0xff]  }
 0x16f   :  { %953 = vmatprep.mubr.bf16.mxu0 %v8581_v1  ;;  %994 = vmatprep.mubr.bf16.mxu1 %v8581_v1  ;;  %vm1024_vm7 = vcmp.eq.s32.totalorder %v8890_v3, %v1023_v37  ;;  %v7679_v37 = vld [vmem:[%s11405_s2 + $0x330] ss:$24 sps:$4 sm:$0xff]  }
 0x170   :  { %7491 = vset.pattern.permute.xlu1 %v8582_v4  ;;  %v7618_v4 = vld [vmem:[%s11405_s2 + $0xd4] ss:$24 sps:$4 sm:$0xff]   ;;  %v1026_v48 = vsel %vm1024_vm7, %v1025_v44, %v1020_v10  ;;  %v7693_v44 = vld [vmem:[%s11405_s2 + $0x464] ss:$24 sps:$4 sm:$0xff]  }
 0x171   :  { %924 = vmatpush1.bf16.msra.mxu0 %v7601_v57  ;;  %965 = vmatpush1.bf16.msra.mxu1 %v7604_v18  ;;  %v1031_v53 = vadd.f32 %v1026_v48, %v8912_v26  ;;  %v7690_v10 = vld [vmem:[%s11405_s2 + $0x30c] ss:$24 sps:$4 sm:$0xff]  }
 0x172   :  { %3340 = vperm.xlu1 %7491, %v8723_v20   ;;  %925 = vmatprep.subr.bf16.mxu0 %v7609_v45  ;;  %v7658_v45 = vld [vmem:[%s11405_s2 + $0x3f8] ss:$24 sps:$4 sm:$0xff]  }
 0x173   :  { %966 = vmatprep.subr.bf16.mxu1 %v7612_v19  ;;  %v1035_v41 = vpop.permute.xlu1 %1034  ;;  %v1032_v57 = vsel %vm1030_vm8, %v1031_v53, %v1026_v48  ;;  %v7663_v19 = vld [vmem:[%s11405_s2 + $0x3c4] ss:$24 sps:$4 sm:$0xff]  }
 0x174   :  { %vm1036_vm9 = vcmp.eq.s32.totalorder %v8890_v3, %v1035_v41  ;;  %v7685_v41 = vld [vmem:[%s11405_s2 + $0x300] ss:$24 sps:$4 sm:$0xff]  }
 0x175   :  { %926 = vmatpush1.bf16.msra.mxu0 %v7607_v59  ;;  %967 = vmatpush1.bf16.msra.mxu1 %v7610_v60  ;;  %v1037_v59 = vadd.f32 %v1032_v57, %v8918_v29  ;;  %v7661_v60 = vld [vmem:[%s11405_s2 + $0x3c0] ss:$24 sps:$4 sm:$0xff]  }
 0x176   :  { %7492 = vset.pattern.permute.xlu1 %v8584_v9  ;;  %927 = vmatprep.subr.bf16.mxu0 %v7615_v61  ;;  %v7619_v9 = vld [vmem:[%s11405_s2 + $0x98] ss:$24 sps:$4 sm:$0xff]   ;;  %v7664_v61 = vld [vmem:[%s11405_s2 + $0x3c8] ss:$24 sps:$4 sm:$0xff]  }
 0x177   :  { %3346 = vperm.xlu1 %7492, %v8723_v20   ;;  %968 = vmatprep.subr.bf16.mxu1 %v7618_v4  ;;  %v7669_v4 = vld [vmem:[%s11405_s2 + $0x394] ss:$24 sps:$4 sm:$0xff]   ;;  %v1038_v6 = vsel %vm1036_vm9, %v1037_v59, %v1032_v57  ;;  %v7714_v59 = vld [vmem:[%s11405_s2 + $0x544] ss:$24 sps:$4 sm:$0xff]  }
 0x178   :  { %v9202_v50 = vpop.permute.xlu1 %1040  ;;  %v7708_v57 = vld [vmem:[%s11405_s2 + $0x574] ss:$24 sps:$4 sm:$0xff]  }
 0x179   :  { %928 = vmatpush1.bf16.msra.mxu0 %v7613_v62  ;;  %969 = vmatpush1.bf16.msra.mxu1 %v7616_v63  ;;  %v7672_v62 = vld [vmem:[%s11405_s2 + $0x39c] ss:$24 sps:$4 sm:$0xff]   ;;  %vm1042_vm12 = vcmp.eq.s32.totalorder %v8890_v3, %v9202_v50 }
 0x17a   :  { %929 = vmatprep.subr.bf16.mxu0 %v7621_v8  ;;  %970 = vmatprep.subr.bf16.mxu1 %v7624_v14  ;;  %v7667_v14 = vld [vmem:[%s11405_s2 + $0x390] ss:$24 sps:$4 sm:$0xff]   ;;  %v7699_v50 = vld [vmem:[%s11405_s2 + $0x434] ss:$24 sps:$4 sm:$0xff]  }
 0x17b   :  { %7494 = vset.pattern.permute.xlu1 %v8586_v11  ;;  %v7633_v11 = vld [vmem:[%s11405_s2 + $0x3c] ss:$24 sps:$4 sm:$0xff]  }
 0x17c   :  { %3358 = vperm.xlu1 %7494, %v8723_v20  }
 0x17d   :  { %930 = vmatpush1.bf16.msra.mxu0 %v7619_v9  ;;  %971 = vmatpush1.bf16.msra.mxu1 %v7622_v24  ;;  %v1472_v18 = vpop.permute.xlu1 %1471  ;;  %v1047_v9 = vpop.permute.xlu0 %1046  ;;  %v7678_v24 = vld [vmem:[%s11405_s2 + $0x36c] ss:$24 sps:$4 sm:$0xff]  }
 0x17e   :  { %931 = vmatprep.subr.bf16.mxu0 %v7627_v25  ;;  %972 = vmatprep.subr.bf16.mxu1 %v7630_v27  ;;  %vm1473_vm10 = vcmp.eq.s32.totalorder %v8890_v3, %v1472_v18  ;;  %v1043_v25 = vadd.f32 %v1038_v6, %v8924_v32  ;;  %vm1048_vm14 = vcmp.eq.s32.totalorder %v8890_v3, %v1047_v9  ;;  %v7703_v18 = vld [vmem:[%s11405_s2 + $0x400] ss:$24 sps:$4 sm:$0xff]  }
 0x17f   :  { %v1474_v8 = vsel %vm1473_vm10, %v8886_v2, 0.0 }
 0x180   :  { %7495 = vset.pattern.permute.xlu1 %v8587_v12  ;;  %v7639_v12 = vld [vmem:[%s11405_s2 + $0xc] ss:$24 sps:$4 sm:$0xff]   ;;  %v1479_v27 = vadd.f32 %v1474_v8, %v8894_v7 }
 0x181   :  { %3364 = vperm.xlu1 %7495, %v8723_v20   ;;  %932 = vmatpush1.bf16.msra.mxu0 %v7625_v31  ;;  %v7676_v31 = vld [vmem:[%s11405_s2 + $0x368] ss:$24 sps:$4 sm:$0xff]   ;;  %v1483_v34 = vpop.permute.xlu0 %1482 }
 0x182   :  { %973 = vmatpush1.bf16.msra.mxu1 %v7628_v17  ;;  %933 = vmatprep.subr.bf16.mxu0 %v7633_v11  ;;  %v1477_v63 = vpop.permute.xlu1 %1476  ;;  %v7681_v17 = vld [vmem:[%s11405_s2 + $0x334] ss:$24 sps:$4 sm:$0xff]   ;;  %vm1484_vm13 = vcmp.eq.s32.totalorder %v8890_v3, %v1483_v34  ;;  %v7730_v34 = vld [vmem:[%s11405_s2 + $0x4b0] ss:$24 sps:$4 sm:$0xff]  }
 0x183   :  { %974 = vmatprep.subr.bf16.mxu1 %v7636_v33  ;;  %vm1478_vm11 = vcmp.eq.s32.totalorder %v8890_v3, %v1477_v63  ;;  %v7684_v11 = vld [vmem:[%s11405_s2 + $0x33c] ss:$24 sps:$4 sm:$0xff]   ;;  %v1044_v33 = vsel %vm1042_vm12, %v1043_v25, %v1038_v6 }
 0x184   :  { %v1480_v30 = vsel %vm1478_vm11, %v1479_v27, %v1474_v8  ;;  %v7717_v63 = vld [vmem:[%s11405_s2 + $0x3a4] ss:$24 sps:$4 sm:$0xff]   ;;  %v7720_v6 = vld [vmem:[%s11405_s2 + $0x514] ss:$24 sps:$4 sm:$0xff]   ;;  %v7715_v8 = vld [vmem:[%s11405_s2 + $0x3a0] ss:$24 sps:$4 sm:$0xff]  }
 0x185   :  { %934 = vmatpush1.bf16.msra.mxu0 %v7631_v36  ;;  %7497 = vset.pattern.permute.xlu1 %v8589_v15  ;;  %v7648_v15 = vld [vmem:[%s11405_s2 + $0x45c] ss:$24 sps:$4 sm:$0xff]   ;;  %v1485_v36 = vadd.f32 %v1480_v30, %v8900_v16  ;;  %v7721_v27 = vld [vmem:[%s11405_s2 + $0x370] ss:$24 sps:$4 sm:$0xff]  }
 0x186   :  { %975 = vmatpush1.bf16.msra.mxu1 %v7634_v38  ;;  %3376 = vperm.xlu1 %7497, %v8723_v20   ;;  %v7643_v20 = vld [vmem:[%s11405_s2 + $0x450] ss:$24 sps:$4 sm:$0xff]  }
 0x187   :  { %935 = vmatprep.subr.bf16.mxu0 %v7639_v12  ;;  %976 = vmatprep.subr.bf16.mxu1 %v7642_v39  ;;  %v7682_v38 = vld [vmem:[%s11405_s2 + $0x338] ss:$24 sps:$4 sm:$0xff]   ;;  %v7687_v12 = vld [vmem:[%s11405_s2 + $0x304] ss:$24 sps:$4 sm:$0xff]   ;;  %v1049_v39 = vadd.f32 %v1044_v33, %v8931_v35 }
 0x189   :  { %936 = vmatpush1.bf16.msra.mxu0 %v7637_v40  ;;  %v1486_v40 = vsel %vm1484_vm13, %v1485_v36, %v1480_v30  ;;  %v7729_v30 = vld [vmem:[%s11405_s2 + $0x344] ss:$24 sps:$4 sm:$0xff]   ;;  %v7735_v36 = vld [vmem:[%s11405_s2 + $0x314] ss:$24 sps:$4 sm:$0xff]  }
 0x18a   :  { %977 = vmatpush1.bf16.msra.mxu1 %v7640_v42  ;;  %1340 = vmatprep.subr.bf16.mxu0 %v7645_v43  ;;  %v1489_v42 = vpop.permute.xlu1 %1488  ;;  %v7688_v43 = vld [vmem:[%s11405_s2 + $0x308] ss:$24 sps:$4 sm:$0xff]  }
 0x18b   :  { %1381 = vmatprep.subr.bf16.mxu1 %v7648_v15  ;;  %v1050_v15 = vsel %vm1048_vm14, %v1049_v39, %v1044_v33  ;;  %vm1490_vm15 = vcmp.eq.s32.totalorder %v8890_v3, %v1489_v42  ;;  %v7736_v39 = vld [vmem:[%s11405_s2 + $0x480] ss:$24 sps:$4 sm:$0xff]  }
 0x18c   :  { %954 = vmatmul.mubr.bf16.vlgmr.msra.gmra.mxu0 %v9074_v55  ;;  %v9312_v48 = vpack.c.bf16 %v1050_v15, %v1050_v15  ;;  %v7739_v42 = vld [vmem:[%s11405_s2 + $0x5d8] ss:$24 sps:$4 sm:$0xff]  }
 0x18d   :  { %995 = vmatmul.mubr.bf16.vlgmr.msra.gmra.mxu1 %v9074_v55  ;;  %1341 = vmatpush1.bf16.msra.mxu0 %v7643_v20  ;;  %v7660_v55 = vld [vmem:[%s11405_s2 + $0x3fc] ss:$24 sps:$4 sm:$0xff]  }
 0x18e   :  { %1382 = vmatpush1.bf16.msra.mxu1 %v7646_v46  ;;  %1342 = vmatprep.subr.bf16.mxu0 %v7651_v47  ;;  %v7696_v20 = vld [vmem:[%s11405_s2 + $0x5d4] ss:$24 sps:$4 sm:$0xff]   ;;  %v1491_v46 = vadd.f32 %v1486_v40, %v8906_v23  ;;  %v7691_v47 = vld [vmem:[%s11405_s2 + $0x460] ss:$24 sps:$4 sm:$0xff]   ;;  %v1495_v53 = vpop.permute.xlu1 %1494 }
 0x18f   :  { %1383 = vmatprep.subr.bf16.mxu1 %v7654_v49  ;;  %1372 = vmatprep.mubr.bf16.mxu0 %v8581_v1  ;;  %v7694_v49 = vld [vmem:[%s11405_s2 + $0x5d0] ss:$24 sps:$4 sm:$0xff]   ;;  %vm1496_vm0 = vcmp.eq.s32.totalorder %v8890_v3, %v1495_v53  ;;  %v7762_v53 = vld [vmem:[%s11405_s2 + $0x554] ss:$24 sps:$4 sm:$0xff]  }
 0x190   :  { %1413 = vmatprep.mubr.bf16.mxu1 %v8581_v1  ;;  %v1492_v52 = vsel %vm1490_vm15, %v1491_v46, %v1486_v40  ;;  %v7744_v40 = vld [vmem:[%s11405_s2 + $0x5e4] ss:$24 sps:$4 sm:$0xff]   ;;  %v7745_v46 = vld [vmem:[%s11405_s2 + $0x5a8] ss:$24 sps:$4 sm:$0xff]  }
 0x191   :  { %1343 = vmatpush1.bf16.msra.mxu0 %v7649_v51  ;;  %v7702_v51 = vld [vmem:[%s11405_s2 + $0x5a4] ss:$24 sps:$4 sm:$0xff]  }
 0x192   :  { %1384 = vmatpush1.bf16.msra.mxu1 %v7652_v54  ;;  %1344 = vmatprep.subr.bf16.mxu0 %v7657_v13  ;;  %v7697_v54 = vld [vmem:[%s11405_s2 + $0x430] ss:$24 sps:$4 sm:$0xff]   ;;  %v7700_v13 = vld [vmem:[%s11405_s2 + $0x5a0] ss:$24 sps:$4 sm:$0xff]   ;;  %v1507_v9 = vpop.permute.xlu1 %1506 }
 0x193   :  { %1385 = vmatprep.subr.bf16.mxu1 %v7660_v55  ;;  %v7705_v55 = vld [vmem:[%s11405_s2 + $0x404] ss:$24 sps:$4 sm:$0xff]   ;;  %vm1508_vm2 = vcmp.eq.s32.totalorder %v8890_v3, %v1507_v9 }
 0x195   :  { %1345 = vmatpush1.bf16.msra.mxu0 %v7655_v56  ;;  %v1497_v56 = vadd.f32 %v1492_v52, %v8912_v26 }
 0x196   :  { %1386 = vmatpush1.bf16.msra.mxu1 %v7658_v45  ;;  %1346 = vmatprep.subr.bf16.mxu0 %v7663_v19  ;;  %v7706_v45 = vld [vmem:[%s11405_s2 + $0x570] ss:$24 sps:$4 sm:$0xff]   ;;  %v7711_v19 = vld [vmem:[%s11405_s2 + $0x3d4] ss:$24 sps:$4 sm:$0xff]   ;;  %v1513_v33 = vpop.permute.xlu1 %1512 }
 0x197   :  { %1387 = vmatprep.subr.bf16.mxu1 %v7666_v58  ;;  %v1498_v58 = vsel %vm1496_vm0, %v1497_v56, %v1492_v52  ;;  %vm1514_vm3 = vcmp.eq.s32.totalorder %v8890_v3, %v1513_v33  ;;  %v7759_v52 = vld [vmem:[%s11405_s2 + $0x54c] ss:$24 sps:$4 sm:$0xff]  }
 0x199   :  { %1347 = vmatpush1.bf16.msra.mxu0 %v7661_v60  ;;  %v7709_v60 = vld [vmem:[%s11405_s2 + $0x3d0] ss:$24 sps:$4 sm:$0xff]  }
 0x19a   :  { %1388 = vmatpush1.bf16.msra.mxu1 %v7664_v61  ;;  %1348 = vmatprep.subr.bf16.mxu0 %v7669_v4  ;;  %v1501_v61 = vpop.permute.xlu0 %1500  ;;  %v1503_v4 = vadd.f32 %v1498_v58, %v8918_v29 }
 0x19b   :  { %1389 = vmatprep.subr.bf16.mxu1 %v7672_v62  ;;  %v7712_v62 = vld [vmem:[%s11405_s2 + $0x540] ss:$24 sps:$4 sm:$0xff]   ;;  %vm1502_vm1 = vcmp.eq.s32.totalorder %v8890_v3, %v1501_v61  ;;  %v1943_v56 = vpop.permute.xlu1 %1942 }
 0x19c   :  { %vm1944_vm5 = vcmp.eq.s32.totalorder %v8890_v3, %v1943_v56  ;;  %v7816_v56 = vld [vmem:[%s11405_s2 + $0x69c] ss:$24 sps:$4 sm:$0xff]  }
 0x19d   :  { %1349 = vmatpush1.bf16.msra.mxu0 %v7667_v14  ;;  %v1504_v14 = vsel %vm1502_vm1, %v1503_v4, %v1498_v58  ;;  %v7771_v58 = vld [vmem:[%s11405_s2 + $0x4ec] ss:$24 sps:$4 sm:$0xff]  }
 0x19e   :  { %1390 = vmatpush1.bf16.msra.mxu1 %v7670_v21  ;;  %1350 = vmatprep.subr.bf16.mxu0 %v7675_v22  ;;  %v7718_v21 = vld [vmem:[%s11405_s2 + $0x510] ss:$24 sps:$4 sm:$0xff]   ;;  %v7723_v22 = vld [vmem:[%s11405_s2 + $0x374] ss:$24 sps:$4 sm:$0xff]   ;;  %v1509_v25 = vadd.f32 %v1504_v14, %v8924_v32 }
 0x19f   :  { %1391 = vmatprep.subr.bf16.mxu1 %v7678_v24  ;;  %v7726_v24 = vld [vmem:[%s11405_s2 + $0x4e4] ss:$24 sps:$4 sm:$0xff]  }
 0x1a0   :  { %v1949_v4 = vpop.permute.xlu1 %1948 }
 0x1a1   :  { %1351 = vmatpush1.bf16.msra.mxu0 %v7673_v28  ;;  %v7724_v28 = vld [vmem:[%s11405_s2 + $0x4e0] ss:$24 sps:$4 sm:$0xff]   ;;  %vm1950_vm6 = vcmp.eq.s32.totalorder %v8890_v3, %v1949_v4 }
 0x1a2   :  { %1392 = vmatpush1.bf16.msra.mxu1 %v7676_v31  ;;  %1352 = vmatprep.subr.bf16.mxu0 %v7681_v17  ;;  %v7732_v31 = vld [vmem:[%s11405_s2 + $0x4b4] ss:$24 sps:$4 sm:$0xff]   ;;  %v1510_v17 = vsel %vm1508_vm2, %v1509_v25, %v1504_v14  ;;  %v7780_v14 = vld [vmem:[%s11405_s2 + $0x4c4] ss:$24 sps:$4 sm:$0xff]   ;;  %v7817_v4 = vld [vmem:[%s11405_s2 + $0x660] ss:$24 sps:$4 sm:$0xff]  }
 0x1a3   :  { %1393 = vmatprep.subr.bf16.mxu1 %v7684_v11  ;;  %v7727_v11 = vld [vmem:[%s11405_s2 + $0x340] ss:$24 sps:$4 sm:$0xff]   ;;  %v7783_v25 = vld [vmem:[%s11405_s2 + $0x48c] ss:$24 sps:$4 sm:$0xff]  }
 0x1a5   :  { %1353 = vmatpush1.bf16.msra.mxu0 %v7679_v37  ;;  %v7738_v37 = vld [vmem:[%s11405_s2 + $0x484] ss:$24 sps:$4 sm:$0xff]  }
 0x1a6   :  { %1394 = vmatpush1.bf16.msra.mxu1 %v7682_v38  ;;  %1354 = vmatprep.subr.bf16.mxu0 %v7687_v12  ;;  %v1515_v38 = vadd.f32 %v1510_v17, %v8931_v35  ;;  %v7733_v12 = vld [vmem:[%s11405_s2 + $0x310] ss:$24 sps:$4 sm:$0xff]  }
 0x1a7   :  { %1395 = vmatprep.subr.bf16.mxu1 %v7690_v10  ;;  %v7741_v10 = vld [vmem:[%s11405_s2 + $0x5dc] ss:$24 sps:$4 sm:$0xff]  }
 0x1a9   :  { %1355 = vmatpush1.bf16.msra.mxu0 %v7685_v41  ;;  %v1516_v41 = vsel %vm1514_vm3, %v1515_v38, %v1510_v17  ;;  %v7789_v17 = vld [vmem:[%s11405_s2 + $0x754] ss:$24 sps:$4 sm:$0xff]   ;;  %v7790_v38 = vld [vmem:[%s11405_s2 + $0x758] ss:$24 sps:$4 sm:$0xff]  }
 0x1aa   :  { %1396 = vmatpush1.bf16.msra.mxu1 %v7688_v43  ;;  %1422 = vmatprep.subr.bf16.mxu0 %v7693_v44  ;;  %v7742_v43 = vld [vmem:[%s11405_s2 + $0x5e0] ss:$24 sps:$4 sm:$0xff]   ;;  %v7747_v44 = vld [vmem:[%s11405_s2 + $0x5ac] ss:$24 sps:$4 sm:$0xff]   ;;  %v9428_v15 = vpack.c.bf16 %v1516_v41, %v1516_v41 }
 0x1ab   :  { %1806 = vmatprep.subr.bf16.mxu1 %v7696_v20  ;;  %v7750_v20 = vld [vmem:[%s11405_s2 + $0x5b4] ss:$24 sps:$4 sm:$0xff]   ;;  %v7793_v41 = vld [vmem:[%s11405_s2 + $0x720] ss:$24 sps:$4 sm:$0xff]  }
 0x1ac   :  { %1373 = vmatmul.mubr.bf16.vlgmr.msra.gmra.mxu0 %v9312_v48 }
 0x1ad   :  { %1414 = vmatmul.mubr.bf16.vlgmr.msra.gmra.mxu1 %v9312_v48  ;;  %1423 = vmatpush1.bf16.msra.mxu0 %v7691_v47  ;;  %v7748_v47 = vld [vmem:[%s11405_s2 + $0x5b0] ss:$24 sps:$4 sm:$0xff]  }
 0x1ae   :  { %1807 = vmatpush1.bf16.msra.mxu1 %v7694_v49  ;;  %1424 = vmatprep.subr.bf16.mxu0 %v7699_v50  ;;  %v7753_v49 = vld [vmem:[%s11405_s2 + $0x57c] ss:$24 sps:$4 sm:$0xff]   ;;  %v7751_v50 = vld [vmem:[%s11405_s2 + $0x578] ss:$24 sps:$4 sm:$0xff]  }
 0x1af   :  { %1808 = vmatprep.subr.bf16.mxu1 %v7702_v51  ;;  %1454 = vmatprep.mubr.bf16.mxu0 %v8581_v1  ;;  %v7754_v51 = vld [vmem:[%s11405_s2 + $0x580] ss:$24 sps:$4 sm:$0xff]  }
 0x1b0   :  { %1838 = vmatprep.mubr.bf16.mxu1 %v8581_v1 }
 0x1b1   :  { %1425 = vmatpush1.bf16.msra.mxu0 %v7697_v54  ;;  %v7757_v54 = vld [vmem:[%s11405_s2 + $0x548] ss:$24 sps:$4 sm:$0xff]  }
 0x1b2   :  { %1809 = vmatpush1.bf16.msra.mxu1 %v7700_v13  ;;  %1426 = vmatprep.subr.bf16.mxu0 %v7705_v55  ;;  %v7760_v13 = vld [vmem:[%s11405_s2 + $0x550] ss:$24 sps:$4 sm:$0xff]   ;;  %v7765_v55 = vld [vmem:[%s11405_s2 + $0x51c] ss:$24 sps:$4 sm:$0xff]  }
 0x1b3   :  { %1810 = vmatprep.subr.bf16.mxu1 %v7708_v57  ;;  %v7768_v57 = vld [vmem:[%s11405_s2 + $0x524] ss:$24 sps:$4 sm:$0xff]  }
 0x1b5   :  { %1427 = vmatpush1.bf16.msra.mxu0 %v7703_v18  ;;  %v1938_v18 = vpop.permute.xlu0 %1937 }
 0x1b6   :  { %1811 = vmatpush1.bf16.msra.mxu1 %v7706_v45  ;;  %1428 = vmatprep.subr.bf16.mxu0 %v7711_v19  ;;  %vm1939_vm4 = vcmp.eq.s32.totalorder %v8890_v3, %v1938_v18  ;;  %v7763_v45 = vld [vmem:[%s11405_s2 + $0x518] ss:$24 sps:$4 sm:$0xff]  }
 0x1b7   :  { %1812 = vmatprep.subr.bf16.mxu1 %v7714_v59  ;;  %v7766_v19 = vld [vmem:[%s11405_s2 + $0x520] ss:$24 sps:$4 sm:$0xff]   ;;  %v7774_v59 = vld [vmem:[%s11405_s2 + $0x4f4] ss:$24 sps:$4 sm:$0xff]   ;;  %v7811_v18 = vld [vmem:[%s11405_s2 + $0x690] ss:$24 sps:$4 sm:$0xff]  }
 0x1b9   :  { %1429 = vmatpush1.bf16.msra.mxu0 %v7709_v60  ;;  %v1940_v60 = vsel %vm1939_vm4, %v8886_v2, 0.0 }
 0x1ba   :  { %1813 = vmatpush1.bf16.msra.mxu1 %v7712_v62  ;;  %1430 = vmatprep.subr.bf16.mxu0 %v7717_v63  ;;  %v1945_v61 = vadd.f32 %v1940_v60, %v8894_v7  ;;  %v7769_v62 = vld [vmem:[%s11405_s2 + $0x4e8] ss:$24 sps:$4 sm:$0xff]  }
 0x1bb   :  { %1814 = vmatprep.subr.bf16.mxu1 %v7720_v6  ;;  %v7772_v63 = vld [vmem:[%s11405_s2 + $0x4f0] ss:$24 sps:$4 sm:$0xff]   ;;  %v7777_v6 = vld [vmem:[%s11405_s2 + $0x4bc] ss:$24 sps:$4 sm:$0xff]  }
 0x1bd   :  { %1431 = vmatpush1.bf16.msra.mxu0 %v7715_v8  ;;  %v1946_v8 = vsel %vm1944_vm5, %v1945_v61, %v1940_v60  ;;  %v7822_v60 = vld [vmem:[%s11405_s2 + $0x66c] ss:$24 sps:$4 sm:$0xff]  }
 0x1be   :  { %1815 = vmatpush1.bf16.msra.mxu1 %v7718_v21  ;;  %1432 = vmatprep.subr.bf16.mxu0 %v7723_v22  ;;  %v1961_v21 = vpop.permute.xlu1 %1960  ;;  %v7775_v22 = vld [vmem:[%s11405_s2 + $0x4b8] ss:$24 sps:$4 sm:$0xff]   ;;  %v1951_v9 = vadd.f32 %v1946_v8, %v8900_v16 }
 0x1bf   :  { %1816 = vmatprep.subr.bf16.mxu1 %v7726_v24  ;;  %v7778_v24 = vld [vmem:[%s11405_s2 + $0x4c0] ss:$24 sps:$4 sm:$0xff]   ;;  %vm1962_vm8 = vcmp.eq.s32.totalorder %v8890_v3, %v1961_v21 }
 0x1c1   :  { %1433 = vmatpush1.bf16.msra.mxu0 %v7721_v27  ;;  %v7786_v27 = vld [vmem:[%s11405_s2 + $0x494] ss:$24 sps:$4 sm:$0xff]  }
 0x1c2   :  { %1817 = vmatpush1.bf16.msra.mxu1 %v7724_v28  ;;  %1434 = vmatprep.subr.bf16.mxu0 %v7729_v30  ;;  %v1952_v28 = vsel %vm1950_vm6, %v1951_v9, %v1946_v8  ;;  %v7781_v30 = vld [vmem:[%s11405_s2 + $0x488] ss:$24 sps:$4 sm:$0xff]  }
 0x1c3   :  { %1818 = vmatprep.subr.bf16.mxu1 %v7732_v31  ;;  %v7784_v31 = vld [vmem:[%s11405_s2 + $0x490] ss:$24 sps:$4 sm:$0xff]   ;;  %v1957_v33 = vadd.f32 %v1952_v28, %v8906_v23 }
 0x1c4   :  { %v7823_v9 = vld [vmem:[%s11405_s2 + $0x630] ss:$24 sps:$4 sm:$0xff]  }
 0x1c5   :  { %1435 = vmatpush1.bf16.msra.mxu0 %v7727_v11  ;;  %v1955_v11 = vpop.permute.xlu0 %1954 }
 0x1c6   :  { %1819 = vmatpush1.bf16.msra.mxu1 %v7730_v34  ;;  %1436 = vmatprep.subr.bf16.mxu0 %v7735_v36  ;;  %v1967_v34 = vpop.permute.xlu1 %1966  ;;  %v7792_v36 = vld [vmem:[%s11405_s2 + $0x75c] ss:$24 sps:$4 sm:$0xff]   ;;  %vm1956_vm7 = vcmp.eq.s32.totalorder %v8890_v3, %v1955_v11  ;;  %v7832_v11 = vld [vmem:[%s11405_s2 + $0x608] ss:$24 sps:$4 sm:$0xff]  }
 0x1c7   :  { %1820 = vmatprep.subr.bf16.mxu1 %v7738_v37  ;;  %v7787_v37 = vld [vmem:[%s11405_s2 + $0x750] ss:$24 sps:$4 sm:$0xff]   ;;  %vm1968_vm10 = vcmp.eq.s32.totalorder %v8890_v3, %v1967_v34 }
 0x1c9   :  { %1437 = vmatpush1.bf16.msra.mxu0 %v7733_v12  ;;  %v7795_v12 = vld [vmem:[%s11405_s2 + $0x724] ss:$24 sps:$4 sm:$0xff]  }
 0x1ca   :  { %1821 = vmatpush1.bf16.msra.mxu1 %v7736_v39  ;;  %1847 = vmatprep.subr.bf16.mxu0 %v7741_v10  ;;  %v1958_v39 = vsel %vm1956_vm7, %v1957_v33, %v1952_v28  ;;  %v9538_v10 = vpop.permute.xlu1 %1978  ;;  %v7834_v28 = vld [vmem:[%s11405_s2 + $0x60c] ss:$24 sps:$4 sm:$0xff]  }
 0x1cb   :  { %1888 = vmatprep.subr.bf16.mxu1 %v7744_v40  ;;  %v7798_v40 = vld [vmem:[%s11405_s2 + $0x72c] ss:$24 sps:$4 sm:$0xff]   ;;  %vm1980_vm14 = vcmp.eq.s32.totalorder %v8890_v3, %v9538_v10 }
 0x1cc   :  { %1455 = vmatmul.mubr.bf16.vlgmr.msra.gmra.mxu0 %v9312_v48  ;;  %v7756_v48 = vld [vmem:[%s11405_s2 + $0x584] ss:$24 sps:$4 sm:$0xff]   ;;  %v7843_v10 = vld [vmem:[%s11405_s2 + $0x734] ss:$24 sps:$4 sm:$0xff]  }
 0x1cd   :  { %1839 = vmatmul.mubr.bf16.vlgmr.msra.gmra.mxu1 %v9428_v15  ;;  %1848 = vmatpush1.bf16.msra.mxu0 %v7739_v42  ;;  %v1963_v42 = vadd.f32 %v1958_v39, %v8912_v26  ;;  %v7837_v33 = vld [vmem:[%s11405_s2 + $0x764] ss:$24 sps:$4 sm:$0xff]  }
 0x1ce   :  { %1889 = vmatpush1.bf16.msra.mxu1 %v7742_v43  ;;  %1849 = vmatprep.subr.bf16.mxu0 %v7747_v44  ;;  %v7796_v43 = vld [vmem:[%s11405_s2 + $0x728] ss:$24 sps:$4 sm:$0xff]   ;;  %v7801_v44 = vld [vmem:[%s11405_s2 + $0x6f4] ss:$24 sps:$4 sm:$0xff]  }
 0x1cf   :  { %1890 = vmatprep.subr.bf16.mxu1 %v7750_v20  ;;  %1879 = vmatprep.mubr.bf16.mxu0 %v8581_v1  ;;  %v2404_v20 = vpop.permute.xlu1 %2403 }
 0x1d0   :  { %1920 = vmatprep.mubr.bf16.mxu1 %v8581_v1  ;;  %vm2405_vm9 = vcmp.eq.s32.totalorder %v8890_v3, %v2404_v20  ;;  %v7841_v20 = vld [vmem:[%s11405_s2 + $0x730] ss:$24 sps:$4 sm:$0xff]  }
 0x1d1   :  { %1850 = vmatpush1.bf16.msra.mxu0 %v7745_v46  ;;  %v7799_v46 = vld [vmem:[%s11405_s2 + $0x6f0] ss:$24 sps:$4 sm:$0xff]  }
 0x1d2   :  { %1891 = vmatpush1.bf16.msra.mxu1 %v7748_v47  ;;  %1851 = vmatprep.subr.bf16.mxu0 %v7753_v49  ;;  %v1964_v47 = vsel %vm1962_vm8, %v1963_v42, %v1958_v39  ;;  %v7802_v49 = vld [vmem:[%s11405_s2 + $0x6f8] ss:$24 sps:$4 sm:$0xff]   ;;  %v7846_v42 = vld [vmem:[%s11405_s2 + $0x8a4] ss:$24 sps:$4 sm:$0xff]  }
 0x1d3   :  { %1892 = vmatprep.subr.bf16.mxu1 %v7756_v48  ;;  %v7807_v48 = vld [vmem:[%s11405_s2 + $0x6c4] ss:$24 sps:$4 sm:$0xff]   ;;  %v2415_v8 = vpop.permute.xlu1 %2414  ;;  %v7838_v39 = vld [vmem:[%s11405_s2 + $0x8d0] ss:$24 sps:$4 sm:$0xff]  }
 0x1d4   :  { %vm2416_vm13 = vcmp.eq.s32.totalorder %v8890_v3, %v2415_v8 }
 0x1d5   :  { %1852 = vmatpush1.bf16.msra.mxu0 %v7751_v50  ;;  %v7810_v50 = vld [vmem:[%s11405_s2 + $0x6cc] ss:$24 sps:$4 sm:$0xff]  }
 0x1d6   :  { %1893 = vmatpush1.bf16.msra.mxu1 %v7754_v51  ;;  %1853 = vmatprep.subr.bf16.mxu0 %v7759_v52  ;;  %v1973_v51 = vpop.permute.xlu0 %1972  ;;  %v1969_v52 = vadd.f32 %v1964_v47, %v8918_v29 }
 0x1d7   :  { %1894 = vmatprep.subr.bf16.mxu1 %v7762_v53  ;;  %v7805_v53 = vld [vmem:[%s11405_s2 + $0x6c0] ss:$24 sps:$4 sm:$0xff]   ;;  %vm1974_vm12 = vcmp.eq.s32.totalorder %v8890_v3, %v1973_v51 }
 0x1d9   :  { %1854 = vmatpush1.bf16.msra.mxu0 %v7757_v54  ;;  %v7808_v54 = vld [vmem:[%s11405_s2 + $0x6c8] ss:$24 sps:$4 sm:$0xff]  }
 0x1da   :  { %1895 = vmatpush1.bf16.msra.mxu1 %v7760_v13  ;;  %1855 = vmatprep.subr.bf16.mxu0 %v7765_v55  ;;  %v7813_v13 = vld [vmem:[%s11405_s2 + $0x694] ss:$24 sps:$4 sm:$0xff]   ;;  %v2406_v55 = vsel %vm2405_vm9, %v8886_v2, 0.0 }
 0x1db   :  { %1896 = vmatprep.subr.bf16.mxu1 %v7768_v57  ;;  %v1970_v57 = vsel %vm1968_vm10, %v1969_v52, %v1964_v47  ;;  %v7844_v47 = vld [vmem:[%s11405_s2 + $0x8a0] ss:$24 sps:$4 sm:$0xff]   ;;  %v7852_v52 = vld [vmem:[%s11405_s2 + $0x874] ss:$24 sps:$4 sm:$0xff]  }
 0x1dc   :  { %v1975_v61 = vadd.f32 %v1970_v57, %v8924_v32 }
 0x1dd   :  { %1856 = vmatpush1.bf16.msra.mxu0 %v7763_v45  ;;  %v2409_v45 = vpop.permute.xlu0 %2408 }
 0x1de   :  { %1897 = vmatpush1.bf16.msra.mxu1 %v7766_v19  ;;  %1857 = vmatprep.subr.bf16.mxu0 %v7771_v58  ;;  %v2411_v19 = vadd.f32 %v2406_v55, %v8894_v7  ;;  %v7814_v58 = vld [vmem:[%s11405_s2 + $0x698] ss:$24 sps:$4 sm:$0xff]   ;;  %vm2410_vm11 = vcmp.eq.s32.totalorder %v8890_v3, %v2409_v45  ;;  %v1976_v21 = vsel %vm1974_vm12, %v1975_v61, %v1970_v57  ;;  %v7864_v61 = vld [vmem:[%s11405_s2 + $0x814] ss:$24 sps:$4 sm:$0xff]  }
 0x1df   :  { %1898 = vmatprep.subr.bf16.mxu1 %v7774_v59  ;;  %v7819_v59 = vld [vmem:[%s11405_s2 + $0x664] ss:$24 sps:$4 sm:$0xff]  }
 0x1e1   :  { %1858 = vmatpush1.bf16.msra.mxu0 %v7769_v62  ;;  %v2412_v62 = vsel %vm2410_vm11, %v2411_v19, %v2406_v55  ;;  %v7850_v55 = vld [vmem:[%s11405_s2 + $0x870] ss:$24 sps:$4 sm:$0xff]  }
 0x1e2   :  { %1899 = vmatpush1.bf16.msra.mxu1 %v7772_v63  ;;  %1859 = vmatprep.subr.bf16.mxu0 %v7777_v6  ;;  %v7820_v63 = vld [vmem:[%s11405_s2 + $0x668] ss:$24 sps:$4 sm:$0xff]   ;;  %v7825_v6 = vld [vmem:[%s11405_s2 + $0x634] ss:$24 sps:$4 sm:$0xff]  }
 0x1e3   :  { %1900 = vmatprep.subr.bf16.mxu1 %v7780_v14  ;;  %v7828_v14 = vld [vmem:[%s11405_s2 + $0x63c] ss:$24 sps:$4 sm:$0xff]   ;;  %v7853_v19 = vld [vmem:[%s11405_s2 + $0x6d0] ss:$24 sps:$4 sm:$0xff]  }
 0x1e5   :  { %1860 = vmatpush1.bf16.msra.mxu0 %v7775_v22  ;;  %v2417_v22 = vadd.f32 %v2412_v62, %v8900_v16 }
 0x1e6   :  { %1901 = vmatpush1.bf16.msra.mxu1 %v7778_v24  ;;  %1861 = vmatprep.subr.bf16.mxu0 %v7783_v25  ;;  %v7826_v24 = vld [vmem:[%s11405_s2 + $0x638] ss:$24 sps:$4 sm:$0xff]   ;;  %v7831_v25 = vld [vmem:[%s11405_s2 + $0x604] ss:$24 sps:$4 sm:$0xff]  }
 0x1e7   :  { %1902 = vmatprep.subr.bf16.mxu1 %v7786_v27  ;;  %v1981_v27 = vadd.f32 %v1976_v21, %v8931_v35 }
 0x1e9   :  { %1862 = vmatpush1.bf16.msra.mxu0 %v7781_v30  ;;  %v2418_v30 = vsel %vm2416_vm13, %v2417_v22, %v2412_v62  ;;  %v1982_v34 = vsel %vm1980_vm14, %v1981_v27, %v1976_v21  ;;  %v7865_v22 = vld [vmem:[%s11405_s2 + $0x670] ss:$24 sps:$4 sm:$0xff]  }
 0x1ea   :  { %1903 = vmatpush1.bf16.msra.mxu1 %v7784_v31  ;;  %2272 = vmatprep.subr.bf16.mxu0 %v7789_v17  ;;  %v7829_v31 = vld [vmem:[%s11405_s2 + $0x600] ss:$24 sps:$4 sm:$0xff]   ;;  %v2421_v17 = vpop.permute.xlu1 %2420 }
 0x1eb   :  { %2313 = vmatprep.subr.bf16.mxu1 %v7792_v36  ;;  %v7840_v36 = vld [vmem:[%s11405_s2 + $0x8d4] ss:$24 sps:$4 sm:$0xff]   ;;  %vm2422_vm15 = vcmp.eq.s32.totalorder %v8890_v3, %v2421_v17  ;;  %v7882_v17 = vld [vmem:[%s11405_s2 + $0x784] ss:$24 sps:$4 sm:$0xff]  }
 0x1ec   :  { %1880 = vmatmul.mubr.bf16.vlgmr.msra.gmra.mxu0 %v9428_v15 }
 0x1ed   :  { %1921 = vmatmul.mubr.bf16.vlgmr.msra.gmra.mxu1 %v9428_v15  ;;  %2273 = vmatpush1.bf16.msra.mxu0 %v7787_v37  ;;  %v7804_v15 = vld [vmem:[%s11405_s2 + $0x6fc] ss:$24 sps:$4 sm:$0xff]   ;;  %v2423_v37 = vadd.f32 %v2418_v30, %v8906_v23 }
 0x1ee   :  { %2314 = vmatpush1.bf16.msra.mxu1 %v7790_v38  ;;  %2274 = vmatprep.subr.bf16.mxu0 %v7795_v12  ;;  %v7835_v38 = vld [vmem:[%s11405_s2 + $0x760] ss:$24 sps:$4 sm:$0xff]   ;;  %v9651_v12 = vpack.c.bf16 %v1982_v34, %v1982_v34  ;;  %v2433_v45 = vpop.permute.xlu1 %2432  ;;  %v7877_v34 = vld [vmem:[%s11405_s2 + $0x610] ss:$24 sps:$4 sm:$0xff]  }
 0x1ef   :  { %2315 = vmatprep.subr.bf16.mxu1 %v7798_v40  ;;  %2304 = vmatprep.mubr.bf16.mxu0 %v8581_v1  ;;  %vm2434_vm1 = vcmp.eq.s32.totalorder %v8890_v3, %v2433_v45  ;;  %v7898_v45 = vld [vmem:[%s11405_s2 + $0x880] ss:$24 sps:$4 sm:$0xff]  }
 0x1f0   :  { %2345 = vmatprep.mubr.bf16.mxu1 %v8581_v1 }
 0x1f1   :  { %2275 = vmatpush1.bf16.msra.mxu0 %v7793_v41 }
 0x1f2   :  { %2316 = vmatpush1.bf16.msra.mxu1 %v7796_v43  ;;  %2276 = vmatprep.subr.bf16.mxu0 %v7801_v44  ;;  %v2424_v43 = vsel %vm2422_vm15, %v2423_v37, %v2418_v30  ;;  %v2439_v8 = vpop.permute.xlu1 %2438  ;;  %v7874_v30 = vld [vmem:[%s11405_s2 + $0x7b0] ss:$24 sps:$4 sm:$0xff]   ;;  %v7885_v37 = vld [vmem:[%s11405_s2 + $0x8dc] ss:$24 sps:$4 sm:$0xff]  }
 0x1f3   :  { %2317 = vmatprep.subr.bf16.mxu1 %v7804_v15  ;;  %vm2440_vm2 = vcmp.eq.s32.totalorder %v8890_v3, %v2439_v8  ;;  %v7910_v8 = vld [vmem:[%s11405_s2 + $0x820] ss:$24 sps:$4 sm:$0xff]  }
 0x1f5   :  { %2277 = vmatpush1.bf16.msra.mxu0 %v7799_v46  ;;  %v2427_v46 = vpop.permute.xlu0 %2426 }
 0x1f6   :  { %2318 = vmatpush1.bf16.msra.mxu1 %v7802_v49  ;;  %2278 = vmatprep.subr.bf16.mxu0 %v7807_v48  ;;  %v7849_v49 = vld [vmem:[%s11405_s2 + $0x704] ss:$24 sps:$4 sm:$0xff]   ;;  %v2429_v48 = vadd.f32 %v2424_v43, %v8912_v26  ;;  %vm2428_vm0 = vcmp.eq.s32.totalorder %v8890_v3, %v2427_v46 }
 0x1f7   :  { %2319 = vmatprep.subr.bf16.mxu1 %v7810_v50 }
 0x1f8   :  { %v2430_v57 = vsel %vm2428_vm0, %v2429_v48, %v2424_v43  ;;  %v7891_v43 = vld [vmem:[%s11405_s2 + $0x8ac] ss:$24 sps:$4 sm:$0xff]  }
 0x1f9   :  { %2279 = vmatpush1.bf16.msra.mxu0 %v7805_v53 }
 0x1fa   :  { %2320 = vmatpush1.bf16.msra.mxu1 %v7808_v54  ;;  %2280 = vmatprep.subr.bf16.mxu0 %v7813_v13  ;;  %v7847_v13 = vld [vmem:[%s11405_s2 + $0x700] ss:$24 sps:$4 sm:$0xff]  }
 0x1fb   :  { %2321 = vmatprep.subr.bf16.mxu1 %v7816_v56  ;;  %v7855_v56 = vld [vmem:[%s11405_s2 + $0x6d4] ss:$24 sps:$4 sm:$0xff]  }
 0x1fd   :  { %2281 = vmatpush1.bf16.msra.mxu0 %v7811_v18  ;;  %v7858_v18 = vld [vmem:[%s11405_s2 + $0x844] ss:$24 sps:$4 sm:$0xff]  }
 0x1fe   :  { %2322 = vmatpush1.bf16.msra.mxu1 %v7814_v58  ;;  %2282 = vmatprep.subr.bf16.mxu0 %v7819_v59  ;;  %v2435_v58 = vadd.f32 %v2430_v57, %v8918_v29  ;;  %v7856_v59 = vld [vmem:[%s11405_s2 + $0x840] ss:$24 sps:$4 sm:$0xff]  }
 0x1ff   :  { %2323 = vmatprep.subr.bf16.mxu1 %v7822_v60  ;;  %v7861_v60 = vld [vmem:[%s11405_s2 + $0x6a4] ss:$24 sps:$4 sm:$0xff]  }
 0x200   :  { %v2436_v62 = vsel %vm2434_vm1, %v2435_v58, %v2430_v57  ;;  %v7906_v58 = vld [vmem:[%s11405_s2 + $0x854] ss:$24 sps:$4 sm:$0xff]  }
 0x201   :  { %2283 = vmatpush1.bf16.msra.mxu0 %v7817_v4  ;;  %v7859_v4 = vld [vmem:[%s11405_s2 + $0x6a0] ss:$24 sps:$4 sm:$0xff]   ;;  %v2441_v21 = vadd.f32 %v2436_v62, %v8924_v32 }
 0x202   :  { %2324 = vmatpush1.bf16.msra.mxu1 %v7820_v63  ;;  %2284 = vmatprep.subr.bf16.mxu0 %v7825_v6  ;;  %v7862_v63 = vld [vmem:[%s11405_s2 + $0x810] ss:$24 sps:$4 sm:$0xff]   ;;  %v7867_v6 = vld [vmem:[%s11405_s2 + $0x674] ss:$24 sps:$4 sm:$0xff]  }
 0x203   :  { %2325 = vmatprep.subr.bf16.mxu1 %v7828_v14  ;;  %v7870_v14 = vld [vmem:[%s11405_s2 + $0x7e4] ss:$24 sps:$4 sm:$0xff]   ;;  %v2442_v27 = vsel %vm2440_vm2, %v2441_v21, %v2436_v62 }
 0x204   :  { %v7912_v62 = vld [vmem:[%s11405_s2 + $0x824] ss:$24 sps:$4 sm:$0xff]  }
 0x205   :  { %2285 = vmatpush1.bf16.msra.mxu0 %v7823_v9  ;;  %v7868_v9 = vld [vmem:[%s11405_s2 + $0x7e0] ss:$24 sps:$4 sm:$0xff]  }
 0x206   :  { %2326 = vmatpush1.bf16.msra.mxu1 %v7826_v24  ;;  %2286 = vmatprep.subr.bf16.mxu0 %v7831_v25  ;;  %v7873_v24 = vld [vmem:[%s11405_s2 + $0x644] ss:$24 sps:$4 sm:$0xff]   ;;  %v7876_v25 = vld [vmem:[%s11405_s2 + $0x7b4] ss:$24 sps:$4 sm:$0xff]  }
 0x207   :  { %2327 = vmatprep.subr.bf16.mxu1 %v7834_v28  ;;  %v7871_v28 = vld [vmem:[%s11405_s2 + $0x640] ss:$24 sps:$4 sm:$0xff]  }
 0x209   :  { %2287 = vmatpush1.bf16.msra.mxu0 %v7829_v31  ;;  %v7879_v31 = vld [vmem:[%s11405_s2 + $0x614] ss:$24 sps:$4 sm:$0xff]  }
 0x20a   :  { %2328 = vmatpush1.bf16.msra.mxu1 %v7832_v11  ;;  %2354 = vmatprep.subr.bf16.mxu0 %v7837_v33  ;;  %v2445_v11 = vpop.permute.xlu0 %2444  ;;  %v2447_v33 = vadd.f32 %v2442_v27, %v8931_v35 }
 0x20b   :  { %2738 = vmatprep.subr.bf16.mxu1 %v7840_v36  ;;  %v9659_v40 = vpop.f32.mrf.mxu0  ;;  %v9661_v41 = vpop.f32.mrf.mxu1  ;;  %vm2446_vm3 = vcmp.eq.s32.totalorder %v8890_v3, %v2445_v11  ;;  %v7880_v36 = vld [vmem:[%s11405_s2 + $0x780] ss:$24 sps:$4 sm:$0xff]  }
 0x20c   :  { %2305 = vmatmul.mubr.bf16.vlgmr.msra.gmra.mxu0 %v9651_v12  ;;  %v7922_v11 = vld [vmem:[%s11405_s2 + $0x7c0] ss:$24 sps:$4 sm:$0xff]  }
 0x20d   :  { %2346 = vmatmul.mubr.bf16.vlgmr.msra.gmra.mxu1 %v9651_v12  ;;  %2355 = vmatpush1.bf16.msra.mxu0 %v7835_v38  ;;  %v9668_v44 = vpop.f32.mrf.mxu0  ;;  %v9670_v15 = vpop.f32.mrf.mxu1  ;;  %v7888_v38 = vld [vmem:[%s11405_s2 + $0x8e4] ss:$24 sps:$4 sm:$0xff]  }
 0x20e   :  { %2739 = vmatpush1.bf16.msra.mxu1 %v7838_v39  ;;  %2356 = vmatprep.subr.bf16.mxu0 %v7843_v10  ;;  %v2448_v39 = vsel %vm2446_vm3, %v2447_v33, %v2442_v27  ;;  %v7883_v10 = vld [vmem:[%s11405_s2 + $0x8d8] ss:$24 sps:$4 sm:$0xff]   ;;  %v7921_v27 = vld [vmem:[%s11405_s2 + $0x7bc] ss:$24 sps:$4 sm:$0xff]   ;;  %v7927_v33 = vld [vmem:[%s11405_s2 + $0x78c] ss:$24 sps:$4 sm:$0xff]  }
 0x20f   :  { %2740 = vmatprep.subr.bf16.mxu1 %v7846_v42  ;;  %v555_v50 = vpop.f32.mrf.mxu0  ;;  %v596_v51 = vpop.f32.mrf.mxu1  ;;  %2386 = vmatprep.mubr.bf16.mxu0 %v8581_v1  ;;  %v7886_v42 = vld [vmem:[%s11405_s2 + $0x8e0] ss:$24 sps:$4 sm:$0xff]  }
 0x210   :  { %2770 = vmatprep.mubr.bf16.mxu1 %v8581_v1  ;;  %v7889_v51 = vld [vmem:[%s11405_s2 + $0x8a8] ss:$24 sps:$4 sm:$0xff]  }
 0x211   :  { %2357 = vmatpush1.bf16.msra.mxu0 %v7841_v20  ;;  %v556_v53 = vpop.f32.mrf.mxu0  ;;  %v597_v54 = vpop.f32.mrf.mxu1  ;;  %v9775_v20 = vpack.c.bf16 %v2448_v39, %v2448_v39  ;;  %v7928_v39 = vld [vmem:[%s11405_s2 + $0x790] ss:$24 sps:$4 sm:$0xff]  }
 0x212   :  { %2741 = vmatpush1.bf16.msra.mxu1 %v7844_v47  ;;  %2358 = vmatprep.subr.bf16.mxu0 %v7849_v49  ;;  %v7894_v47 = vld [vmem:[%s11405_s2 + $0x8b4] ss:$24 sps:$4 sm:$0xff]   ;;  %v7892_v53 = vld [vmem:[%s11405_s2 + $0x8b0] ss:$24 sps:$4 sm:$0xff]  }
 0x213   :  { %2742 = vmatprep.subr.bf16.mxu1 %v7852_v52 }
 0x215   :  { %2359 = vmatpush1.bf16.msra.mxu0 %v7847_v13  ;;  %v7900_v13 = vld [vmem:[%s11405_s2 + $0x884] ss:$24 sps:$4 sm:$0xff]  }
 0x216   :  { %2743 = vmatpush1.bf16.msra.mxu1 %v7850_v55  ;;  %2360 = vmatprep.subr.bf16.mxu0 %v7855_v56  ;;  %v2870_v56 = vpop.permute.xlu1 %2869 }
 0x217   :  { %2744 = vmatprep.subr.bf16.mxu1 %v7858_v18  ;;  %v7895_v18 = vld [vmem:[%s11405_s2 + $0x878] ss:$24 sps:$4 sm:$0xff]   ;;  %vm2871_vm4 = vcmp.eq.s32.totalorder %v8890_v3, %v2870_v56 }
 0x219   :  { %2361 = vmatpush1.bf16.msra.mxu0 %v7853_v19  ;;  %v7903_v19 = vld [vmem:[%s11405_s2 + $0x84c] ss:$24 sps:$4 sm:$0xff]  }
 0x21a   :  { %2745 = vmatpush1.bf16.msra.mxu1 %v7856_v59  ;;  %2362 = vmatprep.subr.bf16.mxu0 %v7861_v60  ;;  %v7901_v59 = vld [vmem:[%s11405_s2 + $0x848] ss:$24 sps:$4 sm:$0xff]  }
 0x21b   :  { %2746 = vmatprep.subr.bf16.mxu1 %v7864_v61  ;;  %v7904_v60 = vld [vmem:[%s11405_s2 + $0x850] ss:$24 sps:$4 sm:$0xff]   ;;  %v7909_v61 = vld [vmem:[%s11405_s2 + $0x81c] ss:$24 sps:$4 sm:$0xff]  }
 0x21d   :  { %2363 = vmatpush1.bf16.msra.mxu0 %v7859_v4  ;;  %v2875_v4 = vpop.permute.xlu1 %2874 }
 0x21e   :  { %2747 = vmatpush1.bf16.msra.mxu1 %v7862_v63  ;;  %2364 = vmatprep.subr.bf16.mxu0 %v7867_v6  ;;  %v2872_v63 = vsel %vm2871_vm4, %v8886_v2, 0.0  ;;  %v7907_v6 = vld [vmem:[%s11405_s2 + $0x818] ss:$24 sps:$4 sm:$0xff]   ;;  %vm2876_vm5 = vcmp.eq.s32.totalorder %v8890_v3, %v2875_v4  ;;  %vm8590_vm4 = vmmov 0  }
 0x21f   :  { %2748 = vmatprep.subr.bf16.mxu1 %v7870_v14  ;;  %v7915_v14 = vld [vmem:[%s11405_s2 + $0x7ec] ss:$24 sps:$4 sm:$0xff]   ;;  %v2877_v21 = vadd.f32 %v2872_v63, %v8894_v7 }
 0x221   :  { %2365 = vmatpush1.bf16.msra.mxu0 %v7865_v22  ;;  %v7918_v22 = vld [vmem:[%s11405_s2 + $0x7f4] ss:$24 sps:$4 sm:$0xff]  }
 0x222   :  { %2749 = vmatpush1.bf16.msra.mxu1 %v7868_v9  ;;  %2366 = vmatprep.subr.bf16.mxu0 %v7873_v24  ;;  %v2878_v9 = vsel %vm2876_vm5, %v2877_v21, %v2872_v63  ;;  %v7913_v24 = vld [vmem:[%s11405_s2 + $0x7e8] ss:$24 sps:$4 sm:$0xff]   ;;  %v7954_v21 = vld [vmem:[%s11405_s2 + $0x9cc] ss:$24 sps:$4 sm:$0xff]  }
 0x223   :  { %2750 = vmatprep.subr.bf16.mxu1 %v7876_v25  ;;  %v7916_v25 = vld [vmem:[%s11405_s2 + $0x7f0] ss:$24 sps:$4 sm:$0xff]  }
 0x225   :  { %2367 = vmatpush1.bf16.msra.mxu0 %v7871_v28  ;;  %v7924_v28 = vld [vmem:[%s11405_s2 + $0x7c4] ss:$24 sps:$4 sm:$0xff]  }
 0x226   :  { %2751 = vmatpush1.bf16.msra.mxu1 %v7874_v30  ;;  %2368 = vmatprep.subr.bf16.mxu0 %v7879_v31  ;;  %v2881_v30 = vpop.permute.xlu0 %2880  ;;  %v2883_v31 = vadd.f32 %v2878_v9, %v8900_v16 }
 0x227   :  { %2752 = vmatprep.subr.bf16.mxu1 %v7882_v17  ;;  %vm2882_vm6 = vcmp.eq.s32.totalorder %v8890_v3, %v2881_v30  ;;  %v7919_v17 = vld [vmem:[%s11405_s2 + $0x7b8] ss:$24 sps:$4 sm:$0xff]  }
 0x229   :  { %2369 = vmatpush1.bf16.msra.mxu0 %v7877_v34  ;;  %v2887_v34 = vpop.permute.xlu1 %2886 }
 0x22a   :  { %2753 = vmatpush1.bf16.msra.mxu1 %v7880_v36  ;;  %2779 = vmatprep.subr.bf16.mxu0 %v7885_v37  ;;  %v7930_v36 = vld [vmem:[%s11405_s2 + $0x794] ss:$24 sps:$4 sm:$0xff]   ;;  %v2884_v37 = vsel %vm2882_vm6, %v2883_v31, %v2878_v9  ;;  %vm2888_vm7 = vcmp.eq.s32.totalorder %v8890_v3, %v2887_v34  ;;  %v7949_v9 = vld [vmem:[%s11405_s2 + $0x9c0] ss:$24 sps:$4 sm:$0xff]  }
 0x22b   :  { %v9777_v46 = vpop.f32.mrf.mxu0  ;;  %2820 = vmatprep.subr.bf16.mxu1 %v7888_v38  ;;  %v7925_v38 = vld [vmem:[%s11405_s2 + $0x788] ss:$24 sps:$4 sm:$0xff]   ;;  %v7966_v34 = vld [vmem:[%s11405_s2 + $0x96c] ss:$24 sps:$4 sm:$0xff]  }
 0x22c   :  { %v914_v49 = vpop.f32.mrf.mxu1  ;;  %2387 = vmatmul.mubr.bf16.vlgmr.msra.gmra.mxu0 %v9651_v12  ;;  %v7897_v12 = vld [vmem:[%s11405_s2 + $0x87c] ss:$24 sps:$4 sm:$0xff]  }
 0x22d   :  { %v9784_v48 = vadd.f32 %v914_v49, %v9659_v40  ;;  %2771 = vmatmul.mubr.bf16.vlgmr.msra.gmra.mxu1 %v9775_v20  ;;  %2780 = vmatpush1.bf16.msra.mxu0 %v7883_v10  ;;  %v9787_v50 = vpop.f32.mrf.mxu0  ;;  %v7933_v10 = vld [vmem:[%s11405_s2 + $0xa54] ss:$24 sps:$4 sm:$0xff]   ;;  %v7931_v49 = vld [vmem:[%s11405_s2 + $0xa50] ss:$24 sps:$4 sm:$0xff]  }
 0x22e   :  { %2821 = vmatpush1.bf16.msra.mxu1 %v7886_v42  ;;  %v916_v52 = vpop.f32.mrf.mxu1  ;;  %2781 = vmatprep.subr.bf16.mxu0 %v7891_v43  ;;  %v2889_v42 = vadd.f32 %v2884_v37, %v8906_v23  ;;  %v7936_v43 = vld [vmem:[%s11405_s2 + $0xa5c] ss:$24 sps:$4 sm:$0xff]  }
 0x22f   :  { %v9799_v40 = vadd.f32 %v916_v52, %v9668_v44  ;;  %v637_v54 = vpop.f32.mrf.mxu0  ;;  %2822 = vmatprep.subr.bf16.mxu1 %v7894_v47  ;;  %2811 = vmatprep.mubr.bf16.mxu0 %v8581_v1  ;;  %v2893_v47 = vpop.permute.xlu1 %2892  ;;  %v7939_v52 = vld [vmem:[%s11405_s2 + $0xa24] ss:$24 sps:$4 sm:$0xff]  }
 0x230   :  { %v918_v55 = vpop.f32.mrf.mxu1  ;;  %2852 = vmatprep.mubr.bf16.mxu1 %v8581_v1  ;;  %vm2894_vm8 = vcmp.eq.s32.totalorder %v8890_v3, %v2893_v47 }
 0x231   :  { %2782 = vmatpush1.bf16.msra.mxu0 %v7889_v51  ;;  %v638_v57 = vpop.f32.mrf.mxu0  ;;  %v7934_v51 = vld [vmem:[%s11405_s2 + $0xa58] ss:$24 sps:$4 sm:$0xff]  }
 0x232   :  { %2823 = vmatpush1.bf16.msra.mxu1 %v7892_v53  ;;  %v919_v44 = vpop.f32.mrf.mxu1  ;;  %2783 = vmatprep.subr.bf16.mxu0 %v7897_v12  ;;  %v2890_v53 = vsel %vm2888_vm7, %v2889_v42, %v2884_v37  ;;  %v7942_v12 = vld [vmem:[%s11405_s2 + $0xa2c] ss:$24 sps:$4 sm:$0xff]   ;;  %v7937_v57 = vld [vmem:[%s11405_s2 + $0xa20] ss:$24 sps:$4 sm:$0xff]  }
 0x233   :  { %2824 = vmatprep.subr.bf16.mxu1 %v7900_v13  ;;  %v9899_v13 = vpop.permute.xlu1 %2904  ;;  %v7969_v42 = vld [vmem:[%s11405_s2 + $0x934] ss:$24 sps:$4 sm:$0xff]  }
 0x234   :  { %vm2906_vm11 = vcmp.eq.s32.totalorder %v8890_v3, %v9899_v13 }
 0x235   :  { %2784 = vmatpush1.bf16.msra.mxu0 %v7895_v18  ;;  %v2895_v18 = vadd.f32 %v2890_v53, %v8912_v26 }
 0x236   :  { %2825 = vmatpush1.bf16.msra.mxu1 %v7898_v45  ;;  %2785 = vmatprep.subr.bf16.mxu0 %v7903_v19 }
 0x237   :  { %2826 = vmatprep.subr.bf16.mxu1 %v7906_v58 }
 0x239   :  { %2786 = vmatpush1.bf16.msra.mxu0 %v7901_v59 }
 0x23a   :  { %2827 = vmatpush1.bf16.msra.mxu1 %v7904_v60  ;;  %2787 = vmatprep.subr.bf16.mxu0 %v7909_v61  ;;  %v2899_v61 = vpop.permute.xlu0 %2898 }
 0x23b   :  { %2828 = vmatprep.subr.bf16.mxu1 %v7912_v62  ;;  %v2896_v62 = vsel %vm2894_vm8, %v2895_v18, %v2890_v53  ;;  %vm2900_vm9 = vcmp.eq.s32.totalorder %v8890_v3, %v2899_v61  ;;  %v7981_v18 = vld [vmem:[%s11405_s2 + $0xa64] ss:$24 sps:$4 sm:$0xff]   ;;  %v7987_v61 = vld [vmem:[%s11405_s2 + $0xa34] ss:$24 sps:$4 sm:$0xff]  }
 0x23d   :  { %2788 = vmatpush1.bf16.msra.mxu0 %v7907_v6  ;;  %v7946_v6 = vld [vmem:[%s11405_s2 + $0x9f8] ss:$24 sps:$4 sm:$0xff]  }
 0x23e   :  { %2829 = vmatpush1.bf16.msra.mxu1 %v7910_v8  ;;  %2789 = vmatprep.subr.bf16.mxu0 %v7915_v14  ;;  %v9939_v8 = vpop.permute.xlu1 %2910 }
 0x23f   :  { %2830 = vmatprep.subr.bf16.mxu1 %v7918_v22  ;;  %v2901_v22 = vadd.f32 %v2896_v62, %v8918_v29  ;;  %vm2912_vm14 = vcmp.eq.s32.totalorder %v8890_v3, %v9939_v8 }
 0x241   :  { %2790 = vmatpush1.bf16.msra.mxu0 %v7913_v24  ;;  %v7952_v24 = vld [vmem:[%s11405_s2 + $0x9c8] ss:$24 sps:$4 sm:$0xff]   ;;  %v2902_v30 = vsel %vm2900_vm9, %v2901_v22, %v2896_v62 }
 0x242   :  { %2831 = vmatpush1.bf16.msra.mxu1 %v7916_v25  ;;  %2791 = vmatprep.subr.bf16.mxu0 %v7921_v27  ;;  %v7957_v25 = vld [vmem:[%s11405_s2 + $0x994] ss:$24 sps:$4 sm:$0xff]   ;;  %v3336_v27 = vpop.permute.xlu0 %3335  ;;  %v3341_v31 = vpop.permute.xlu1 %3340 }
 0x243   :  { %2832 = vmatprep.subr.bf16.mxu1 %v7924_v28  ;;  %v7960_v28 = vld [vmem:[%s11405_s2 + $0x99c] ss:$24 sps:$4 sm:$0xff]   ;;  %vm3337_vm10 = vcmp.eq.s32.totalorder %v8890_v3, %v3336_v27  ;;  %vm3342_vm12 = vcmp.eq.s32.totalorder %v8890_v3, %v3341_v31 }
 0x244   :  { %v3338_v37 = vsel %vm3337_vm10, %v8886_v2, 0.0 }
 0x245   :  { %2792 = vmatpush1.bf16.msra.mxu0 %v7919_v17  ;;  %v7955_v17 = vld [vmem:[%s11405_s2 + $0x990] ss:$24 sps:$4 sm:$0xff]  }
 0x246   :  { %2833 = vmatpush1.bf16.msra.mxu1 %v7922_v11  ;;  %2793 = vmatprep.subr.bf16.mxu0 %v7927_v33  ;;  %v7958_v11 = vld [vmem:[%s11405_s2 + $0x998] ss:$24 sps:$4 sm:$0xff]   ;;  %v7963_v33 = vld [vmem:[%s11405_s2 + $0x964] ss:$24 sps:$4 sm:$0xff]   ;;  %v3347_v2 = vpop.permute.xlu1 %3346 }
 0x247   :  { %2834 = vmatprep.subr.bf16.mxu1 %v7930_v36  ;;  %v2907_v36 = vadd.f32 %v2902_v30, %v8924_v32  ;;  %vm3348_vm13 = vcmp.eq.s32.totalorder %v8890_v3, %v3347_v2  ;;  %v8011_v2 = vld [vmem:[%s11405_s2 + $0x974] ss:$24 sps:$4 sm:$0xff]  }
 0x249   :  { %2794 = vmatpush1.bf16.msra.mxu0 %v7925_v38  ;;  %v7961_v38 = vld [vmem:[%s11405_s2 + $0x960] ss:$24 sps:$4 sm:$0xff]   ;;  %v2908_v47 = vsel %vm2906_vm11, %v2907_v36, %v2902_v30  ;;  %v7994_v30 = vld [vmem:[%s11405_s2 + $0xb70] ss:$24 sps:$4 sm:$0xff]  }
 0x24a   :  { %2835 = vmatpush1.bf16.msra.mxu1 %v7928_v39  ;;  %3204 = vmatprep.subr.bf16.mxu0 %v7933_v10  ;;  %v3343_v39 = vadd.f32 %v3338_v37, %v8894_v7  ;;  %v7964_v10 = vld [vmem:[%s11405_s2 + $0x968] ss:$24 sps:$4 sm:$0xff]   ;;  %v2913_v53 = vadd.f32 %v2908_v47, %v8931_v35  ;;  %v3359_v62 = vpop.permute.xlu1 %3358 }
 0x24b   :  { %3245 = vmatprep.subr.bf16.mxu1 %v7936_v43  ;;  %v7972_v43 = vld [vmem:[%s11405_s2 + $0x93c] ss:$24 sps:$4 sm:$0xff]   ;;  %v7967_v7 = vld [vmem:[%s11405_s2 + $0x930] ss:$24 sps:$4 sm:$0xff]   ;;  %vm3360_vm0 = vcmp.eq.s32.totalorder %v8890_v3, %v3359_v62 }
 0x24c   :  { %v955_v54 = vpop.f32.mrf.mxu0  ;;  %2812 = vmatmul.mubr.bf16.vlgmr.msra.gmra.mxu0 %v9775_v20 }
 0x24d   :  { %v9902_v55 = vadd.f32 %v955_v54, %v9661_v41  ;;  %v996_v56 = vpop.f32.mrf.mxu1  ;;  %2853 = vmatmul.mubr.bf16.vlgmr.msra.gmra.mxu1 %v9775_v20  ;;  %3205 = vmatpush1.bf16.msra.mxu0 %v7931_v49  ;;  %v7940_v41 = vld [vmem:[%s11405_s2 + $0xa28] ss:$24 sps:$4 sm:$0xff]   ;;  %v7945_v20 = vld [vmem:[%s11405_s2 + $0x9f4] ss:$24 sps:$4 sm:$0xff]   ;;  %v3344_v49 = vsel %vm3342_vm12, %v3343_v39, %v3338_v37 }
 0x24e   :  { %v9910_v44 = vadd.f32 %v996_v56, %v9777_v46  ;;  %3246 = vmatpush1.bf16.msra.mxu1 %v7934_v51  ;;  %v957_v45 = vpop.f32.mrf.mxu0  ;;  %3206 = vmatprep.subr.bf16.mxu0 %v7939_v52  ;;  %v7948_v46 = vld [vmem:[%s11405_s2 + $0x9fc] ss:$24 sps:$4 sm:$0xff]   ;;  %v7970_v51 = vld [vmem:[%s11405_s2 + $0x938] ss:$24 sps:$4 sm:$0xff]   ;;  %v7978_v54 = vld [vmem:[%s11405_s2 + $0x90c] ss:$24 sps:$4 sm:$0xff]  }
 0x24f   :  { %v9920_v19 = vadd.f32 %v957_v45, %v9670_v15  ;;  %v998_v58 = vpop.f32.mrf.mxu1  ;;  %3247 = vmatprep.subr.bf16.mxu1 %v7942_v12  ;;  %3236 = vmatprep.mubr.bf16.mxu0 %v8581_v1  ;;  %v7943_v15 = vld [vmem:[%s11405_s2 + $0x9f0] ss:$24 sps:$4 sm:$0xff]   ;;  %v7975_v52 = vld [vmem:[%s11405_s2 + $0x904] ss:$24 sps:$4 sm:$0xff]   ;;  %v3349_v12 = vadd.f32 %v3344_v49, %v8900_v16  ;;  %v7973_v56 = vld [vmem:[%s11405_s2 + $0x900] ss:$24 sps:$4 sm:$0xff]   ;;  %v2914_v45 = vsel %vm2912_vm14, %v2913_v53, %v2908_v47 }
 0x250   :  { %v9927_v59 = vadd.f32 %v998_v58, %v9787_v50  ;;  %v959_v60 = vpop.f32.mrf.mxu0  ;;  %3277 = vmatprep.mubr.bf16.mxu1 %v8581_v1  ;;  %v7951_v50 = vld [vmem:[%s11405_s2 + $0x9c4] ss:$24 sps:$4 sm:$0xff]   ;;  %v7976_v16 = vld [vmem:[%s11405_s2 + $0x908] ss:$24 sps:$4 sm:$0xff]   ;;  %v8008_v39 = vld [vmem:[%s11405_s2 + $0xb14] ss:$24 sps:$4 sm:$0xff]  }
 0x251   :  { %v1000_v4 = vpop.f32.mrf.mxu1  ;;  %3207 = vmatpush1.bf16.msra.mxu0 %v7937_v57  ;;  %v3350_v13 = vsel %vm3348_vm13, %v3349_v12, %v3344_v49  ;;  %v3353_v57 = vpop.permute.xlu0 %3352  ;;  %v7979_v58 = vld [vmem:[%s11405_s2 + $0xa60] ss:$24 sps:$4 sm:$0xff]   ;;  %v7982_v60 = vld [vmem:[%s11405_s2 + $0xbd0] ss:$24 sps:$4 sm:$0xff]   ;;  %v8014_v47 = vld [vmem:[%s11405_s2 + $0xae4] ss:$24 sps:$4 sm:$0xff]  }
 0x252   :  { %3248 = vmatpush1.bf16.msra.mxu1 %v7940_v41  ;;  %v960_v63 = vpop.f32.mrf.mxu0  ;;  %3208 = vmatprep.subr.bf16.mxu0 %v7945_v20  ;;  %v7984_v41 = vld [vmem:[%s11405_s2 + $0xbd4] ss:$24 sps:$4 sm:$0xff]   ;;  %v3355_v20 = vadd.f32 %v3350_v13, %v8906_v23  ;;  %vm3354_vm15 = vcmp.eq.s32.totalorder %v8890_v3, %v3353_v57  ;;  %v7990_v23 = vld [vmem:[%s11405_s2 + $0xba4] ss:$24 sps:$4 sm:$0xff]   ;;  %v8000_v37 = vld [vmem:[%s11405_s2 + $0xb40] ss:$24 sps:$4 sm:$0xff]  }
 0x253   :  { %v1001_v14 = vpop.f32.mrf.mxu1  ;;  %3249 = vmatprep.subr.bf16.mxu1 %v7948_v46  ;;  %v10023_v46 = vpack.c.bf16 %v2914_v45, %v2914_v45  ;;  %v8015_v12 = vld [vmem:[%s11405_s2 + $0x940] ss:$24 sps:$4 sm:$0xff]   ;;  %v8026_v57 = vld [vmem:[%s11405_s2 + $0xa84] ss:$24 sps:$4 sm:$0xff]  }
 0x254   :  { %v3356_v4 = vsel %vm3354_vm15, %v3355_v20, %v3350_v13  ;;  %v8018_v13 = vld [vmem:[%s11405_s2 + $0xab0] ss:$24 sps:$4 sm:$0xff]   ;;  %v8024_v45 = vld [vmem:[%s11405_s2 + $0xa80] ss:$24 sps:$4 sm:$0xff]  }
 0x255   :  { %3209 = vmatpush1.bf16.msra.mxu0 %v7943_v15  ;;  %v3361_v22 = vadd.f32 %v3356_v4, %v8912_v26  ;;  %v8027_v20 = vld [vmem:[%s11405_s2 + $0xbd8] ss:$24 sps:$4 sm:$0xff]  }
 0x256   :  { %3250 = vmatpush1.bf16.msra.mxu1 %v7946_v6  ;;  %3210 = vmatprep.subr.bf16.mxu0 %v7951_v50  ;;  %v7985_v50 = vld [vmem:[%s11405_s2 + $0xa30] ss:$24 sps:$4 sm:$0xff]  }
 0x257   :  { %3251 = vmatprep.subr.bf16.mxu1 %v7954_v21  ;;  %v7988_v21 = vld [vmem:[%s11405_s2 + $0xba0] ss:$24 sps:$4 sm:$0xff]   ;;  %v3362_v31 = vsel %vm3360_vm0, %v3361_v22, %v3356_v4 }
 0x258   :  { %v3367_v36 = vadd.f32 %v3362_v31, %v8918_v29  ;;  %v8003_v29 = vld [vmem:[%s11405_s2 + $0x9a0] ss:$24 sps:$4 sm:$0xff]  }
 0x259   :  { %3211 = vmatpush1.bf16.msra.mxu0 %v7949_v9 }
 0x25a   :  { %3252 = vmatpush1.bf16.msra.mxu1 %v7952_v24  ;;  %3212 = vmatprep.subr.bf16.mxu0 %v7957_v25 }
 0x25b   :  { %3253 = vmatprep.subr.bf16.mxu1 %v7960_v28 }
 0x25d   :  { %3213 = vmatpush1.bf16.msra.mxu0 %v7955_v17 }
 0x25e   :  { %3254 = vmatpush1.bf16.msra.mxu1 %v7958_v11  ;;  %3214 = vmatprep.subr.bf16.mxu0 %v7963_v33  ;;  %v8002_v11 = vld [vmem:[%s11405_s2 + $0xb44] ss:$24 sps:$4 sm:$0xff]   ;;  %v3365_v33 = vpop.permute.xlu1 %3364 }
 0x25f   :  { %3255 = vmatprep.subr.bf16.mxu1 %v7966_v34  ;;  %v7997_v34 = vld [vmem:[%s11405_s2 + $0x9d0] ss:$24 sps:$4 sm:$0xff]   ;;  %vm3366_vm1 = vcmp.eq.s32.totalorder %v8890_v3, %v3365_v33  ;;  %v8059_v33 = vld [vmem:[%s11405_s2 + $0xaec] ss:$24 sps:$4 sm:$0xff]  }
 0x261   :  { %3215 = vmatpush1.bf16.msra.mxu0 %v7961_v38  ;;  %v8005_v38 = vld [vmem:[%s11405_s2 + $0x9a4] ss:$24 sps:$4 sm:$0xff]  }
 0x262   :  { %3256 = vmatpush1.bf16.msra.mxu1 %v7964_v10  ;;  %3216 = vmatprep.subr.bf16.mxu0 %v7969_v42  ;;  %v3368_v10 = vsel %vm3366_vm1, %v3367_v36, %v3362_v31  ;;  %v8006_v42 = vld [vmem:[%s11405_s2 + $0xb10] ss:$24 sps:$4 sm:$0xff]   ;;  %v8056_v31 = vld [vmem:[%s11405_s2 + $0xb24] ss:$24 sps:$4 sm:$0xff]   ;;  %v8062_v36 = vld [vmem:[%s11405_s2 + $0xaf4] ss:$24 sps:$4 sm:$0xff]  }
 0x263   :  { %3257 = vmatprep.subr.bf16.mxu1 %v7972_v43  ;;  %v3371_v43 = vpop.permute.xlu0 %3370  ;;  %v3373_v49 = vadd.f32 %v3368_v10, %v8924_v32  ;;  %v8020_v32 = vld [vmem:[%s11405_s2 + $0xab4] ss:$24 sps:$4 sm:$0xff]  }
 0x264   :  { %vm3372_vm2 = vcmp.eq.s32.totalorder %v8890_v3, %v3371_v43  ;;  %v8069_v43 = vld [vmem:[%s11405_s2 + $0xa88] ss:$24 sps:$4 sm:$0xff]  }
 0x265   :  { %3217 = vmatpush1.bf16.msra.mxu0 %v7967_v7  ;;  %v8009_v7 = vld [vmem:[%s11405_s2 + $0x970] ss:$24 sps:$4 sm:$0xff]   ;;  %v3374_v53 = vsel %vm3372_vm2, %v3373_v49, %v3368_v10  ;;  %v8066_v10 = vld [vmem:[%s11405_s2 + $0xac0] ss:$24 sps:$4 sm:$0xff]   ;;  %v8077_v49 = vld [vmem:[%s11406_s3 + $0x154] ss:$24 sps:$4 sm:$0xff]  }
 0x266   :  { %3258 = vmatpush1.bf16.msra.mxu1 %v7970_v51  ;;  %3218 = vmatprep.subr.bf16.mxu0 %v7975_v52  ;;  %v8012_v51 = vld [vmem:[%s11405_s2 + $0xae0] ss:$24 sps:$4 sm:$0xff]   ;;  %v8017_v52 = vld [vmem:[%s11405_s2 + $0x944] ss:$24 sps:$4 sm:$0xff]  }
 0x267   :  { %3259 = vmatprep.subr.bf16.mxu1 %v7978_v54  ;;  %v3377_v54 = vpop.permute.xlu1 %3376 }
 0x268   :  { %vm3378_vm3 = vcmp.eq.s32.totalorder %v8890_v3, %v3377_v54  ;;  %v8032_v3 = vld [vmem:[%s11405_s2 + $0xbe4] ss:$24 sps:$4 sm:$0xff]  }
 0x269   :  { %3219 = vmatpush1.bf16.msra.mxu0 %v7973_v56  ;;  %v8023_v56 = vld [vmem:[%s11405_s2 + $0x914] ss:$24 sps:$4 sm:$0xff]  }
 0x26a   :  { %3260 = vmatpush1.bf16.msra.mxu1 %v7976_v16  ;;  %3286 = vmatprep.subr.bf16.mxu0 %v7981_v18  ;;  %v3379_v16 = vadd.f32 %v3374_v53, %v8931_v35  ;;  %v8021_v18 = vld [vmem:[%s11405_s2 + $0x910] ss:$24 sps:$4 sm:$0xff]  }
 0x26b   :  { %3670 = vmatprep.subr.bf16.mxu1 %v7984_v41  ;;  %v8029_v41 = vld [vmem:[%s11405_s2 + $0xbdc] ss:$24 sps:$4 sm:$0xff]  }
 0x26c   :  { %v1374_v15 = vpop.f32.mrf.mxu0  ;;  %3237 = vmatmul.mubr.bf16.vlgmr.msra.gmra.mxu0 %v10023_v46  ;;  %v3380_v35 = vsel %vm3378_vm3, %v3379_v16, %v3374_v53 }
 0x26d   :  { %v10036_v63 = vadd.f32 %v1374_v15, %v9784_v48  ;;  %v1415_v6 = vpop.f32.mrf.mxu1  ;;  %3278 = vmatmul.mubr.bf16.vlgmr.msra.gmra.mxu1 %v10023_v46  ;;  %3287 = vmatpush1.bf16.msra.mxu0 %v7979_v58  ;;  %v7993_v48 = vld [vmem:[%s11405_s2 + $0xa04] ss:$24 sps:$4 sm:$0xff]   ;;  %v8030_v58 = vld [vmem:[%s11405_s2 + $0xbe0] ss:$24 sps:$4 sm:$0xff]  }
 0x26e   :  { %v10043_v8 = vadd.f32 %v1415_v6, %v9902_v55  ;;  %3671 = vmatpush1.bf16.msra.mxu1 %v7982_v60  ;;  %v1376_v14 = vpop.f32.mrf.mxu0  ;;  %3288 = vmatprep.subr.bf16.mxu0 %v7987_v61  ;;  %v7996_v55 = vld [vmem:[%s11405_s2 + $0xb74] ss:$24 sps:$4 sm:$0xff]   ;;  %v10151_v61 = vpack.c.bf16 %v3380_v35, %v3380_v35  ;;  %v8033_v6 = vld [vmem:[%s11405_s2 + $0xba8] ss:$24 sps:$4 sm:$0xff]   ;;  %v8086_v35 = vld [vmem:[%s11406_s3 + $0xc4] ss:$24 sps:$4 sm:$0xff]  }
 0x26f   :  { %v10053_v9 = vadd.f32 %v1376_v14, %v9799_v40  ;;  %v1417_v24 = vpop.f32.mrf.mxu1  ;;  %3672 = vmatprep.subr.bf16.mxu1 %v7990_v23  ;;  %3318 = vmatprep.mubr.bf16.mxu0 %v8581_v1  ;;  %v7991_v40 = vld [vmem:[%s11405_s2 + $0xa00] ss:$24 sps:$4 sm:$0xff]   ;;  %v8035_v60 = vld [vmem:[%s11405_s2 + $0xbac] ss:$24 sps:$4 sm:$0xff]  }
 0x270   :  { %v10061_v25 = vadd.f32 %v1417_v24, %v9920_v19  ;;  %v1378_v27 = vpop.f32.mrf.mxu0  ;;  %3702 = vmatprep.mubr.bf16.mxu1 %v8581_v1  ;;  %v7999_v19 = vld [vmem:[%s11405_s2 + $0x9d4] ss:$24 sps:$4 sm:$0xff]  }
 0x271   :  { %v1419_v26 = vpop.f32.mrf.mxu1  ;;  %3289 = vmatpush1.bf16.msra.mxu0 %v7985_v50  ;;  %v8038_v23 = vld [vmem:[%s11405_s2 + $0xbb4] ss:$24 sps:$4 sm:$0xff]   ;;  %v8042_v27 = vld [vmem:[%s11405_s2 + $0xb80] ss:$24 sps:$4 sm:$0xff]  }
 0x272   :  { %3673 = vmatpush1.bf16.msra.mxu1 %v7988_v21  ;;  %v1379_v28 = vpop.f32.mrf.mxu0  ;;  %3290 = vmatprep.subr.bf16.mxu0 %v7993_v48 }
 0x273   :  { %v1420_v17 = vpop.f32.mrf.mxu1  ;;  %3674 = vmatprep.subr.bf16.mxu1 %v7996_v55  ;;  %v8045_v28 = vld [vmem:[%s11405_s2 + $0xb48] ss:$24 sps:$4 sm:$0xff]  }
 0x274   :  { %v8051_v17 = vld [vmem:[%s11405_s2 + $0xb18] ss:$24 sps:$4 sm:$0xff]  }
 0x275   :  { %3291 = vmatpush1.bf16.msra.mxu0 %v7991_v40 }
 0x276   :  { %3675 = vmatpush1.bf16.msra.mxu1 %v7994_v30  ;;  %3292 = vmatprep.subr.bf16.mxu0 %v7999_v19  ;;  %v8048_v30 = vld [vmem:[%s11405_s2 + $0xb50] ss:$24 sps:$4 sm:$0xff]   ;;  %v8053_v19 = vld [vmem:[%s11405_s2 + $0xb1c] ss:$24 sps:$4 sm:$0xff]  }
 0x277   :  { %3676 = vmatprep.subr.bf16.mxu1 %v8002_v11  ;;  %v8054_v11 = vld [vmem:[%s11405_s2 + $0xb20] ss:$24 sps:$4 sm:$0xff]  }
 0x279   :  { %3293 = vmatpush1.bf16.msra.mxu0 %v7997_v34  ;;  %v8057_v34 = vld [vmem:[%s11405_s2 + $0xae8] ss:$24 sps:$4 sm:$0xff]  }
 0x27a   :  { %3677 = vmatpush1.bf16.msra.mxu1 %v8000_v37  ;;  %3294 = vmatprep.subr.bf16.mxu0 %v8005_v38  ;;  %v8060_v37 = vld [vmem:[%s11405_s2 + $0xaf0] ss:$24 sps:$4 sm:$0xff]   ;;  %v8065_v38 = vld [vmem:[%s11405_s2 + $0xabc] ss:$24 sps:$4 sm:$0xff]  }
 0x27b   :  { %3678 = vmatprep.subr.bf16.mxu1 %v8008_v39  ;;  %v8068_v39 = vld [vmem:[%s11405_s2 + $0xac4] ss:$24 sps:$4 sm:$0xff]  }
 0x27d   :  { %3295 = vmatpush1.bf16.msra.mxu0 %v8003_v29  ;;  %v8063_v29 = vld [vmem:[%s11405_s2 + $0xab8] ss:$24 sps:$4 sm:$0xff]  }
 0x27e   :  { %3679 = vmatpush1.bf16.msra.mxu1 %v8006_v42  ;;  %3296 = vmatprep.subr.bf16.mxu0 %v8011_v2  ;;  %v8071_v42 = vld [vmem:[%s11405_s2 + $0xa8c] ss:$24 sps:$4 sm:$0xff]  }
 0x27f   :  { %3680 = vmatprep.subr.bf16.mxu1 %v8014_v47  ;;  %v8074_v2 = vld [vmem:[%s11405_s2 + $0xa94] ss:$24 sps:$4 sm:$0xff]   ;;  %v8072_v47 = vld [vmem:[%s11405_s2 + $0xa90] ss:$24 sps:$4 sm:$0xff]  }
 0x281   :  { %3297 = vmatpush1.bf16.msra.mxu0 %v8009_v7  ;;  %v8075_v7 = vld [vmem:[%s11406_s3 + $0x150] ss:$24 sps:$4 sm:$0xff]  }
 0x282   :  { %3681 = vmatpush1.bf16.msra.mxu1 %v8012_v51  ;;  %3298 = vmatprep.subr.bf16.mxu0 %v8017_v52  ;;  %v8080_v51 = vld [vmem:[%s11406_s3 + $0x124] ss:$24 sps:$4 sm:$0xff]   ;;  %v8078_v52 = vld [vmem:[%s11406_s3 + $0x120] ss:$24 sps:$4 sm:$0xff]  }
 0x283   :  { %3682 = vmatprep.subr.bf16.mxu1 %v8020_v32 }
 0x285   :  { %3299 = vmatpush1.bf16.msra.mxu0 %v8015_v12 }
 0x286   :  { %3683 = vmatpush1.bf16.msra.mxu1 %v8018_v13  ;;  %3300 = vmatprep.subr.bf16.mxu0 %v8023_v56  ;;  %v8083_v56 = vld [vmem:[%s11406_s3 + $0xf4] ss:$24 sps:$4 sm:$0xff]  }
 0x287   :  { %3684 = vmatprep.subr.bf16.mxu1 %v8026_v57 }
 0x289   :  { %3301 = vmatpush1.bf16.msra.mxu0 %v8021_v18 }
 0x28a   :  { %3685 = vmatpush1.bf16.msra.mxu1 %v8024_v45  ;;  %3711 = vmatprep.subr.bf16.mxu0 %v8029_v41 }
 0x28b   :  { %3752 = vmatprep.subr.bf16.mxu1 %v8032_v3 }
 0x28c   :  { %v1456_v4 = vpop.f32.mrf.mxu0  ;;  %3319 = vmatmul.mubr.bf16.vlgmr.msra.gmra.mxu0 %v10023_v46  ;;  %v8036_v46 = vld [vmem:[%s11405_s2 + $0xbb0] ss:$24 sps:$4 sm:$0xff]  }
 0x28d   :  { %v10158_v15 = vadd.f32 %v1456_v4, %v9910_v44  ;;  %v1840_v62 = vpop.f32.mrf.mxu1  ;;  %3703 = vmatmul.mubr.bf16.vlgmr.msra.gmra.mxu1 %v10151_v61  ;;  %3712 = vmatpush1.bf16.msra.mxu0 %v8027_v20  ;;  %v8041_v44 = vld [vmem:[%s11405_s2 + $0xb7c] ss:$24 sps:$4 sm:$0xff]  }
 0x28e   :  { %v10165_v50 = vadd.f32 %v1840_v62, %v10036_v63  ;;  %3753 = vmatpush1.bf16.msra.mxu1 %v8030_v58  ;;  %v1458_v14 = vpop.f32.mrf.mxu0  ;;  %3713 = vmatprep.subr.bf16.mxu0 %v8035_v60  ;;  %v8044_v63 = vld [vmem:[%s11405_s2 + $0xb84] ss:$24 sps:$4 sm:$0xff]   ;;  %v8102_v58 = vld [vmem:[%s11406_s3 + $0x450] ss:$24 sps:$4 sm:$0xff]   ;;  %v8089_v4 = vld [vmem:[%s11406_s3 + $0x94] ss:$24 sps:$4 sm:$0xff]  }
 0x28f   :  { %v10174_v21 = vadd.f32 %v1458_v14, %v9927_v59  ;;  %v1842_v48 = vpop.f32.mrf.mxu1  ;;  %3754 = vmatprep.subr.bf16.mxu1 %v8038_v23  ;;  %3743 = vmatprep.mubr.bf16.mxu0 %v8581_v1  ;;  %v8039_v59 = vld [vmem:[%s11405_s2 + $0xb78] ss:$24 sps:$4 sm:$0xff]   ;;  %v8110_v60 = vld [vmem:[%s11406_s3 + $0x424] ss:$24 sps:$4 sm:$0xff]  }
 0x290   :  { %v10181_v22 = vadd.f32 %v1842_v48, %v10053_v9  ;;  %v1460_v24 = vpop.f32.mrf.mxu0  ;;  %3784 = vmatprep.mubr.bf16.mxu1 %v8581_v1  ;;  %v8047_v9 = vld [vmem:[%s11405_s2 + $0xb4c] ss:$24 sps:$4 sm:$0xff]   ;;  %v8108_v23 = vld [vmem:[%s11406_s3 + $0x420] ss:$24 sps:$4 sm:$0xff]   ;;  %v8087_v62 = vld [vmem:[%s11406_s3 + $0x90] ss:$24 sps:$4 sm:$0xff]  }
 0x291   :  { %v1844_v55 = vpop.f32.mrf.mxu1  ;;  %3714 = vmatpush1.bf16.msra.mxu0 %v8033_v6  ;;  %v8050_v1 = vld [vmem:[%s11405_s2 + $0xb54] ss:$24 sps:$4 sm:$0xff]   ;;  %v8114_v6 = vld [vmem:[%s11406_s3 + $0x3f0] ss:$24 sps:$4 sm:$0xff]   ;;  %v8092_v14 = vld [vmem:[%s11406_s3 + $0x64] ss:$24 sps:$4 sm:$0xff]  }
 0x292   :  { %3755 = vmatpush1.bf16.msra.mxu1 %v8036_v46  ;;  %v1461_v26 = vpop.f32.mrf.mxu0  ;;  %3715 = vmatprep.subr.bf16.mxu0 %v8041_v44  ;;  %v8122_v46 = vld [vmem:[%s11406_s3 + $0x3c4] ss:$24 sps:$4 sm:$0xff]   ;;  %v8090_v44 = vld [vmem:[%s11406_s3 + $0x60] ss:$24 sps:$4 sm:$0xff]   ;;  %v8095_v48 = vld [vmem:[%s11406_s3 + $0x34] ss:$24 sps:$4 sm:$0xff]  }
 0x293   :  { %v1845_v40 = vpop.f32.mrf.mxu1  ;;  %3756 = vmatprep.subr.bf16.mxu1 %v8044_v63  ;;  %v8128_v63 = vld [vmem:[%s11406_s3 + $0x394] ss:$24 sps:$4 sm:$0xff]   ;;  %v8093_v24 = vld [vmem:[%s11406_s3 + $0x30] ss:$24 sps:$4 sm:$0xff]   ;;  %v8096_v26 = vld [vmem:[%s11406_s3] ss:$24 sps:$4 sm:$0xff]  }
 0x294   :  { %v8126_v55 = vld [vmem:[%s11406_s3 + $0x390] ss:$24 sps:$4 sm:$0xff]   ;;  %v8101_v40 = vld [vmem:[%s11406_s3 + $0x2d4] ss:$24 sps:$4 sm:$0xff]  }
 0x295   :  { %3716 = vmatpush1.bf16.msra.mxu0 %v8039_v59  ;;  %v8098_v59 = vld [vmem:[%s11406_s3 + $0x4] ss:$24 sps:$4 sm:$0xff]  }
 0x296   :  { %3757 = vmatpush1.bf16.msra.mxu1 %v8042_v27  ;;  %3717 = vmatprep.subr.bf16.mxu0 %v8047_v9  ;;  %v8134_v27 = vld [vmem:[%s11406_s3 + $0x364] ss:$24 sps:$4 sm:$0xff]   ;;  %v8132_v9 = vld [vmem:[%s11406_s3 + $0x360] ss:$24 sps:$4 sm:$0xff]  }
 0x297   :  { %3758 = vmatprep.subr.bf16.mxu1 %v8050_v1  ;;  %v8140_v1 = vld [vmem:[%s11406_s3 + $0x334] ss:$24 sps:$4 sm:$0xff]  }
 0x299   :  { %3718 = vmatpush1.bf16.msra.mxu0 %v8045_v28  ;;  %v8099_v28 = vld [vmem:[%s11406_s3 + $0x2d0] ss:$24 sps:$4 sm:$0xff]  }
 0x29a   :  { %3759 = vmatpush1.bf16.msra.mxu1 %v8048_v30  ;;  %3719 = vmatprep.subr.bf16.mxu0 %v8053_v19  ;;  %v8138_v30 = vld [vmem:[%s11406_s3 + $0x330] ss:$24 sps:$4 sm:$0xff]   ;;  %v8107_v19 = vld [vmem:[%s11406_s3 + $0x2a4] ss:$24 sps:$4 sm:$0xff]  }
 0x29b   :  { %3760 = vmatprep.subr.bf16.mxu1 %v8056_v31  ;;  %v8105_v31 = vld [vmem:[%s11406_s3 + $0x2a0] ss:$24 sps:$4 sm:$0xff]  }
 0x29d   :  { %3720 = vmatpush1.bf16.msra.mxu0 %v8051_v17 }
 0x29e   :  { %3761 = vmatpush1.bf16.msra.mxu1 %v8054_v11  ;;  %3721 = vmatprep.subr.bf16.mxu0 %v8059_v33 }
 0x29f   :  { %3762 = vmatprep.subr.bf16.mxu1 %v8062_v36 }
 0x2a1   :  { %3722 = vmatpush1.bf16.msra.mxu0 %v8057_v34 }
 0x2a2   :  { %3763 = vmatpush1.bf16.msra.mxu1 %v8060_v37  ;;  %3723 = vmatprep.subr.bf16.mxu0 %v8065_v38  ;;  %v8113_v37 = vld [vmem:[%s11406_s3 + $0x274] ss:$24 sps:$4 sm:$0xff]   ;;  %v8146_v38 = vld [vmem:[%s11406_s3 + $0x304] ss:$24 sps:$4 sm:$0xff]  }
 0x2a3   :  { %3764 = vmatprep.subr.bf16.mxu1 %v8068_v39 }
 0x2a5   :  { %3724 = vmatpush1.bf16.msra.mxu0 %v8063_v29  ;;  %v8111_v29 = vld [vmem:[%s11406_s3 + $0x270] ss:$24 sps:$4 sm:$0xff]  }
 0x2a6   :  { %3765 = vmatpush1.bf16.msra.mxu1 %v8066_v10  ;;  %3725 = vmatprep.subr.bf16.mxu0 %v8071_v42  ;;  %v8144_v10 = vld [vmem:[%s11406_s3 + $0x300] ss:$24 sps:$4 sm:$0xff]  }
 0x2a7   :  { %3766 = vmatprep.subr.bf16.mxu1 %v8074_v2 }
 0x2a9   :  { %3726 = vmatpush1.bf16.msra.mxu0 %v8069_v43 }
 0x2aa   :  { %3767 = vmatpush1.bf16.msra.mxu1 %v8072_v47  ;;  %5565 = vmatprep.subr.bf16.mxu0 %v8077_v49  ;;  %v8149_v49 = vld [vmem:[%s11406_s3 + $0x5d4] ss:$24 sps:$4 sm:$0xff]  }
 0x2ac   :  { %v1881_v32 = vpop.f32.mrf.mxu0  ;;  %3744 = vmatmul.mubr.bf16.vlgmr.msra.gmra.mxu0 %v10151_v61 }
 0x2ad   :  { %v10264_v53 = vadd.f32 %v1881_v32, %v10043_v8  ;;  %v1922_v12 = vpop.f32.mrf.mxu1  ;;  %3785 = vmatmul.mubr.bf16.vlgmr.msra.gmra.mxu1 %v10151_v61  ;;  %5566 = vmatpush1.bf16.msra.mxu0 %v8075_v7  ;;  %v8081_v8 = vld [vmem:[%s11406_s3 + $0xf0] ss:$24 sps:$4 sm:$0xff]   ;;  %v8084_v61 = vld [vmem:[%s11406_s3 + $0xc0] ss:$24 sps:$4 sm:$0xff]   ;;  %v8125_v32 = vld [vmem:[%s11406_s3 + $0x214] ss:$24 sps:$4 sm:$0xff]  }
 0x2ae   :  { %v10268_v54 = vadd.f32 %v1922_v12, %v10158_v15  ;;  %v1883_v13 = vpop.f32.mrf.mxu0  ;;  %5567 = vmatprep.subr.bf16.mxu0 %v8080_v51  ;;  %v8116_v15 = vld [vmem:[%s11406_s3 + $0x3f4] ss:$24 sps:$4 sm:$0xff]   ;;  %v8117_v51 = vld [vmem:[%s11406_s3 + $0x240] ss:$24 sps:$4 sm:$0xff]   ;;  %v8155_v12 = vld [vmem:[%s11406_s3 + $0x5a4] ss:$24 sps:$4 sm:$0xff]  }
 0x2af   :  { %v10274_v57 = vadd.f32 %v1883_v13, %v10061_v25  ;;  %v1924_v16 = vpop.f32.mrf.mxu1  ;;  %v8104_v25 = vld [vmem:[%s11406_s3 + $0x454] ss:$24 sps:$4 sm:$0xff]   ;;  %v8123_v13 = vld [vmem:[%s11406_s3 + $0x210] ss:$24 sps:$4 sm:$0xff]  }
 0x2b0   :  { %v10280_v18 = vadd.f32 %v1924_v16, %v10174_v21  ;;  %v1885_v45 = vpop.f32.mrf.mxu0  ;;  %5606 = vmatprep.subr.bf16.mxu1 %v8104_v25  ;;  %v8120_v21 = vld [vmem:[%s11406_s3 + $0x3c0] ss:$24 sps:$4 sm:$0xff]   ;;  %v8161_v16 = vld [vmem:[%s11406_s3 + $0x574] ss:$24 sps:$4 sm:$0xff]   ;;  %v8143_v25 = vld [vmem:[%s11406_s3 + $0x184] ss:$24 sps:$4 sm:$0xff]  }
 0x2b1   :  { %v1926_v41 = vpop.f32.mrf.mxu1  ;;  %5568 = vmatpush1.bf16.msra.mxu0 %v8078_v52  ;;  %5607 = vmatpush1.bf16.msra.mxu1 %v8102_v58  ;;  %v8147_v52 = vld [vmem:[%s11406_s3 + $0x5d0] ss:$24 sps:$4 sm:$0xff]   ;;  %v8137_v45 = vld [vmem:[%s11406_s3 + $0x1b4] ss:$24 sps:$4 sm:$0xff]  }
 0x2b2   :  { %v1886_v3 = vpop.f32.mrf.mxu0  ;;  %5569 = vmatprep.subr.bf16.mxu0 %v8083_v56  ;;  %5608 = vmatprep.subr.bf16.mxu1 %v8110_v60  ;;  %v8131_v56 = vld [vmem:[%s11406_s3 + $0x1e4] ss:$24 sps:$4 sm:$0xff]   ;;  %v8165_v41 = vld [vmem:[%s11406_s3 + $0x540] ss:$24 sps:$4 sm:$0xff]   ;;  %v8173_v58 = vld [vmem:[%s11406_s3 + $0x514] ss:$24 sps:$4 sm:$0xff]  }
 0x2b3   :  { %v1927_v20 = vpop.f32.mrf.mxu1  ;;  %v8167_v3 = vld [vmem:[%s11406_s3 + $0x544] ss:$24 sps:$4 sm:$0xff]   ;;  %v8141_v60 = vld [vmem:[%s11406_s3 + $0x180] ss:$24 sps:$4 sm:$0xff]  }
 0x2b4   :  { %v8171_v20 = vld [vmem:[%s11406_s3 + $0x510] ss:$24 sps:$4 sm:$0xff]  }
 0x2b5   :  { %5570 = vmatpush1.bf16.msra.mxu0 %v8081_v8  ;;  %5609 = vmatpush1.bf16.msra.mxu1 %v8108_v23  ;;  %v8129_v8 = vld [vmem:[%s11406_s3 + $0x1e0] ss:$24 sps:$4 sm:$0xff]  }
 0x2b6   :  { %5571 = vmatprep.subr.bf16.mxu0 %v8086_v35  ;;  %5610 = vmatprep.subr.bf16.mxu1 %v8116_v15  ;;  %v8135_v35 = vld [vmem:[%s11406_s3 + $0x1b0] ss:$24 sps:$4 sm:$0xff]   ;;  %v8177_v23 = vld [vmem:[%s11406_s3 + $0x4e0] ss:$24 sps:$4 sm:$0xff]  }
 0x2b7   :  { %v8183_v15 = vld [vmem:[%s11406_s3 + $0x4b0] ss:$24 sps:$4 sm:$0xff]  }
 0x2b9   :  { %5572 = vmatpush1.bf16.msra.mxu0 %v8084_v61  ;;  %5611 = vmatpush1.bf16.msra.mxu1 %v8114_v6  ;;  %v8152_v61 = vld [vmem:[%s11406_s3 + $0x754] ss:$24 sps:$4 sm:$0xff]  }
 0x2ba   :  { %5573 = vmatprep.subr.bf16.mxu0 %v8089_v4  ;;  %5612 = vmatprep.subr.bf16.mxu1 %v8122_v46  ;;  %v8179_v4 = vld [vmem:[%s11406_s3 + $0x4e4] ss:$24 sps:$4 sm:$0xff]  }
 0x2bd   :  { %5574 = vmatpush1.bf16.msra.mxu0 %v8087_v62  ;;  %5613 = vmatpush1.bf16.msra.mxu1 %v8120_v21  ;;  %v8185_v62 = vld [vmem:[%s11406_s3 + $0x4b4] ss:$24 sps:$4 sm:$0xff]  }
 0x2be   :  { %5575 = vmatprep.subr.bf16.mxu0 %v8092_v14  ;;  %5614 = vmatprep.subr.bf16.mxu1 %v8128_v63 }
 0x2c1   :  { %5576 = vmatpush1.bf16.msra.mxu0 %v8090_v44  ;;  %5615 = vmatpush1.bf16.msra.mxu1 %v8126_v55 }
 0x2c2   :  { %5577 = vmatprep.subr.bf16.mxu0 %v8095_v48  ;;  %5616 = vmatprep.subr.bf16.mxu1 %v8134_v27  ;;  %v8189_v27 = vld [vmem:[%s11406_s3 + $0x480] ss:$24 sps:$4 sm:$0xff]  }
 0x2c5   :  { %5578 = vmatpush1.bf16.msra.mxu0 %v8093_v24  ;;  %5617 = vmatpush1.bf16.msra.mxu1 %v8132_v9  ;;  %v8191_v24 = vld [vmem:[%s11406_s3 + $0x484] ss:$24 sps:$4 sm:$0xff]  }
 0x2c6   :  { %5579 = vmatprep.subr.bf16.mxu0 %v8098_v59  ;;  %5618 = vmatprep.subr.bf16.mxu1 %v8140_v1 }
 0x2c9   :  { %5580 = vmatpush1.bf16.msra.mxu0 %v8096_v26  ;;  %5619 = vmatpush1.bf16.msra.mxu1 %v8138_v30 }
 0x2ca   :  { %5581 = vmatprep.subr.bf16.mxu0 %v8101_v40  ;;  %5620 = vmatprep.subr.bf16.mxu1 %v8146_v38 }
 0x2cc   :  { %v2306_v17 = vpop.f32.mrf.mxu0 }
 0x2cd   :  { %v10367_v11 = vadd.f32 %v2306_v17, %v10165_v50  ;;  %v2347_v33 = vpop.f32.mrf.mxu1  ;;  %5582 = vmatpush2.bf16.msra.mxu0 %v8099_v28  ;;  %5621 = vmatpush1.bf16.msra.mxu1 %v8144_v10 }
 0x2ce   :  { %v10370_v34 = vadd.f32 %v2347_v33, %v10264_v53  ;;  %v2308_v36 = vpop.f32.mrf.mxu0  ;;  %5583 = vmatprep.subr.bf16.mxu0 %v8107_v19  ;;  %5622 = vmatprep.subr.bf16.mxu1 %v8149_v49  ;;  %v8153_v53 = vld [vmem:[%s11406_s3 + $0x5a0] ss:$24 sps:$4 sm:$0xff]  }
 0x2cf   :  { %v10379_v39 = vadd.f32 %v2308_v36, %v10181_v22  ;;  %v2349_v50 = vpop.f32.mrf.mxu1  ;;  %v8119_v22 = vld [vmem:[%s11406_s3 + $0x244] ss:$24 sps:$4 sm:$0xff]  }
 0x2d0   :  { %v10388_v42 = vadd.f32 %v2349_v50, %v10274_v57  ;;  %v2310_v2 = vpop.f32.mrf.mxu0  ;;  %v8159_v57 = vld [vmem:[%s11406_s3 + $0x570] ss:$24 sps:$4 sm:$0xff]  }
 0x2d1   :  { %v2351_v43 = vpop.f32.mrf.mxu1  ;;  %5584 = vmatpush2.bf16.msra.mxu0 %v8105_v31  ;;  %5623 = vmatpush2.bf16.msra.mxu1 %v8147_v52 }
 0x2d2   :  { %v2311_v47 = vpop.f32.mrf.mxu0  ;;  %5585 = vmatprep.subr.bf16.mxu0 %v8113_v37  ;;  %5624 = vmatprep.subr.bf16.mxu1 %v8155_v12 }
 0x2d3   :  { %v2352_v7 = vpop.f32.mrf.mxu1 }
 0x2d5   :  { %5586 = vmatpush2.bf16.msra.mxu0 %v8111_v29  ;;  %5625 = vmatpush2.bf16.msra.mxu1 %v8153_v53 }
 0x2d6   :  { %5587 = vmatprep.subr.bf16.mxu0 %v8119_v22  ;;  %5626 = vmatprep.subr.bf16.mxu1 %v8161_v16 }
 0x2d9   :  { %5588 = vmatpush2.bf16.msra.mxu0 %v8117_v51  ;;  %5627 = vmatpush2.bf16.msra.mxu1 %v8159_v57 }
 0x2da   :  { %5589 = vmatprep.subr.bf16.mxu0 %v8125_v32  ;;  %5628 = vmatprep.subr.bf16.mxu1 %v8167_v3 }
 0x2dd   :  { %5590 = vmatpush2.bf16.msra.mxu0 %v8123_v13  ;;  %5629 = vmatpush2.bf16.msra.mxu1 %v8165_v41 }
 0x2de   :  { %5591 = vmatprep.subr.bf16.mxu0 %v8131_v56  ;;  %5630 = vmatprep.subr.bf16.mxu1 %v8173_v58  ;;  %v8162_v58 = vld [vmem:[%s11406_s3 + $0x6f0] ss:$24 sps:$4 sm:$0xff]  }
 0x2e1   :  { %5592 = vmatpush2.bf16.msra.mxu0 %v8129_v8  ;;  %5631 = vmatpush2.bf16.msra.mxu1 %v8171_v20  ;;  %v8164_v20 = vld [vmem:[%s11406_s3 + $0x6f4] ss:$24 sps:$4 sm:$0xff]  }
 0x2e2   :  { %5593 = vmatprep.subr.bf16.mxu0 %v8137_v45  ;;  %5632 = vmatprep.subr.bf16.mxu1 %v8179_v4  ;;  %v8150_v45 = vld [vmem:[%s11406_s3 + $0x750] ss:$24 sps:$4 sm:$0xff]  }
 0x2e3   :  { %v8174_v4 = vld [vmem:[%s11406_s3 + $0x690] ss:$24 sps:$4 sm:$0xff]  }
 0x2e5   :  { %5594 = vmatpush2.bf16.msra.mxu0 %v8135_v35  ;;  %5633 = vmatpush2.bf16.msra.mxu1 %v8177_v23  ;;  %v8158_v35 = vld [vmem:[%s11406_s3 + $0x724] ss:$24 sps:$4 sm:$0xff]   ;;  %v8176_v23 = vld [vmem:[%s11406_s3 + $0x694] ss:$24 sps:$4 sm:$0xff]  }
 0x2e6   :  { %5595 = vmatprep.subr.bf16.mxu0 %v8143_v25  ;;  %5634 = vmatprep.subr.bf16.mxu1 %v8185_v62  ;;  %v8156_v25 = vld [vmem:[%s11406_s3 + $0x720] ss:$24 sps:$4 sm:$0xff]  }
 0x2e7   :  { %v8180_v62 = vld [vmem:[%s11406_s3 + $0x660] ss:$24 sps:$4 sm:$0xff]  }
 0x2e9   :  { %5596 = vmatpush2.bf16.msra.mxu0 %v8141_v60  ;;  %5635 = vmatpush2.bf16.msra.mxu1 %v8183_v15  ;;  %v8170_v60 = vld [vmem:[%s11406_s3 + $0x6c4] ss:$24 sps:$4 sm:$0xff]  }
 0x2ea   :  { %5647 = vmatprep.subr.bf16.mxu0 %v8152_v61  ;;  %5636 = vmatprep.subr.bf16.mxu1 %v8191_v24  ;;  %v8168_v61 = vld [vmem:[%s11406_s3 + $0x6c0] ss:$24 sps:$4 sm:$0xff]   ;;  %v8182_v15 = vld [vmem:[%s11406_s3 + $0x664] ss:$24 sps:$4 sm:$0xff]  }
 0x2ec   :  { %v2388_v6 = vpop.f32.mrf.mxu0 }
 0x2ed   :  { %v2399_v14 = vadd.f32 %v2388_v6, %v10268_v54  ;;  %v2772_v46 = vpop.f32.mrf.mxu1  ;;  %5637 = vmatpush2.bf16.msra.mxu1 %v8189_v27  ;;  %v8188_v6 = vld [vmem:[%s11406_s3 + $0x634] ss:$24 sps:$4 sm:$0xff]  }
 0x2ee   :  { %v2861_v44 = vadd.f32 %v2772_v46, %v10367_v11  ;;  %v2390_v21 = vpop.f32.mrf.mxu0  ;;  %v8194_v46 = vld [vmem:[%s11406_s3 + $0x604] ss:$24 sps:$4 sm:$0xff]  }
 0x2ef   :  { %v2400_v48 = vadd.f32 %v2390_v21, %v10280_v18  ;;  %v2774_v63 = vpop.f32.mrf.mxu1  ;;  %v8200_v18 = vld [vmem:[%s11406_s3 + $0x15c] ss:$24 sps:$4 sm:$0xff]  }
 0x2f0   :  { %v2862_v55 = vadd.f32 %v2774_v63, %v10379_v39  ;;  %v2392_v59 = vpop.f32.mrf.mxu0  ;;  %5688 = vmatprep.subr.bf16.mxu1 %v8200_v18 }
 0x2f1   :  { %v2776_v54 = vpop.f32.mrf.mxu1  ;;  %v8192_v59 = vld [vmem:[%s11406_s3 + $0x600] ss:$24 sps:$4 sm:$0xff]  }
 0x2f2   :  { %v2393_v26 = vpop.f32.mrf.mxu0 }
 0x2f3   :  { %v2777_v9 = vpop.f32.mrf.mxu1  ;;  %v8197_v26 = vld [vmem:[%s11406_s3 + $0x8d4] ss:$24 sps:$4 sm:$0xff]  }
 0x30c   :  { %v2813_v40 = vpop.f32.mrf.mxu0 }
 0x30d   :  { %v2863_v1 = vadd.f32 %v2813_v40, %v10370_v34  ;;  %v2854_v28 = vpop.f32.mrf.mxu1 }
 0x30e   :  { %v2865_v30 = vadd.f32 %v2854_v28, %v2399_v14  ;;  %v2815_v19 = vpop.f32.mrf.mxu0  ;;  %v8186_v14 = vld [vmem:[%s11406_s3 + $0x630] ss:$24 sps:$4 sm:$0xff]  }
 0x30f   :  { %v2864_v31 = vadd.f32 %v2815_v19, %v10388_v42  ;;  %v2856_v17 = vpop.f32.mrf.mxu1  ;;  %v8198_v28 = vld [vmem:[%s11406_s3 + $0x158] ss:$24 sps:$4 sm:$0xff]  }
 0x310   :  { %v2866_v11 = vadd.f32 %v2856_v17, %v2400_v48  ;;  %v2817_v33 = vpop.f32.mrf.mxu0  ;;  %v8195_v17 = vld [vmem:[%s11406_s3 + $0x8d0] ss:$24 sps:$4 sm:$0xff]  }
 0x311   :  { %v2858_v36 = vpop.f32.mrf.mxu1 }
 0x312   :  { %v2818_v37 = vpop.f32.mrf.mxu0  ;;  %v8203_v36 = vld [vmem:[%s11406_s3 + $0x8a4] ss:$24 sps:$4 sm:$0xff]  }
 0x313   :  { %v2859_v38 = vpop.f32.mrf.mxu1  ;;  %v8204_v37 = vld [vmem:[%s11406_s3 + $0x128] ss:$24 sps:$4 sm:$0xff]  }
 0x314   :  { %v8201_v38 = vld [vmem:[%s11406_s3 + $0x8a0] ss:$24 sps:$4 sm:$0xff]  }
 0x32c   :  { %v3238_v39 = vpop.f32.mrf.mxu0 }
 0x32d   :  { %v3279_v50 = vpop.f32.mrf.mxu1  ;;  %v3327_v7 = vadd.f32 %v3238_v39, %v2861_v44  ;;  %v8212_v39 = vld [vmem:[%s11406_s3 + $0xfc] ss:$24 sps:$4 sm:$0xff]  }
 0x32e   :  { %v3329_v29 = vadd.f32 %v3279_v50, %v2863_v1  ;;  %v3240_v10 = vpop.f32.mrf.mxu0  ;;  %v8209_v50 = vld [vmem:[%s11406_s3 + $0x874] ss:$24 sps:$4 sm:$0xff]  }
 0x32f   :  { %v3281_v2 = vpop.f32.mrf.mxu1  ;;  %v3328_v52 = vadd.f32 %v3240_v10, %v2862_v55  ;;  %v8207_v10 = vld [vmem:[%s11406_s3 + $0x870] ss:$24 sps:$4 sm:$0xff]  }
 0x330   :  { %v3242_v43 = vpop.f32.mrf.mxu0  ;;  %v3330_v21 = vadd.f32 %v3281_v2, %v2864_v31  ;;  %v8218_v2 = vld [vmem:[%s11406_s3 + $0xcc] ss:$24 sps:$4 sm:$0xff]  }
 0x331   :  { %v3283_v47 = vpop.f32.mrf.mxu1  ;;  %v8215_v43 = vld [vmem:[%s11406_s3 + $0x844] ss:$24 sps:$4 sm:$0xff]  }
 0x332   :  { %v3243_v22 = vpop.f32.mrf.mxu0  ;;  %v8216_v47 = vld [vmem:[%s11406_s3 + $0xc8] ss:$24 sps:$4 sm:$0xff]  }
 0x333   :  { %v3284_v34 = vpop.f32.mrf.mxu1  ;;  %v8213_v22 = vld [vmem:[%s11406_s3 + $0x840] ss:$24 sps:$4 sm:$0xff]  }
 0x334   :  { %v8224_v34 = vld [vmem:[%s11406_s3 + $0x9c] ss:$24 sps:$4 sm:$0xff]  }
 0x34c   :  { %v3320_v49 = vpop.f32.mrf.mxu0 }
 0x34d   :  { %v10480_v51 = vadd.f32 %v3320_v49, %v2865_v30  ;;  %v3704_v42 = vpop.f32.mrf.mxu1  ;;  %v8221_v49 = vld [vmem:[%s11406_s3 + $0x814] ss:$24 sps:$4 sm:$0xff]  }
 0x34e   :  { %v3322_v32 = vpop.f32.mrf.mxu0  ;;  %v3793_v53 = vadd.f32 %v3704_v42, %v3327_v7  ;;  %v8222_v7 = vld [vmem:[%s11406_s3 + $0x98] ss:$24 sps:$4 sm:$0xff]  }
 0x34f   :  { %v3706_v12 = vpop.f32.mrf.mxu1  ;;  %v3332_v63 = vadd.f32 %v3322_v32, %v2866_v11  ;;  %v8206_v11 = vld [vmem:[%s11406_s3 + $0x12c] ss:$24 sps:$4 sm:$0xff]   ;;  %v8219_v42 = vld [vmem:[%s11406_s3 + $0x810] ss:$24 sps:$4 sm:$0xff]  }
 0x350   :  { %v3794_v13 = vadd.f32 %v3706_v12, %v3328_v52  ;;  %v3324_v56 = vpop.f32.mrf.mxu0  ;;  %v10487_v41 = vpack.c.bf16 %v3793_v53, %v3793_v53  ;;  %v8230_v52 = vld [vmem:[%s11406_s3 + $0x6c] ss:$24 sps:$4 sm:$0xff]   ;;  %v8228_v53 = vld [vmem:[%s11406_s3 + $0x68] ss:$24 sps:$4 sm:$0xff]  }
 0x351   :  { %v3708_v57 = vpop.f32.mrf.mxu1  ;;  %v8227_v32 = vld [vmem:[%s11406_s3 + $0x7e4] ss:$24 sps:$4 sm:$0xff]   ;;  %v8225_v12 = vld [vmem:[%s11406_s3 + $0x7e0] ss:$24 sps:$4 sm:$0xff]   ;;  %v8233_v56 = vld [vmem:[%s11406_s3 + $0x7b4] ss:$24 sps:$4 sm:$0xff]  }
 0x352   :  { %v10482_v16 = vpack.c.bf16 %v3794_v13, %v3794_v13  ;;  %v3325_v8 = vpop.f32.mrf.mxu0  ;;  %v8236_v13 = vld [vmem:[%s11406_s3 + $0x3c] ss:$24 sps:$4 sm:$0xff]   ;;  %v8234_v57 = vld [vmem:[%s11406_s3 + $0x38] ss:$24 sps:$4 sm:$0xff]  }
 0x353   :  { %v3709_v3 = vpop.f32.mrf.mxu1  ;;  %v8231_v8 = vld [vmem:[%s11406_s3 + $0x7b0] ss:$24 sps:$4 sm:$0xff]  }
 0x354   :  { %5597 = vmatprep.mubr.bf16.mxu0 %v10482_v16  ;;  %v8239_v3 = vld [vmem:[%s11406_s3 + $0x784] ss:$24 sps:$4 sm:$0xff]  }
 0x355   :  { %5598 = vmatmul.mubr.bf16.vlgmr.msra.gmra.mxu0 %v10487_v41 }
 0x356   :  { %5648 = vmatpush1.bf16.msra.mxu0 %v8150_v45  ;;  %v8242_v45 = vld [vmem:[%s11406_s3 + $0xc] ss:$24 sps:$4 sm:$0xff]  }
 0x357   :  { %5649 = vmatprep.subr.bf16.mxu0 %v8158_v35  ;;  %v8240_v35 = vld [vmem:[%s11406_s3 + $0x8] ss:$24 sps:$4 sm:$0xff]  }
 0x35a   :  { %5650 = vmatpush1.bf16.msra.mxu0 %v8156_v25  ;;  %v8237_v25 = vld [vmem:[%s11406_s3 + $0x780] ss:$24 sps:$4 sm:$0xff]  }
 0x35b   :  { %5651 = vmatprep.subr.bf16.mxu0 %v8164_v20  ;;  %v8245_v20 = vld [vmem:[%s11406_s3 + $0x2dc] ss:$24 sps:$4 sm:$0xff]  }
 0x35e   :  { %5652 = vmatpush1.bf16.msra.mxu0 %v8162_v58 }
 0x35f   :  { %5653 = vmatprep.subr.bf16.mxu0 %v8170_v60  ;;  %v8248_v60 = vld [vmem:[%s11406_s3 + $0x45c] ss:$24 sps:$4 sm:$0xff]  }
 0x362   :  { %5654 = vmatpush1.bf16.msra.mxu0 %v8168_v61  ;;  %v8243_v61 = vld [vmem:[%s11406_s3 + $0x2d8] ss:$24 sps:$4 sm:$0xff]  }
 0x363   :  { %5655 = vmatprep.subr.bf16.mxu0 %v8176_v23  ;;  %v8246_v23 = vld [vmem:[%s11406_s3 + $0x458] ss:$24 sps:$4 sm:$0xff]  }
 0x366   :  { %5656 = vmatpush1.bf16.msra.mxu0 %v8174_v4 }
 0x367   :  { %5657 = vmatprep.subr.bf16.mxu0 %v8182_v15  ;;  %v8254_v15 = vld [vmem:[%s11406_s3 + $0x42c] ss:$24 sps:$4 sm:$0xff]  }
 0x36a   :  { %5658 = vmatpush1.bf16.msra.mxu0 %v8180_v62  ;;  %v8249_v62 = vld [vmem:[%s11406_s3 + $0x2a8] ss:$24 sps:$4 sm:$0xff]  }
 0x36b   :  { %5659 = vmatprep.subr.bf16.mxu0 %v8188_v6  ;;  %v8252_v6 = vld [vmem:[%s11406_s3 + $0x428] ss:$24 sps:$4 sm:$0xff]  }
 0x36c   :  { %v3745_v44 = vpop.f32.mrf.mxu0 }
 0x36d   :  { %v10530_v48 = vpop.f32.mrf.mxu1  ;;  %v3795_v24 = vadd.f32 %v3745_v44, %v3329_v29  ;;  %v8210_v29 = vld [vmem:[%s11406_s3 + $0xf8] ss:$24 sps:$4 sm:$0xff]  }
 0x36e   :  { %5660 = vmatpush1.bf16.msra.mxu0 %v8186_v14  ;;  %v3747_v55 = vpop.f32.mrf.mxu0  ;;  %v3797_v58 = vadd.f32 %v10530_v48, %v10480_v51  ;;  %v8251_v51 = vld [vmem:[%s11406_s3 + $0x2ac] ss:$24 sps:$4 sm:$0xff]   ;;  %v8257_v14 = vld [vmem:[%s11406_s3 + $0x27c] ss:$24 sps:$4 sm:$0xff]   ;;  %v8255_v44 = vld [vmem:[%s11406_s3 + $0x278] ss:$24 sps:$4 sm:$0xff]  }
 0x36f   :  { %v3796_v27 = vadd.f32 %v3747_v55, %v3330_v21  ;;  %v3788_v54 = vpop.f32.mrf.mxu1  ;;  %5661 = vmatprep.subr.bf16.mxu0 %v8194_v46  ;;  %v10543_v30 = vpack.c.bf16 %v3795_v24, %v3795_v24  ;;  %v8260_v46 = vld [vmem:[%s11406_s3 + $0x3fc] ss:$24 sps:$4 sm:$0xff]   ;;  %v8258_v21 = vld [vmem:[%s11406_s3 + $0x3f8] ss:$24 sps:$4 sm:$0xff]   ;;  %v8263_v48 = vld [vmem:[%s11406_s3 + $0x24c] ss:$24 sps:$4 sm:$0xff]  }
 0x370   :  { %v3798_v9 = vadd.f32 %v3788_v54, %v3332_v63  ;;  %v3749_v18 = vpop.f32.mrf.mxu0  ;;  %v10652_v4 = vpack.c.bf16 %v3797_v58, %v3797_v58  ;;  %v8266_v63 = vld [vmem:[%s11406_s3 + $0x3cc] ss:$24 sps:$4 sm:$0xff]   ;;  %v8261_v24 = vld [vmem:[%s11406_s3 + $0x248] ss:$24 sps:$4 sm:$0xff]   ;;  %v8267_v54 = vld [vmem:[%s11406_s3 + $0x218] ss:$24 sps:$4 sm:$0xff]  }
 0x371   :  { %v10538_v40 = vpack.c.bf16 %v3796_v27, %v3796_v27  ;;  %v3790_v1 = vpop.f32.mrf.mxu1  ;;  %v8264_v55 = vld [vmem:[%s11406_s3 + $0x3c8] ss:$24 sps:$4 sm:$0xff]   ;;  %v8272_v27 = vld [vmem:[%s11406_s3 + $0x39c] ss:$24 sps:$4 sm:$0xff]   ;;  %v8278_v18 = vld [vmem:[%s11406_s3 + $0x36c] ss:$24 sps:$4 sm:$0xff]  }
 0x372   :  { %v10545_v19 = vpack.c.bf16 %v3798_v9, %v3798_v9  ;;  %5662 = vmatpush1.bf16.msra.mxu0 %v8192_v59  ;;  %v3750_v31 = vpop.f32.mrf.mxu0  ;;  %v8269_v59 = vld [vmem:[%s11406_s3 + $0x21c] ss:$24 sps:$4 sm:$0xff]   ;;  %v8275_v9 = vld [vmem:[%s11406_s3 + $0x1ec] ss:$24 sps:$4 sm:$0xff]   ;;  %v8273_v1 = vld [vmem:[%s11406_s3 + $0x1e8] ss:$24 sps:$4 sm:$0xff]  }
 0x373   :  { %v3791_v33 = vpop.f32.mrf.mxu1  ;;  %5638 = vmatprep.mubr.bf16.mxu1 %v10538_v40  ;;  %5663 = vmatprep.subr.bf16.mxu0 %v8197_v26  ;;  %v8270_v26 = vld [vmem:[%s11406_s3 + $0x398] ss:$24 sps:$4 sm:$0xff]   ;;  %v8281_v31 = vld [vmem:[%s11406_s3 + $0x1bc] ss:$24 sps:$4 sm:$0xff]  }
 0x374   :  { %5679 = vmatprep.mubr.bf16.mxu0 %v10545_v19  ;;  %5639 = vmatmul.mubr.bf16.vlgmr.msra.gmra.mxu1 %v10543_v30  ;;  %v8282_v33 = vld [vmem:[%s11406_s3 + $0x338] ss:$24 sps:$4 sm:$0xff]   ;;  %v8332_v58 = vld [vmem:[%s11406_s3 + $0x63c] ss:$24 sps:$4 sm:$0xff]  }
 0x375   :  { %5689 = vmatpush1.bf16.msra.mxu1 %v8198_v28  ;;  %5720 = vmatprep.mubr.bf16.mxu1 %v10482_v16  ;;  %v8276_v28 = vld [vmem:[%s11406_s3 + $0x368] ss:$24 sps:$4 sm:$0xff]  }
 0x376   :  { %5664 = vmatpush2.bf16.msra.mxu0 %v8195_v17  ;;  %5690 = vmatprep.subr.bf16.mxu1 %v8206_v11  ;;  %v8284_v17 = vld [vmem:[%s11406_s3 + $0x33c] ss:$24 sps:$4 sm:$0xff]   ;;  %v8279_v11 = vld [vmem:[%s11406_s3 + $0x1b8] ss:$24 sps:$4 sm:$0xff]  }
 0x377   :  { %5665 = vmatprep.subr.bf16.mxu0 %v8203_v36  ;;  %v8287_v36 = vld [vmem:[%s11406_s3 + $0x18c] ss:$24 sps:$4 sm:$0xff]  }
 0x379   :  { %5691 = vmatpush1.bf16.msra.mxu1 %v8204_v37  ;;  %v8290_v37 = vld [vmem:[%s11406_s3 + $0x30c] ss:$24 sps:$4 sm:$0xff]  }
 0x37a   :  { %5666 = vmatpush2.bf16.msra.mxu0 %v8201_v38  ;;  %5692 = vmatprep.subr.bf16.mxu1 %v8212_v39  ;;  %v8285_v38 = vld [vmem:[%s11406_s3 + $0x188] ss:$24 sps:$4 sm:$0xff]  }
 0x37b   :  { %5667 = vmatprep.subr.bf16.mxu0 %v8209_v50  ;;  %v8288_v39 = vld [vmem:[%s11406_s3 + $0x308] ss:$24 sps:$4 sm:$0xff]   ;;  %v8296_v50 = vld [vmem:[%s11406_s3 + $0x75c] ss:$24 sps:$4 sm:$0xff]  }
 0x37d   :  { %5693 = vmatpush1.bf16.msra.mxu1 %v8210_v29  ;;  %v8293_v29 = vld [vmem:[%s11406_s3 + $0x5dc] ss:$24 sps:$4 sm:$0xff]  }
 0x37e   :  { %5668 = vmatpush2.bf16.msra.mxu0 %v8207_v10  ;;  %5694 = vmatprep.subr.bf16.mxu1 %v8218_v2  ;;  %v8294_v10 = vld [vmem:[%s11406_s3 + $0x758] ss:$24 sps:$4 sm:$0xff]  }
 0x37f   :  { %5669 = vmatprep.subr.bf16.mxu0 %v8215_v43  ;;  %v8291_v2 = vld [vmem:[%s11406_s3 + $0x5d8] ss:$24 sps:$4 sm:$0xff]   ;;  %v8302_v43 = vld [vmem:[%s11406_s3 + $0x72c] ss:$24 sps:$4 sm:$0xff]  }
 0x381   :  { %5695 = vmatpush1.bf16.msra.mxu1 %v8216_v47  ;;  %v8299_v47 = vld [vmem:[%s11406_s3 + $0x5ac] ss:$24 sps:$4 sm:$0xff]  }
 0x382   :  { %5670 = vmatpush2.bf16.msra.mxu0 %v8213_v22  ;;  %5696 = vmatprep.subr.bf16.mxu1 %v8224_v34  ;;  %v8300_v22 = vld [vmem:[%s11406_s3 + $0x728] ss:$24 sps:$4 sm:$0xff]  }
 0x383   :  { %5671 = vmatprep.subr.bf16.mxu0 %v8221_v49  ;;  %v8297_v34 = vld [vmem:[%s11406_s3 + $0x5a8] ss:$24 sps:$4 sm:$0xff]   ;;  %v8308_v49 = vld [vmem:[%s11406_s3 + $0x6fc] ss:$24 sps:$4 sm:$0xff]  }
 0x385   :  { %5697 = vmatpush1.bf16.msra.mxu1 %v8222_v7  ;;  %v8305_v7 = vld [vmem:[%s11406_s3 + $0x57c] ss:$24 sps:$4 sm:$0xff]  }
 0x386   :  { %5672 = vmatpush2.bf16.msra.mxu0 %v8219_v42  ;;  %5698 = vmatprep.subr.bf16.mxu1 %v8230_v52  ;;  %v8306_v42 = vld [vmem:[%s11406_s3 + $0x6f8] ss:$24 sps:$4 sm:$0xff]  }
 0x387   :  { %5673 = vmatprep.subr.bf16.mxu0 %v8227_v32  ;;  %v8303_v52 = vld [vmem:[%s11406_s3 + $0x578] ss:$24 sps:$4 sm:$0xff]   ;;  %v8314_v32 = vld [vmem:[%s11406_s3 + $0x6cc] ss:$24 sps:$4 sm:$0xff]  }
 0x389   :  { %5699 = vmatpush1.bf16.msra.mxu1 %v8228_v53  ;;  %v8311_v53 = vld [vmem:[%s11406_s3 + $0x54c] ss:$24 sps:$4 sm:$0xff]  }
 0x38a   :  { %5674 = vmatpush2.bf16.msra.mxu0 %v8225_v12  ;;  %5700 = vmatprep.subr.bf16.mxu1 %v8236_v13  ;;  %v8312_v12 = vld [vmem:[%s11406_s3 + $0x6c8] ss:$24 sps:$4 sm:$0xff]  }
 0x38b   :  { %5675 = vmatprep.subr.bf16.mxu0 %v8233_v56  ;;  %v8309_v13 = vld [vmem:[%s11406_s3 + $0x548] ss:$24 sps:$4 sm:$0xff]   ;;  %v8320_v56 = vld [vmem:[%s11406_s3 + $0x69c] ss:$24 sps:$4 sm:$0xff]  }
 0x38d   :  { %5701 = vmatpush1.bf16.msra.mxu1 %v8234_v57  ;;  %v8317_v57 = vld [vmem:[%s11406_s3 + $0x51c] ss:$24 sps:$4 sm:$0xff]  }
 0x38e   :  { %5676 = vmatpush2.bf16.msra.mxu0 %v8231_v8  ;;  %5702 = vmatprep.subr.bf16.mxu1 %v8242_v45  ;;  %v8318_v8 = vld [vmem:[%s11406_s3 + $0x698] ss:$24 sps:$4 sm:$0xff]  }
 0x38f   :  { %5677 = vmatprep.subr.bf16.mxu0 %v8239_v3  ;;  %v8315_v45 = vld [vmem:[%s11406_s3 + $0x518] ss:$24 sps:$4 sm:$0xff]   ;;  %v8326_v3 = vld [vmem:[%s11406_s3 + $0x66c] ss:$24 sps:$4 sm:$0xff]  }
 0x391   :  { %5703 = vmatpush1.bf16.msra.mxu1 %v8240_v35  ;;  %v8323_v35 = vld [vmem:[%s11406_s3 + $0x4ec] ss:$24 sps:$4 sm:$0xff]  }
 0x392   :  { %5678 = vmatpush2.bf16.msra.mxu0 %v8237_v25  ;;  %5704 = vmatprep.subr.bf16.mxu1 %v8245_v20  ;;  %v8324_v25 = vld [vmem:[%s11406_s3 + $0x668] ss:$24 sps:$4 sm:$0xff]  }
 0x393   :  { %5729 = vmatprep.subr.bf16.mxu0 %v8248_v60  ;;  %v8321_v20 = vld [vmem:[%s11406_s3 + $0x4e8] ss:$24 sps:$4 sm:$0xff]   ;;  %v8329_v60 = vld [vmem:[%s11406_s3 + $0x4bc] ss:$24 sps:$4 sm:$0xff]  }
 0x395   :  { %5680 = vmatmul.mubr.bf16.vlgmr.msra.gmra.mxu0 %v10652_v4  ;;  %5705 = vmatpush2.bf16.msra.mxu1 %v8243_v61  ;;  %v8327_v61 = vld [vmem:[%s11406_s3 + $0x4b8] ss:$24 sps:$4 sm:$0xff]  }
 0x396   :  { %5730 = vmatpush1.bf16.msra.mxu0 %v8246_v23  ;;  %5761 = vmatprep.mubr.bf16.mxu0 %v10538_v40  ;;  %v8330_v23 = vld [vmem:[%s11406_s3 + $0x638] ss:$24 sps:$4 sm:$0xff]  }
 0x397   :  { %5706 = vmatprep.subr.bf16.mxu1 %v8251_v51  ;;  %5731 = vmatprep.subr.bf16.mxu0 %v8254_v15  ;;  %v8338_v51 = vld [vmem:[%s11406_s3 + $0x60c] ss:$24 sps:$4 sm:$0xff]  }
 0x398   :  { %v8335_v15 = vld [vmem:[%s11406_s3 + $0x48c] ss:$24 sps:$4 sm:$0xff]  }
 0x399   :  { %5707 = vmatpush2.bf16.msra.mxu1 %v8249_v62  ;;  %v8336_v62 = vld [vmem:[%s11406_s3 + $0x608] ss:$24 sps:$4 sm:$0xff]  }
 0x39a   :  { %5732 = vmatpush1.bf16.msra.mxu0 %v8252_v6  ;;  %5708 = vmatprep.subr.bf16.mxu1 %v8257_v14  ;;  %v8333_v6 = vld [vmem:[%s11406_s3 + $0x488] ss:$24 sps:$4 sm:$0xff]   ;;  %v8341_v14 = vld [vmem:[%s11406_s3 + $0x8dc] ss:$24 sps:$4 sm:$0xff]  }
 0x39b   :  { %5733 = vmatprep.subr.bf16.mxu0 %v8260_v46  ;;  %v8344_v46 = vld [vmem:[%s11406_s3 + $0x164] ss:$24 sps:$4 sm:$0xff]  }
 0x39d   :  { %5709 = vmatpush2.bf16.msra.mxu1 %v8255_v44  ;;  %v8339_v44 = vld [vmem:[%s11406_s3 + $0x8d8] ss:$24 sps:$4 sm:$0xff]  }
 0x39e   :  { %5734 = vmatpush1.bf16.msra.mxu0 %v8258_v21  ;;  %5710 = vmatprep.subr.bf16.mxu1 %v8263_v48  ;;  %v8342_v21 = vld [vmem:[%s11406_s3 + $0x160] ss:$24 sps:$4 sm:$0xff]   ;;  %v8347_v48 = vld [vmem:[%s11406_s3 + $0x8ac] ss:$24 sps:$4 sm:$0xff]  }
 0x39f   :  { %5735 = vmatprep.subr.bf16.mxu0 %v8266_v63  ;;  %v8350_v63 = vld [vmem:[%s11406_s3 + $0x134] ss:$24 sps:$4 sm:$0xff]  }
 0x3a1   :  { %5711 = vmatpush2.bf16.msra.mxu1 %v8261_v24  ;;  %v8345_v24 = vld [vmem:[%s11406_s3 + $0x8a8] ss:$24 sps:$4 sm:$0xff]  }
 0x3a2   :  { %5736 = vmatpush1.bf16.msra.mxu0 %v8264_v55  ;;  %5712 = vmatprep.subr.bf16.mxu1 %v8269_v59  ;;  %v8348_v55 = vld [vmem:[%s11406_s3 + $0x130] ss:$24 sps:$4 sm:$0xff]   ;;  %v8353_v59 = vld [vmem:[%s11406_s3 + $0x87c] ss:$24 sps:$4 sm:$0xff]  }
 0x3a3   :  { %5737 = vmatprep.subr.bf16.mxu0 %v8272_v27  ;;  %v8356_v27 = vld [vmem:[%s11406_s3 + $0x104] ss:$24 sps:$4 sm:$0xff]  }
 0x3a5   :  { %5713 = vmatpush2.bf16.msra.mxu1 %v8267_v54  ;;  %v8351_v54 = vld [vmem:[%s11406_s3 + $0x878] ss:$24 sps:$4 sm:$0xff]  }
 0x3a6   :  { %5738 = vmatpush1.bf16.msra.mxu0 %v8270_v26  ;;  %5714 = vmatprep.subr.bf16.mxu1 %v8275_v9  ;;  %v8354_v26 = vld [vmem:[%s11406_s3 + $0x100] ss:$24 sps:$4 sm:$0xff]   ;;  %v8359_v9 = vld [vmem:[%s11406_s3 + $0x84c] ss:$24 sps:$4 sm:$0xff]  }
 0x3a7   :  { %5739 = vmatprep.subr.bf16.mxu0 %v8278_v18  ;;  %v8357_v18 = vld [vmem:[%s11406_s3 + $0x848] ss:$24 sps:$4 sm:$0xff]  }
 0x3a9   :  { %5715 = vmatpush2.bf16.msra.mxu1 %v8273_v1  ;;  %v8360_v1 = vld [vmem:[%s11406_s3 + $0xd0] ss:$24 sps:$4 sm:$0xff]  }
 0x3aa   :  { %5740 = vmatpush1.bf16.msra.mxu0 %v8276_v28  ;;  %5716 = vmatprep.subr.bf16.mxu1 %v8281_v31  ;;  %v8365_v28 = vld [vmem:[%s11406_s3 + $0x81c] ss:$24 sps:$4 sm:$0xff]  }
 0x3ab   :  { %5741 = vmatprep.subr.bf16.mxu0 %v8284_v17  ;;  %v8368_v31 = vld [vmem:[%s11406_s3 + $0xa4] ss:$24 sps:$4 sm:$0xff]   ;;  %v8363_v17 = vld [vmem:[%s11406_s3 + $0x818] ss:$24 sps:$4 sm:$0xff]  }
 0x3ad   :  { %5717 = vmatpush2.bf16.msra.mxu1 %v8279_v11  ;;  %v8366_v11 = vld [vmem:[%s11406_s3 + $0xa0] ss:$24 sps:$4 sm:$0xff]  }
 0x3ae   :  { %5742 = vmatpush1.bf16.msra.mxu0 %v8282_v33  ;;  %5718 = vmatprep.subr.bf16.mxu1 %v8287_v36  ;;  %v8371_v33 = vld [vmem:[%s11406_s3 + $0x7ec] ss:$24 sps:$4 sm:$0xff]  }
 0x3af   :  { %5743 = vmatprep.subr.bf16.mxu0 %v8290_v37  ;;  %v8374_v36 = vld [vmem:[%s11406_s3 + $0x74] ss:$24 sps:$4 sm:$0xff]   ;;  %v8369_v37 = vld [vmem:[%s11406_s3 + $0x7e8] ss:$24 sps:$4 sm:$0xff]  }
 0x3b1   :  { %5719 = vmatpush2.bf16.msra.mxu1 %v8285_v38  ;;  %v8372_v38 = vld [vmem:[%s11406_s3 + $0x70] ss:$24 sps:$4 sm:$0xff]  }
 0x3b2   :  { %5744 = vmatpush1.bf16.msra.mxu0 %v8288_v39  ;;  %5770 = vmatprep.subr.bf16.mxu1 %v8296_v50  ;;  %v8377_v39 = vld [vmem:[%s11406_s3 + $0x7bc] ss:$24 sps:$4 sm:$0xff]  }
 0x3b3   :  { %5745 = vmatprep.subr.bf16.mxu0 %v8293_v29  ;;  %v8380_v50 = vld [vmem:[%s11406_s3 + $0x44] ss:$24 sps:$4 sm:$0xff]   ;;  %v8375_v29 = vld [vmem:[%s11406_s3 + $0x7b8] ss:$24 sps:$4 sm:$0xff]  }
 0x3b4   :  { %5721 = vmatmul.mubr.bf16.vlgmr.msra.gmra.mxu1 %v10487_v41 }
 0x3b5   :  { %5771 = vmatpush1.bf16.msra.mxu1 %v8294_v10  ;;  %5802 = vmatprep.mubr.bf16.mxu1 %v10545_v19  ;;  %v8378_v10 = vld [vmem:[%s11406_s3 + $0x40] ss:$24 sps:$4 sm:$0xff]  }
 0x3b6   :  { %5746 = vmatpush2.bf16.msra.mxu0 %v8291_v2  ;;  %5772 = vmatprep.subr.bf16.mxu1 %v8302_v43  ;;  %v8383_v2 = vld [vmem:[%s11406_s3 + $0x78c] ss:$24 sps:$4 sm:$0xff]   ;;  %v8381_v43 = vld [vmem:[%s11406_s3 + $0x788] ss:$24 sps:$4 sm:$0xff]  }
 0x3b7   :  { %5747 = vmatprep.subr.bf16.mxu0 %v8299_v47  ;;  %v8386_v47 = vld [vmem:[%s11406_s3 + $0x14] ss:$24 sps:$4 sm:$0xff]  }
 0x3b9   :  { %5773 = vmatpush1.bf16.msra.mxu1 %v8300_v22  ;;  %v8384_v22 = vld [vmem:[%s11406_s3 + $0x10] ss:$24 sps:$4 sm:$0xff]  }
 0x3ba   :  { %5748 = vmatpush2.bf16.msra.mxu0 %v8297_v34  ;;  %5774 = vmatprep.subr.bf16.mxu1 %v8308_v49  ;;  %v8392_v34 = vld [vmem:[%s11406_s3 + $0x464] ss:$24 sps:$4 sm:$0xff]  }
 0x3bb   :  { %5749 = vmatprep.subr.bf16.mxu0 %v8305_v7  ;;  %v8389_v49 = vld [vmem:[%s11406_s3 + $0x2e4] ss:$24 sps:$4 sm:$0xff]   ;;  %v8390_v7 = vld [vmem:[%s11406_s3 + $0x460] ss:$24 sps:$4 sm:$0xff]  }
 0x3bd   :  { %5775 = vmatpush1.bf16.msra.mxu1 %v8306_v42  ;;  %v8387_v42 = vld [vmem:[%s11406_s3 + $0x2e0] ss:$24 sps:$4 sm:$0xff]  }
 0x3be   :  { %5750 = vmatpush2.bf16.msra.mxu0 %v8303_v52  ;;  %5776 = vmatprep.subr.bf16.mxu1 %v8314_v32  ;;  %v8398_v52 = vld [vmem:[%s11406_s3 + $0x434] ss:$24 sps:$4 sm:$0xff]  }
 0x3bf   :  { %5751 = vmatprep.subr.bf16.mxu0 %v8311_v53  ;;  %v8395_v32 = vld [vmem:[%s11406_s3 + $0x2b4] ss:$24 sps:$4 sm:$0xff]   ;;  %v8396_v53 = vld [vmem:[%s11406_s3 + $0x430] ss:$24 sps:$4 sm:$0xff]  }
 0x3c1   :  { %5777 = vmatpush1.bf16.msra.mxu1 %v8312_v12  ;;  %v8393_v12 = vld [vmem:[%s11406_s3 + $0x2b0] ss:$24 sps:$4 sm:$0xff]  }
 0x3c2   :  { %5752 = vmatpush2.bf16.msra.mxu0 %v8309_v13  ;;  %5778 = vmatprep.subr.bf16.mxu1 %v8320_v56  ;;  %v8404_v13 = vld [vmem:[%s11406_s3 + $0x404] ss:$24 sps:$4 sm:$0xff]  }
 0x3c3   :  { %5753 = vmatprep.subr.bf16.mxu0 %v8317_v57  ;;  %v8401_v56 = vld [vmem:[%s11406_s3 + $0x284] ss:$24 sps:$4 sm:$0xff]   ;;  %v8399_v57 = vld [vmem:[%s11406_s3 + $0x280] ss:$24 sps:$4 sm:$0xff]  }
 0x3c5   :  { %5779 = vmatpush1.bf16.msra.mxu1 %v8318_v8  ;;  %v8410_v8 = vld [vmem:[%s11406_s3 + $0x3d4] ss:$24 sps:$4 sm:$0xff]  }
 0x3c6   :  { %5754 = vmatpush2.bf16.msra.mxu0 %v8315_v45  ;;  %5780 = vmatprep.subr.bf16.mxu1 %v8326_v3  ;;  %v8407_v45 = vld [vmem:[%s11406_s3 + $0x254] ss:$24 sps:$4 sm:$0xff]   ;;  %v8408_v3 = vld [vmem:[%s11406_s3 + $0x3d0] ss:$24 sps:$4 sm:$0xff]  }
 0x3c7   :  { %5755 = vmatprep.subr.bf16.mxu0 %v8323_v35  ;;  %v8405_v35 = vld [vmem:[%s11406_s3 + $0x250] ss:$24 sps:$4 sm:$0xff]  }
 0x3c9   :  { %5781 = vmatpush1.bf16.msra.mxu1 %v8324_v25  ;;  %v8416_v25 = vld [vmem:[%s11406_s3 + $0x3a4] ss:$24 sps:$4 sm:$0xff]  }
 0x3ca   :  { %5756 = vmatpush2.bf16.msra.mxu0 %v8321_v20  ;;  %5782 = vmatprep.subr.bf16.mxu1 %v8332_v58  ;;  %v8413_v20 = vld [vmem:[%s11406_s3 + $0x224] ss:$24 sps:$4 sm:$0xff]   ;;  %v8414_v58 = vld [vmem:[%s11406_s3 + $0x3a0] ss:$24 sps:$4 sm:$0xff]  }
 0x3cb   :  { %5757 = vmatprep.subr.bf16.mxu0 %v8329_v60  ;;  %v8411_v60 = vld [vmem:[%s11406_s3 + $0x220] ss:$24 sps:$4 sm:$0xff]  }
 0x3cd   :  { %5783 = vmatpush1.bf16.msra.mxu1 %v8330_v23  ;;  %v8419_v23 = vld [vmem:[%s11406_s3 + $0x1f4] ss:$24 sps:$4 sm:$0xff]  }
 0x3ce   :  { %5758 = vmatpush2.bf16.msra.mxu0 %v8327_v61  ;;  %5784 = vmatprep.subr.bf16.mxu1 %v8338_v51  ;;  %v8422_v61 = vld [vmem:[%s11406_s3 + $0x374] ss:$24 sps:$4 sm:$0xff]   ;;  %v8420_v51 = vld [vmem:[%s11406_s3 + $0x370] ss:$24 sps:$4 sm:$0xff]  }
 0x3cf   :  { %5759 = vmatprep.subr.bf16.mxu0 %v8335_v15  ;;  %v8417_v15 = vld [vmem:[%s11406_s3 + $0x1f0] ss:$24 sps:$4 sm:$0xff]  }
 0x3d1   :  { %5785 = vmatpush1.bf16.msra.mxu1 %v8336_v62  ;;  %v8428_v62 = vld [vmem:[%s11406_s3 + $0x344] ss:$24 sps:$4 sm:$0xff]  }
 0x3d2   :  { %5760 = vmatpush2.bf16.msra.mxu0 %v8333_v6  ;;  %5786 = vmatprep.subr.bf16.mxu1 %v8341_v14  ;;  %v8425_v6 = vld [vmem:[%s11406_s3 + $0x1c4] ss:$24 sps:$4 sm:$0xff]   ;;  %v8426_v14 = vld [vmem:[%s11406_s3 + $0x340] ss:$24 sps:$4 sm:$0xff]  }
 0x3d3   :  { %5811 = vmatprep.subr.bf16.mxu0 %v8344_v46  ;;  %v8423_v46 = vld [vmem:[%s11406_s3 + $0x1c0] ss:$24 sps:$4 sm:$0xff]  }
 0x3d5   :  { %5762 = vmatmul.mubr.bf16.vlgmr.msra.gmra.mxu0 %v10543_v30  ;;  %5787 = vmatpush2.bf16.msra.mxu1 %v8339_v44  ;;  %v8434_v44 = vld [vmem:[%s11406_s3 + $0x314] ss:$24 sps:$4 sm:$0xff]  }
 0x3d6   :  { %5812 = vmatpush1.bf16.msra.mxu0 %v8342_v21  ;;  %5843 = vmatprep.mubr.bf16.mxu0 %v10482_v16  ;;  %v8362_v16 = vld [vmem:[%s11406_s3 + $0xd4] ss:$24 sps:$4 sm:$0xff]  }
 0x3d7   :  { %5788 = vmatprep.subr.bf16.mxu1 %v8347_v48  ;;  %5813 = vmatprep.subr.bf16.mxu0 %v8350_v63  ;;  %v8431_v21 = vld [vmem:[%s11406_s3 + $0x194] ss:$24 sps:$4 sm:$0xff]   ;;  %v8432_v48 = vld [vmem:[%s11406_s3 + $0x310] ss:$24 sps:$4 sm:$0xff]  }
 0x3d8   :  { %v8429_v63 = vld [vmem:[%s11406_s3 + $0x190] ss:$24 sps:$4 sm:$0xff]  }
 0x3d9   :  { %5789 = vmatpush2.bf16.msra.mxu1 %v8345_v24  ;;  %v8437_v24 = vld [vmem:[%s11406_s3 + $0x5e4] ss:$24 sps:$4 sm:$0xff]  }
 0x3da   :  { %5814 = vmatpush1.bf16.msra.mxu0 %v8348_v55  ;;  %5790 = vmatprep.subr.bf16.mxu1 %v8353_v59  ;;  %v8440_v55 = vld [vmem:[%s11406_s3 + $0x764] ss:$24 sps:$4 sm:$0xff]   ;;  %v8435_v59 = vld [vmem:[%s11406_s3 + $0x5e0] ss:$24 sps:$4 sm:$0xff]  }
 0x3db   :  { %5815 = vmatprep.subr.bf16.mxu0 %v8356_v27  ;;  %v8438_v27 = vld [vmem:[%s11406_s3 + $0x760] ss:$24 sps:$4 sm:$0xff]  }
 0x3dd   :  { %5791 = vmatpush2.bf16.msra.mxu1 %v8351_v54  ;;  %v8443_v54 = vld [vmem:[%s11406_s3 + $0x5b4] ss:$24 sps:$4 sm:$0xff]  }
 0x3de   :  { %5816 = vmatpush1.bf16.msra.mxu0 %v8354_v26  ;;  %5792 = vmatprep.subr.bf16.mxu1 %v8359_v9  ;;  %v8446_v26 = vld [vmem:[%s11406_s3 + $0x734] ss:$24 sps:$4 sm:$0xff]  }
 0x3df   :  { %5817 = vmatprep.subr.bf16.mxu0 %v8362_v16  ;;  %v8441_v16 = vld [vmem:[%s11406_s3 + $0x5b0] ss:$24 sps:$4 sm:$0xff]  }
 0x3e1   :  { %5793 = vmatpush2.bf16.msra.mxu1 %v8357_v18  ;;  %v8444_v18 = vld [vmem:[%s11406_s3 + $0x730] ss:$24 sps:$4 sm:$0xff]  }
 0x3e2   :  { %5818 = vmatpush1.bf16.msra.mxu0 %v8360_v1  ;;  %5794 = vmatprep.subr.bf16.mxu1 %v8365_v28  ;;  %v8449_v1 = vld [vmem:[%s11406_s3 + $0x584] ss:$24 sps:$4 sm:$0xff]  }
 0x3e3   :  { %5819 = vmatprep.subr.bf16.mxu0 %v8368_v31 }
 0x3e5   :  { %5795 = vmatpush2.bf16.msra.mxu1 %v8363_v17  ;;  %v8450_v17 = vld [vmem:[%s11406_s3 + $0x700] ss:$24 sps:$4 sm:$0xff]  }
 0x3e6   :  { %5820 = vmatpush1.bf16.msra.mxu0 %v8366_v11  ;;  %5796 = vmatprep.subr.bf16.mxu1 %v8371_v33  ;;  %v8455_v11 = vld [vmem:[%s11406_s3 + $0x554] ss:$24 sps:$4 sm:$0xff]  }
 0x3e7   :  { %5821 = vmatprep.subr.bf16.mxu0 %v8374_v36  ;;  %v8458_v36 = vld [vmem:[%s11406_s3 + $0x6d4] ss:$24 sps:$4 sm:$0xff]  }
 0x3e9   :  { %5797 = vmatpush2.bf16.msra.mxu1 %v8369_v37  ;;  %v8453_v37 = vld [vmem:[%s11406_s3 + $0x550] ss:$24 sps:$4 sm:$0xff]  }
 0x3ea   :  { %5822 = vmatpush1.bf16.msra.mxu0 %v8372_v38  ;;  %5798 = vmatprep.subr.bf16.mxu1 %v8377_v39  ;;  %v8456_v38 = vld [vmem:[%s11406_s3 + $0x6d0] ss:$24 sps:$4 sm:$0xff]   ;;  %v8461_v39 = vld [vmem:[%s11406_s3 + $0x524] ss:$24 sps:$4 sm:$0xff]  }
 0x3eb   :  { %5823 = vmatprep.subr.bf16.mxu0 %v8380_v50  ;;  %v8464_v50 = vld [vmem:[%s11406_s3 + $0x6a4] ss:$24 sps:$4 sm:$0xff]  }
 0x3ed   :  { %5799 = vmatpush2.bf16.msra.mxu1 %v8375_v29  ;;  %v8459_v29 = vld [vmem:[%s11406_s3 + $0x520] ss:$24 sps:$4 sm:$0xff]  }
 0x3ee   :  { %5824 = vmatpush1.bf16.msra.mxu0 %v8378_v10  ;;  %5800 = vmatprep.subr.bf16.mxu1 %v8383_v2  ;;  %v8462_v10 = vld [vmem:[%s11406_s3 + $0x6a0] ss:$24 sps:$4 sm:$0xff]   ;;  %v8467_v2 = vld [vmem:[%s11406_s3 + $0x4f4] ss:$24 sps:$4 sm:$0xff]  }
 0x3ef   :  { %5825 = vmatprep.subr.bf16.mxu0 %v8386_v47  ;;  %v8465_v47 = vld [vmem:[%s11406_s3 + $0x4f0] ss:$24 sps:$4 sm:$0xff]  }
 0x3f1   :  { %5801 = vmatpush2.bf16.msra.mxu1 %v8381_v43  ;;  %v8470_v43 = vld [vmem:[%s11406_s3 + $0x674] ss:$24 sps:$4 sm:$0xff]  }
 0x3f2   :  { %5826 = vmatpush1.bf16.msra.mxu0 %v8384_v22  ;;  %5852 = vmatprep.subr.bf16.mxu1 %v8392_v34  ;;  %v8468_v22 = vld [vmem:[%s11406_s3 + $0x670] ss:$24 sps:$4 sm:$0xff]   ;;  %v8473_v34 = vld [vmem:[%s11406_s3 + $0x4c4] ss:$24 sps:$4 sm:$0xff]  }
 0x3f3   :  { %5827 = vmatprep.subr.bf16.mxu0 %v8389_v49  ;;  %v8476_v49 = vld [vmem:[%s11406_s3 + $0x644] ss:$24 sps:$4 sm:$0xff]  }
 0x3f4   :  { %5803 = vmatmul.mubr.bf16.vlgmr.msra.gmra.mxu1 %v10652_v4 }
 0x3f5   :  { %5853 = vmatpush1.bf16.msra.mxu1 %v8390_v7  ;;  %5884 = vmatprep.mubr.bf16.mxu1 %v10538_v40  ;;  %v8402_v40 = vld [vmem:[%s11406_s3 + $0x400] ss:$24 sps:$4 sm:$0xff]  }
 0x3f6   :  { %5828 = vmatpush2.bf16.msra.mxu0 %v8387_v42  ;;  %5854 = vmatprep.subr.bf16.mxu1 %v8398_v52  ;;  %v8471_v7 = vld [vmem:[%s11406_s3 + $0x4c0] ss:$24 sps:$4 sm:$0xff]   ;;  %v8479_v52 = vld [vmem:[%s11406_s3 + $0x494] ss:$24 sps:$4 sm:$0xff]  }
 0x3f7   :  { %5829 = vmatprep.subr.bf16.mxu0 %v8395_v32  ;;  %v8474_v42 = vld [vmem:[%s11406_s3 + $0x640] ss:$24 sps:$4 sm:$0xff]   ;;  %v8482_v32 = vld [vmem:[%s11406_s3 + $0x614] ss:$24 sps:$4 sm:$0xff]  }
 0x3f9   :  { %5855 = vmatpush1.bf16.msra.mxu1 %v8396_v53  ;;  %v8477_v53 = vld [vmem:[%s11406_s3 + $0x490] ss:$24 sps:$4 sm:$0xff]  }
 0x3fa   :  { %5830 = vmatpush2.bf16.msra.mxu0 %v8393_v12  ;;  %5856 = vmatprep.subr.bf16.mxu1 %v8404_v13  ;;  %v8480_v12 = vld [vmem:[%s11406_s3 + $0x610] ss:$24 sps:$4 sm:$0xff]   ;;  %v8501_v13 = vld [vmem:[%s11407_s5 + $0x78] sm:$0xff]  }
 0x3fb   :  { %5831 = vmatprep.subr.bf16.mxu0 %v8401_v56  ;;  %v8485_v56 = vld [vmem:[%s11406_s3 + $0x8e4] ss:$24 sps:$4 sm:$0xff]  }
 0x3fd   :  { %5857 = vmatpush1.bf16.msra.mxu1 %v8402_v40  ;;  %v8502_v40 = vld [vmem:[%s11407_s5 + $0x38] sm:$0xff]  }
 0x3fe   :  { %5832 = vmatpush2.bf16.msra.mxu0 %v8399_v57  ;;  %5858 = vmatprep.subr.bf16.mxu1 %v8410_v8  ;;  %v8483_v57 = vld [vmem:[%s11406_s3 + $0x8e0] ss:$24 sps:$4 sm:$0xff]   ;;  %v8506_v8 = vld [vmem:[%s11407_s5 + $0x70] sm:$0xff]  }
 0x3ff   :  { %5833 = vmatprep.subr.bf16.mxu0 %v8407_v45  ;;  %v8488_v45 = vld [vmem:[%s11406_s3 + $0x8b4] ss:$24 sps:$4 sm:$0xff]  }
 0x401   :  { %5859 = vmatpush1.bf16.msra.mxu1 %v8408_v3 }
 0x402   :  { %5834 = vmatpush2.bf16.msra.mxu0 %v8405_v35  ;;  %5860 = vmatprep.subr.bf16.mxu1 %v8416_v25  ;;  %v8507_v35 = vld [vmem:[%s11407_s5 + $0x30] sm:$0xff]  }
 0x403   :  { %5835 = vmatprep.subr.bf16.mxu0 %v8413_v20  ;;  %v8486_v20 = vld [vmem:[%s11406_s3 + $0x8b0] ss:$24 sps:$4 sm:$0xff]  }
 0x405   :  { %5861 = vmatpush1.bf16.msra.mxu1 %v8414_v58  ;;  %v8511_v58 = vld [vmem:[%s11407_s5 + $0x68] sm:$0xff]  }
 0x406   :  { %5836 = vmatpush2.bf16.msra.mxu0 %v8411_v60  ;;  %5862 = vmatprep.subr.bf16.mxu1 %v8422_v61  ;;  %v8512_v61 = vld [vmem:[%s11407_s5 + $0x28] sm:$0xff]  }
 0x407   :  { %5837 = vmatprep.subr.bf16.mxu0 %v8419_v23 }
 0x409   :  { %5863 = vmatpush1.bf16.msra.mxu1 %v8420_v51  ;;  %v8489_v51 = vld [vmem:[%s11406_s3 + $0x880] ss:$24 sps:$4 sm:$0xff]  }
 0x40a   :  { %5838 = vmatpush2.bf16.msra.mxu0 %v8417_v15  ;;  %5864 = vmatprep.subr.bf16.mxu1 %v8428_v62  ;;  %v8513_v15 = vld [vmem:[%s11407_s5 + $0x60] sm:$0xff]   ;;  %v8494_v62 = vld [vmem:[%s11406_s3 + $0x854] ss:$24 sps:$4 sm:$0xff]  }
 0x40b   :  { %5839 = vmatprep.subr.bf16.mxu0 %v8425_v6  ;;  %v8514_v6 = vld [vmem:[%s11407_s5 + $0x20] sm:$0xff]  }
 0x40d   :  { %5865 = vmatpush1.bf16.msra.mxu1 %v8426_v14  ;;  %v8492_v14 = vld [vmem:[%s11406_s3 + $0x850] ss:$24 sps:$4 sm:$0xff]  }
 0x40e   :  { %5840 = vmatpush2.bf16.msra.mxu0 %v8423_v46  ;;  %5866 = vmatprep.subr.bf16.mxu1 %v8434_v44  ;;  %v8515_v46 = vld [vmem:[%s11407_s5 + $0x58] sm:$0xff]  }
 0x40f   :  { %5841 = vmatprep.subr.bf16.mxu0 %v8431_v21  ;;  %v8497_v44 = vld [vmem:[%s11406_s3 + $0x824] ss:$24 sps:$4 sm:$0xff]  }
 0x410   :  { %v8516_v21 = vld [vmem:[%s11407_s5 + $0x18] sm:$0xff]  }
 0x411   :  { %5867 = vmatpush1.bf16.msra.mxu1 %v8432_v48  ;;  %v8495_v48 = vld [vmem:[%s11406_s3 + $0x820] ss:$24 sps:$4 sm:$0xff]  }
 0x412   :  { %5842 = vmatpush2.bf16.msra.mxu0 %v8429_v63  ;;  %5868 = vmatprep.subr.bf16.mxu1 %v8437_v24  ;;  %v8517_v63 = vld [vmem:[%s11407_s5 + $0x50] sm:$0xff]  }
 0x413   :  { %5893 = vmatprep.subr.bf16.mxu0 %v8440_v55  ;;  %v8500_v24 = vld [vmem:[%s11406_s3 + $0x7f4] ss:$24 sps:$4 sm:$0xff]  }
 0x414   :  { %v8518_v55 = vld [vmem:[%s11407_s5 + $0x10] sm:$0xff]  }
 0x415   :  { %5844 = vmatmul.mubr.bf16.vlgmr.msra.gmra.mxu0 %v10487_v41  ;;  %v11053_v9 = vpop.f32.mrf.mxu0  ;;  %5869 = vmatpush2.bf16.msra.mxu1 %v8435_v59  ;;  %v8452_v41 = vld [vmem:[%s11406_s3 + $0x704] ss:$24 sps:$4 sm:$0xff]   ;;  %v11211_v59 = vshrl.u32 %v48_v0, 7  ;;  %v8520_v0 = vld [vmem:[%s11407_s5 + $0x8] sm:$0xff]  }
 0x416   :  { %5894 = vmatpush1.bf16.msra.mxu0 %v8438_v27  ;;  %5925 = vmatprep.mubr.bf16.mxu0 %v10545_v19  ;;  %v8447_v19 = vld [vmem:[%s11406_s3 + $0x580] ss:$24 sps:$4 sm:$0xff]   ;;  %v8498_v27 = vld [vmem:[%s11406_s3 + $0x7f0] ss:$24 sps:$4 sm:$0xff]  }
 0x417   :  { %v11065_v28 = vpop.f32.mrf.mxu0  ;;  %5870 = vmatprep.subr.bf16.mxu1 %v8443_v54  ;;  %5895 = vmatprep.subr.bf16.mxu0 %v8446_v26  ;;  %v8519_v54 = vld [vmem:[%s11407_s5 + $0x48] sm:$0xff]   ;;  %v8505_v26 = vld [vmem:[%s11406_s3 + $0x7c4] ss:$24 sps:$4 sm:$0xff]  }
 0x419   :  { %v5603_v31 = vpop.f32.mrf.mxu0  ;;  %5871 = vmatpush2.bf16.msra.mxu1 %v8441_v16  ;;  %v4097_v16 = vsub.s32 0, %v11211_v59 }
 0x41a   :  { %5896 = vmatpush1.bf16.msra.mxu0 %v8444_v18  ;;  %5872 = vmatprep.subr.bf16.mxu1 %v8449_v1  ;;  %v8503_v18 = vld [vmem:[%s11406_s3 + $0x7c0] ss:$24 sps:$4 sm:$0xff]   ;;  %v8510_v31 = vld [vmem:[%s11406_s3 + $0x794] ss:$24 sps:$4 sm:$0xff]  }
 0x41b   :  { %v5604_v33 = vpop.f32.mrf.mxu0  ;;  %5897 = vmatprep.subr.bf16.mxu0 %v8452_v41  ;;  %v8521_v1 = vld [vmem:[%s11407_s5 + $0x40] sm:$0xff]  }
 0x41c   :  { %v11235_v41 = vld [vmem:[%s11408_s4] sm:$0x3f]  ;;  %v8508_v33 = vld [vmem:[%s11406_s3 + $0x790] ss:$24 sps:$4 sm:$0xff]  }
 0x41d   :  { %5873 = vmatpush2.bf16.msra.mxu1 %v8447_v19  ;;  %v4101_v19 = vsub.s32 1, %v11211_v59 }
 0x41e   :  { %5898 = vmatpush1.bf16.msra.mxu0 %v8450_v17  ;;  %5874 = vmatprep.subr.bf16.mxu1 %v8455_v11  ;;  %v8522_v17 = vld [vmem:[%s11407_s5] sm:$0xff]   ;;  %v4098_v11 = vrot.slane %v11235_v41, %v4097_v16 }
 0x41f   :  { %5899 = vmatprep.subr.bf16.mxu0 %v8458_v36  ;;  %v8523_v36 = vld [vmem:[%s11407_s5 + $0xf8] sm:$0xff]   ;;  %v8553_v16 = vld [vmem:[%s11407_s5 + $0x140] sm:$0xff]  }
 0x421   :  { %5875 = vmatpush2.bf16.msra.mxu1 %v8453_v37  ;;  %v4102_v37 = vrot.slane %v11235_v41, %v4101_v19 }
 0x422   :  { %5900 = vmatpush1.bf16.msra.mxu0 %v8456_v38  ;;  %5876 = vmatprep.subr.bf16.mxu1 %v8461_v39  ;;  %v5600_v38 = vadd.f32 %v11053_v9, %v4098_v11 }
 0x423   :  { %5901 = vmatprep.subr.bf16.mxu0 %v8464_v50  ;;  %v5602_v39 = vadd.f32 %v11065_v28, %v4102_v37  ;;  %v8524_v28 = vld [vmem:[%s11407_s5 + $0xb8] sm:$0xff]  }
 0x425   :  { %5877 = vmatpush2.bf16.msra.mxu1 %v8459_v29 }
 0x426   :  { %5902 = vmatpush1.bf16.msra.mxu0 %v8462_v10  ;;  %5878 = vmatprep.subr.bf16.mxu1 %v8467_v2 }
 0x427   :  { %5903 = vmatprep.subr.bf16.mxu0 %v8470_v43 }
 0x429   :  { %5879 = vmatpush2.bf16.msra.mxu1 %v8465_v47 }
 0x42a   :  { %5904 = vmatpush1.bf16.msra.mxu0 %v8468_v22  ;;  %5880 = vmatprep.subr.bf16.mxu1 %v8473_v34 }
 0x42b   :  { %5905 = vmatprep.subr.bf16.mxu0 %v8476_v49 }
 0x42d   :  { %5881 = vmatpush2.bf16.msra.mxu1 %v8471_v7 }
 0x42e   :  { %5906 = vmatpush1.bf16.msra.mxu0 %v8474_v42  ;;  %5882 = vmatprep.subr.bf16.mxu1 %v8479_v52  ;;  %v8526_v52 = vld [vmem:[%s11407_s5 + $0xb0] sm:$0xff]  }
 0x42f   :  { %5907 = vmatprep.subr.bf16.mxu0 %v8482_v32  ;;  %v8527_v32 = vld [vmem:[%s11407_s5 + $0xe8] sm:$0xff]  }
 0x431   :  { %5883 = vmatpush2.bf16.msra.mxu1 %v8477_v53  ;;  %v8528_v53 = vld [vmem:[%s11407_s5 + $0xa8] sm:$0xff]  }
 0x432   :  { %5908 = vmatpush1.bf16.msra.mxu0 %v8480_v12  ;;  %7322 = vmatprep.subr.bf16.mxu1 %v8501_v13  ;;  %v8529_v12 = vld [vmem:[%s11407_s5 + $0xe0] sm:$0xff]  }
 0x433   :  { %5909 = vmatprep.subr.bf16.mxu0 %v8485_v56  ;;  %v8530_v56 = vld [vmem:[%s11407_s5 + $0xa0] sm:$0xff]  }
 0x434   :  { %5885 = vmatmul.mubr.bf16.vlgmr.msra.gmra.mxu1 %v10543_v30  ;;  %v11155_v3 = vpop.f32.mrf.mxu1  ;;  %v8491_v30 = vld [vmem:[%s11406_s3 + $0x884] ss:$24 sps:$4 sm:$0xff]  }
 0x435   :  { %7323 = vmatpush3.bf16.msra.mxu1 %v8502_v40  ;;  %v5641_v50 = vadd.f32 %v11155_v3, %v5600_v38  ;;  %v8531_v40 = vld [vmem:[%s11407_s5 + $0xd8] sm:$0xff]   ;;  %v8533_v3 = vld [vmem:[%s11407_s5 + $0xd0] sm:$0xff]  }
 0x436   :  { %5910 = vmatpush2.bf16.msra.mxu0 %v8483_v57  ;;  %v11160_v25 = vpop.f32.mrf.mxu1  ;;  %7324 = vmatprep.subr.bf16.mxu1 %v8506_v8 }
 0x437   :  { %5911 = vmatprep.subr.bf16.mxu0 %v8488_v45  ;;  %v5643_v10 = vadd.f32 %v11160_v25, %v5602_v39  ;;  %v8532_v45 = vld [vmem:[%s11407_s5 + $0x98] sm:$0xff]  }
 0x438   :  { %v5644_v60 = vpop.f32.mrf.mxu1  ;;  %v8539_v25 = vld [vmem:[%s11407_s5 + $0x178] sm:$0xff]  }
 0x439   :  { %7325 = vmatpush3.bf16.msra.mxu1 %v8507_v35  ;;  %v8535_v60 = vld [vmem:[%s11407_s5 + $0xc8] sm:$0xff]  }
 0x43a   :  { %5912 = vmatpush2.bf16.msra.mxu0 %v8486_v20  ;;  %v5645_v23 = vpop.f32.mrf.mxu1  ;;  %7326 = vmatprep.subr.bf16.mxu1 %v8511_v58  ;;  %v8540_v20 = vld [vmem:[%s11407_s5 + $0x138] sm:$0xff]   ;;  %v8541_v58 = vld [vmem:[%s11407_s5 + $0x170] sm:$0xff]  }
 0x43b   :  { %5913 = vmatprep.subr.bf16.mxu0 %v8491_v30  ;;  %v8534_v30 = vld [vmem:[%s11407_s5 + $0x90] sm:$0xff]   ;;  %v8543_v23 = vld [vmem:[%s11407_s5 + $0x168] sm:$0xff]  }
 0x43d   :  { %7327 = vmatpush3.bf16.msra.mxu1 %v8512_v61  ;;  %v8542_v61 = vld [vmem:[%s11407_s5 + $0x130] sm:$0xff]  }
 0x43e   :  { %5914 = vmatpush2.bf16.msra.mxu0 %v8489_v51  ;;  %7328 = vmatprep.subr.bf16.mxu1 %v8513_v15  ;;  %v8536_v51 = vld [vmem:[%s11407_s5 + $0x88] sm:$0xff]   ;;  %v8537_v15 = vld [vmem:[%s11407_s5 + $0xc0] sm:$0xff]  }
 0x43f   :  { %5915 = vmatprep.subr.bf16.mxu0 %v8494_v62  ;;  %v8544_v62 = vld [vmem:[%s11407_s5 + $0x128] sm:$0xff]  }
 0x441   :  { %7329 = vmatpush3.bf16.msra.mxu1 %v8514_v6  ;;  %v8538_v6 = vld [vmem:[%s11407_s5 + $0x80] sm:$0xff]  }
 0x442   :  { %5916 = vmatpush2.bf16.msra.mxu0 %v8492_v14  ;;  %7330 = vmatprep.subr.bf16.mxu1 %v8515_v46  ;;  %v8545_v46 = vld [vmem:[%s11407_s5 + $0x160] sm:$0xff]  }
 0x443   :  { %5917 = vmatprep.subr.bf16.mxu0 %v8497_v44  ;;  %v8546_v44 = vld [vmem:[%s11407_s5 + $0x120] sm:$0xff]  }
 0x445   :  { %7331 = vmatpush3.bf16.msra.mxu1 %v8516_v21 }
 0x446   :  { %5918 = vmatpush2.bf16.msra.mxu0 %v8495_v48  ;;  %7332 = vmatprep.subr.bf16.mxu1 %v8517_v63  ;;  %v8547_v63 = vld [vmem:[%s11407_s5 + $0x158] sm:$0xff]  }
 0x447   :  { %5919 = vmatprep.subr.bf16.mxu0 %v8500_v24  ;;  %v8548_v24 = vld [vmem:[%s11407_s5 + $0x118] sm:$0xff]  }
 0x449   :  { %7333 = vmatpush3.bf16.msra.mxu1 %v8518_v55 }
 0x44a   :  { %5920 = vmatpush2.bf16.msra.mxu0 %v8498_v27  ;;  %7334 = vmatprep.subr.bf16.mxu1 %v8519_v54  ;;  %v8549_v27 = vld [vmem:[%s11407_s5 + $0x150] sm:$0xff]  }
 0x44b   :  { %5921 = vmatprep.subr.bf16.mxu0 %v8505_v26  ;;  %v8550_v54 = vld [vmem:[%s11407_s5 + $0x110] sm:$0xff]   ;;  %v8551_v26 = vld [vmem:[%s11407_s5 + $0x148] sm:$0xff]  }
 0x44d   :  { %7335 = vmatpush3.bf16.msra.mxu1 %v8520_v0  ;;  %v8552_v0 = vld [vmem:[%s11407_s5 + $0x108] sm:$0xff]  }
 0x44e   :  { %5922 = vmatpush2.bf16.msra.mxu0 %v8503_v18  ;;  %7336 = vmatprep.subr.bf16.mxu1 %v8521_v1  ;;  %v8554_v18 = vld [vmem:[%s11407_s5 + $0x100] sm:$0xff]   ;;  %v4105_v1 = vsub.s32 2, %v11211_v59 }
 0x44f   :  { %5923 = vmatprep.subr.bf16.mxu0 %v8510_v31  ;;  %v4109_v31 = vsub.s32 3, %v11211_v59 }
 0x450   :  { %v4106_v19 = vrot.slane %v11235_v41, %v4105_v1 }
 0x451   :  { %7337 = vmatpush3.bf16.msra.mxu1 %v8522_v17  ;;  %v4110_v17 = vrot.slane %v11235_v41, %v4109_v31 }
 0x452   :  { %5924 = vmatpush2.bf16.msra.mxu0 %v8508_v33  ;;  %7344 = vmatprep.subr.bf16.mxu1 %v8523_v36 }
 0x453   :  { %7366 = vmatprep.subr.bf16.mxu0 %v8539_v25 }
 0x455   :  { %v5681_v29 = vpop.f32.mrf.mxu0  ;;  %5926 = vmatmul.mubr.bf16.vlgmr.msra.gmra.mxu0 %v10652_v4  ;;  %v8525_v4 = vld [vmem:[%s11407_s5 + $0xf0] sm:$0xff]  }
 0x456   :  { %v5682_v2 = vadd.f32 %v5681_v29, %v5641_v50  ;;  %7367 = vmatpush3.bf16.msra.mxu0 %v8540_v20 }
 0x457   :  { %v5683_v43 = vpop.f32.mrf.mxu0  ;;  %7368 = vmatprep.subr.bf16.mxu0 %v8541_v58 }
 0x458   :  { %v5684_v47 = vadd.f32 %v5683_v43, %v5643_v10  ;;  %8565 = vtanh.f32 %v5682_v2 }
 0x459   :  { %v5685_v22 = vpop.f32.mrf.mxu0 }
 0x45a   :  { %8567 = vtanh.f32 %v5684_v47  ;;  %7369 = vmatpush3.bf16.msra.mxu0 %v8542_v61  ;;  %v8558_v61 = vld [vmem:[%s11409_s7 + $0x20] sm:$0xff]  }
 0x45b   :  { %v5686_v34 = vpop.f32.mrf.mxu0  ;;  %7370 = vmatprep.subr.bf16.mxu0 %v8543_v23  ;;  %v8559_v23 = vld [vmem:[%s11409_s7 + $0x18] sm:$0xff]  }
 0x45e   :  { %7371 = vmatpush3.bf16.msra.mxu0 %v8544_v62 }
 0x45f   :  { %7372 = vmatprep.subr.bf16.mxu0 %v8545_v46 }
 0x462   :  { %7373 = vmatpush3.bf16.msra.mxu0 %v8546_v44 }
 0x463   :  { %7374 = vmatprep.subr.bf16.mxu0 %v8547_v63  ;;  %v8560_v63 = vld [vmem:[%s11409_s7 + $0x10] sm:$0xff]  }
 0x465   :  { %v8566_v49 = vpop.eup %8565 }
 0x466   :  { %v5940_v42 = vpack.c.bf16 %v8566_v49, %v8566_v49  ;;  %7375 = vmatpush3.bf16.msra.mxu0 %v8548_v24  ;;  %v8561_v24 = vld [vmem:[%s11409_s7 + $0x8] sm:$0xff]  }
 0x467   :  { %v8568_v9 = vpop.eup %8567  ;;  %7376 = vmatprep.subr.bf16.mxu0 %v8549_v27  ;;  %v7264_v27 = vld [vmem:[%s11410_s6] ss:$0 sm:$0xff] }
 0x468   :  { %v5941_v7 = vpack.c.bf16 %v8568_v9, %v8568_v9 }
 0x46a   :  { %6369 = vmatprep.mubr.bf16.mxu1 %v5941_v7  ;;  %7377 = vmatpush3.bf16.msra.mxu0 %v8550_v54 }
 0x46b   :  { %6370 = vmatmul.mubr.bf16.vlgmr.msra.gmra.mxu1 %v5940_v42  ;;  %7378 = vmatprep.subr.bf16.mxu0 %v8551_v26 }
 0x46c   :  { %7345 = vmatpush3.bf16.msra.mxu1 %v8524_v28 }
 0x46d   :  { %7346 = vmatprep.subr.bf16.mxu1 %v8525_v4 }
 0x46e   :  { %7379 = vmatpush3.bf16.msra.mxu0 %v8552_v0 }
 0x46f   :  { %7380 = vmatprep.subr.bf16.mxu0 %v8553_v16 }
 0x470   :  { %7347 = vmatpush3.bf16.msra.mxu1 %v8526_v52 }
 0x471   :  { %7348 = vmatprep.subr.bf16.mxu1 %v8527_v32 }
 0x472   :  { %7381 = vmatpush3.bf16.msra.mxu0 %v8554_v18 }
 0x474   :  { %v11275_v13 = vpop.f32.mrf.mxu1  ;;  %7349 = vmatpush3.bf16.msra.mxu1 %v8528_v53  ;;  %v4113_v53 = vsub.s32 4, %v11211_v59 }
 0x475   :  { %7350 = vmatprep.subr.bf16.mxu1 %v8529_v12  ;;  %v5723_v11 = vadd.f32 %v11275_v13, %v4106_v19  ;;  %v4117_v12 = vsub.s32 5, %v11211_v59  ;;  %v8557_v59 = vld [vmem:[%s11409_s7 + $0x28] sm:$0xff]  }
 0x476   :  { %v5724_v57 = vpop.f32.mrf.mxu1  ;;  %v4114_v13 = vrot.slane %v11235_v41, %v4113_v53 }
 0x477   :  { %v5725_v33 = vadd.f32 %v5724_v57, %v4110_v17 }
 0x478   :  { %v5726_v8 = vpop.f32.mrf.mxu1  ;;  %7351 = vmatpush3.bf16.msra.mxu1 %v8530_v56  ;;  %v4118_v56 = vrot.slane %v11235_v41, %v4117_v12 }
 0x479   :  { %7352 = vmatprep.subr.bf16.mxu1 %v8531_v40  ;;  %v8555_v40 = vld [vmem:[%s11409_s7 + $0x38] sm:$0xff]   ;;  %v8556_v8 = vld [vmem:[%s11409_s7 + $0x30] sm:$0xff]  }
 0x47a   :  { %v5727_v35 = vpop.f32.mrf.mxu1 }
 0x47c   :  { %7353 = vmatpush3.bf16.msra.mxu1 %v8532_v45 }
 0x47d   :  { %7354 = vmatprep.subr.bf16.mxu1 %v8533_v3 }
 0x480   :  { %7355 = vmatpush3.bf16.msra.mxu1 %v8534_v30 }
 0x481   :  { %7356 = vmatprep.subr.bf16.mxu1 %v8535_v60 }
 0x484   :  { %7357 = vmatpush3.bf16.msra.mxu1 %v8536_v51 }
 0x485   :  { %7358 = vmatprep.subr.bf16.mxu1 %v8537_v15 }
 0x488   :  { %7359 = vmatpush3.bf16.msra.mxu1 %v8538_v6 }
 0x489   :  { %7397 = vmatprep.subr.bf16.mxu1 %v8583_v5 }
 0x495   :  { %v5763_v14 = vpop.f32.mrf.mxu0 }
 0x496   :  { %v5764_v36 = vadd.f32 %v5763_v14, %v5723_v11 }
 0x497   :  { %v5765_v21 = vpop.f32.mrf.mxu0 }
 0x498   :  { %v5766_v38 = vadd.f32 %v5765_v21, %v5725_v33 }
 0x499   :  { %v5767_v48 = vpop.f32.mrf.mxu0 }
 0x49b   :  { %v5768_v55 = vpop.f32.mrf.mxu0 }
 0x49c   :  { %v8562_v55 = vld [vmem:[%s11409_s7] sm:$0xff]  }
 0x4b4   :  { %v5804_v37 = vpop.f32.mrf.mxu1 }
 0x4b5   :  { %v5805_v39 = vadd.f32 %v5804_v37, %v5764_v36 }
 0x4b6   :  { %v5806_v50 = vpop.f32.mrf.mxu1 }
 0x4b7   :  { %v5807_v29 = vadd.f32 %v5806_v50, %v5766_v38  ;;  %8569 = vtanh.f32 %v5805_v39 }
 0x4b8   :  { %v5808_v10 = vpop.f32.mrf.mxu1 }
 0x4b9   :  { %8571 = vtanh.f32 %v5807_v29 }
 0x4ba   :  { %v5809_v2 = vpop.f32.mrf.mxu1 }
 0x4c4   :  { %v8570_v43 = vpop.eup %8569 }
 0x4c5   :  { %v5942_v34 = vpack.c.bf16 %v8570_v43, %v8570_v43 }
 0x4c6   :  { %v8572_v47 = vpop.eup %8571 }
 0x4c7   :  { %v5943_v22 = vpack.c.bf16 %v8572_v47, %v8572_v47 }
 0x4c9   :  { %6409 = vmatprep.mubr.bf16.mxu1 %v5943_v22 }
 0x4ca   :  { %6410 = vmatmul.mubr.bf16.vlgmr.msra.gmra.mxu1 %v5942_v34 }
 0x4cb   :  { %7398 = vmatpush3.bf16.msra.mxu1 %v8555_v40  ;;  %7413 = vmatprep.mubr.msk.bf16.mxu1 %vm8590_vm4, %v8583_v5 }
 0x4cc   :  { %7399 = vmatprep.subr.bf16.mxu1 %v8583_v5 }
 0x4cf   :  { %7400 = vmatpush3.bf16.msra.mxu1 %v8556_v8 }
 0x4d0   :  { %7401 = vmatprep.subr.bf16.mxu1 %v8583_v5 }
 0x4d3   :  { %7402 = vmatpush3.bf16.msra.mxu1 %v8557_v59 }
 0x4d4   :  { %7403 = vmatprep.subr.bf16.mxu1 %v8583_v5 }
 0x4d5   :  { %v5845_v49 = vpop.f32.mrf.mxu0 }
 0x4d6   :  { %v5846_v57 = vadd.f32 %v5845_v49, %v4114_v13 }
 0x4d7   :  { %v5847_v9 = vpop.f32.mrf.mxu0  ;;  %7404 = vmatpush3.bf16.msra.mxu1 %v8558_v61 }
 0x4d8   :  { %v5848_v45 = vadd.f32 %v5847_v9, %v4118_v56  ;;  %7405 = vmatprep.subr.bf16.mxu1 %v8583_v5 }
 0x4d9   :  { %v5849_v7 = vpop.f32.mrf.mxu0 }
 0x4db   :  { %v5850_v28 = vpop.f32.mrf.mxu0  ;;  %7406 = vmatpush3.bf16.msra.mxu1 %v8559_v23 }
 0x4dc   :  { %7407 = vmatprep.subr.bf16.mxu1 %v8583_v5 }
 0x4df   :  { %7408 = vmatpush3.bf16.msra.mxu1 %v8560_v63 }
 0x4e0   :  { %7409 = vmatprep.subr.bf16.mxu1 %v8583_v5 }
 0x4e3   :  { %7410 = vmatpush3.bf16.msra.mxu1 %v8561_v24 }
 0x4e4   :  { %7411 = vmatprep.subr.bf16.mxu1 %v8583_v5  ;;  %v7313_v5 = vld [vmem:[%s11411_s8] ss:$0 sm:$0xff] }
 0x4e7   :  { %7412 = vmatpush3.bf16.msra.mxu1 %v8562_v55 }
 0x4f4   :  { %v5886_v42 = vpop.f32.mrf.mxu1 }
 0x4f5   :  { %v5887_v3 = vadd.f32 %v5886_v42, %v5846_v57 }
 0x4f6   :  { %v5888_v4 = vpop.f32.mrf.mxu1 }
 0x4f7   :  { %v5889_v41 = vadd.f32 %v5888_v4, %v5848_v45 }
 0x4f8   :  { %v5890_v52 = vpop.f32.mrf.mxu1 }
 0x4fa   :  { %v5891_v32 = vpop.f32.mrf.mxu1 }
 0x515   :  { %v5927_v35 = vpop.f32.mrf.mxu0 }
 0x516   :  { %v5928_v25 = vadd.f32 %v5927_v35, %v5887_v3 }
 0x517   :  { %v5929_v20 = vpop.f32.mrf.mxu0 }
 0x518   :  { %v5930_v58 = vadd.f32 %v5929_v20, %v5889_v41  ;;  %8573 = vtanh.f32 %v5928_v25 }
 0x519   :  { %v5931_v30 = vpop.f32.mrf.mxu0 }
 0x51a   :  { %8575 = vtanh.f32 %v5930_v58 }
 0x51b   :  { %v5932_v60 = vpop.f32.mrf.mxu0 }
 0x525   :  { %v8574_v51 = vpop.eup %8573 }
 0x526   :  { %v5944_v6 = vpack.c.bf16 %v8574_v51, %v8574_v51 }
 0x527   :  { %v8576_v15 = vpop.eup %8575 }
 0x528   :  { %v5945_v62 = vpack.c.bf16 %v8576_v15, %v8576_v15 }
 0x52a   :  { %6449 = vmatprep.mubr.bf16.mxu0 %v5945_v62 }
 0x52b   :  { %v7338_v14 = vpop.f32.mrf.mxu1  ;;  %6450 = vmatmul.mubr.bf16.vlgmr.msra.gmra.mxu0 %v5944_v6 }
 0x52d   :  { %v7339_v46 = vpop.f32.mrf.mxu1 }
 0x52e   :  { %v7340_v44 = vadd.f32 %v7339_v46, %v7338_v14 }
 0x52f   :  { %v7341_v21 = vpop.f32.mrf.mxu1 }
 0x530   :  { %v6372_v0 = vadd.f32 %v7340_v44, %v7264_v27 }
 0x531   :  { %v7342_v48 = vpop.f32.mrf.mxu1 }
 0x58a   :  { %v7360_v54 = vpop.f32.mrf.mxu1 }
 0x58c   :  { %v7361_v26 = vpop.f32.mrf.mxu1 }
 0x58d   :  { %v7362_v16 = vadd.f32 %v7361_v26, %v7360_v54 }
 0x58e   :  { %v7363_v18 = vpop.f32.mrf.mxu1 }
 0x58f   :  { %v6412_v1 = vadd.f32 %v7362_v16, %v6372_v0 }
 0x590   :  { %v7364_v31 = vpop.f32.mrf.mxu1 }
 0x5eb   :  { %v7382_v19 = vpop.f32.mrf.mxu0 }
 0x5ed   :  { %v7383_v17 = vpop.f32.mrf.mxu0 }
 0x5ee   :  { %v7384_v11 = vadd.f32 %v7383_v17, %v7382_v19 }
 0x5ef   :  { %v7385_v33 = vpop.f32.mrf.mxu0 }
 0x5f0   :  { %v6452_v36 = vadd.f32 %v7384_v11, %v6412_v1 }
 0x5f1   :  { %v7386_v37 = vpop.f32.mrf.mxu0 }
 0x5f2   :  { %v6457_v38 = vmax.f32 %v6452_v36, 0.0 }
 0x5f4   :  { %v6458_v39 = vpack.c.bf16 %v6457_v38, %v6457_v38 }
 0x5f6   :  { %7414 = vmatmul.mubr.bf16.vlgmr.msra.gmra.mxu1 %v6458_v39 }
 0x6b6   :  { %v6564_v50 = vpop.f32.mrf.mxu1 }
 0x6b7   :  { %v6565_v29 = vadd.f32 %v7313_v5, %v6564_v50 }
 0x6b8   :  { %v7415_v10 = vpop.f32.mrf.mxu1 }
 0x6b9   :  { %6570 = vmax.xlane.f32.xlu1 %v6565_v29 }
 0x6ba   :  { %v6567_v2 = vpop.f32.mrf.mxu1 }
 0x6bc   :  { %v7416_v43 = vpop.f32.mrf.mxu1 }
 0x742   :  { %v6571_v47 = vpop.xlane.xlu1 %6570 }
 0x743   :  { %v6572_v22 = vsub.f32 %v6565_v29, %v6571_v47 }
 0x745   :  { %v6573_v34 = vmul.f32 1.442695, %v6572_v22 }
 0x747   :  { %8577 = vpow2.f32 %v6573_v34 }
 0x754   :  { %v8578_v49 = vpop.eup %8577 }
 0x755   :  { %6575 = vadd.xlane.f32.xlu0 %v8578_v49 }
 0x7de   :  { %v6576_v9 = vpop.xlane.xlu0 %6575 }
 0x7df   :  { %8579 = vrcp.f32 %v6576_v9 }
 0x7ec   :  { %v8580_v7 = vpop.eup %8579 }
 0x7ed   :  { %v6578_v28 = vmul.f32 %v8580_v7, %v8578_v49 }
 0x7ef   :  { %6579 = vst [vmem:[%s11412_s9] sm:$0xff] %v6578_v28 }

</bundles_post_ra>
